<compile_context>
chip_gen: v7x
topology: tpu7x:2x2x1
jax: 0.10.0
libtpu: 0.0.40
codegen_flags: <defaults>
</compile_context>

<pallas_src>
import functools

import jax
import jax.numpy as jnp
from jax.experimental import pallas as pl
from jax.experimental.pallas import tpu as pltpu


# ----------------------------------------------------------------------------
# Single-buffered resident BlockSpecs for grid-invariant operands (weights).
# Probed once; falls back to default double-buffering if unsupported.
# ----------------------------------------------------------------------------
_SINGLE_BUFFER_OK = None


def _single_buffering_supported():
    global _SINGLE_BUFFER_OK
    if _SINGLE_BUFFER_OK is not None:
        return _SINGLE_BUFFER_OK
    ok = False
    if hasattr(pl, "Buffered"):
        try:
            def _k(w_ref, o_ref):
                o_ref[...] = w_ref[...] * 2.0

            spec = pl.BlockSpec((8, 128), lambda i: (0, 0),
                                pipeline_mode=pl.Buffered(1))
            fn = pl.pallas_call(
                _k,
                out_shape=jax.ShapeDtypeStruct((16, 128), jnp.float32),
                grid=(2,),
                in_specs=[spec],
                out_specs=pl.BlockSpec((8, 128), lambda i: (i, 0)))
            jax.jit(fn).lower(
                jax.ShapeDtypeStruct((8, 128), jnp.float32)).compile()
            ok = True
        except Exception:  # pragma: no cover - graceful fallback
            ok = False
    _SINGLE_BUFFER_OK = ok
    return ok


def _resident_spec(shape):
    """BlockSpec for a grid-invariant (weight-like) operand."""
    ndim = len(shape)
    index_map = lambda b: (0,) * ndim
    if _single_buffering_supported():
        try:
            return pl.BlockSpec(shape, index_map, pipeline_mode=pl.Buffered(1))
        except TypeError:
            pass
    return pl.BlockSpec(shape, index_map)


# ----------------------------------------------------------------------------
# Kernel: one AllInOneBlock forward with a 3x3 coupling subnet (per batch
# element). Emits the *un-permuted* concatenated output; the wrapper applies
# the hard permutation lazily as a channel gather.
# ----------------------------------------------------------------------------
def _flow_step_kernel_k3(x1_ref, x2_ref, w1_ref, b1_ref, w2_ref, b2_ref,
                         gs_ref, go_ref, y_ref, ld_ref, xcat_ref, hcat_ref,
                         *, H, W, Wp, C1, C2, Ch, clamp, row_tile, cdt):
    TH = row_tile
    n_tiles = H // TH
    C = C1 + C2
    pad_cols = Wp - W                      # static

    b1 = b1_ref[...]                       # (1, Ch)    f32
    b2 = b2_ref[...]                       # (1, 2*C2)  f32
    gs = gs_ref[...]                       # (1, C)     activated global scale
    go = go_ref[...]                       # (1, C)     global offset
    gs1, gs2 = gs[:, :C1], gs[:, C1:]
    go1, go2 = go[:, :C1], go[:, C1:]

    colmask = None
    if pad_cols:
        colmask = jax.lax.broadcasted_iota(jnp.int32, (1, Wp, 1), 1) < W

    # ---- build the dx-im2col of the zero-padded x1 (xcat) ------------------
    # xcat[r, j, dx*C1:(dx+1)*C1] == padded_x1[r, j + dx]
    # Only borders are zeroed; the interior is rewritten every grid step
    # (the batch axis is "parallel", so no pl.when(b == 0) init is allowed).
    xcat_ref[0:1, :, :] = jnp.zeros((1, Wp, 3 * C1), cdt)
    xcat_ref[H + 1:H + 2, :, :] = jnp.zeros((1, Wp, 3 * C1), cdt)
    # dx = 1: full-width copy of x1
    xcat_ref[1:H + 1, :, C1:2 * C1] = x1_ref[0].astype(cdt)
    # dx = 0: left zero column + shifted copy
    xcat_ref[1:H + 1, 0:1, 0:C1] = jnp.zeros((H, 1, C1), cdt)
    xcat_ref[1:H + 1, 1:Wp, 0:C1] = x1_ref[0, :, 0:Wp - 1, :].astype(cdt)
    # dx = 2: shifted copy + right zero column
    xcat_ref[1:H + 1, 0:Wp - 1, 2 * C1:3 * C1] = (
        x1_ref[0, :, 1:Wp, :].astype(cdt))
    xcat_ref[1:H + 1, Wp - 1:Wp, 2 * C1:3 * C1] = jnp.zeros((H, 1, C1), cdt)

    # hcat borders + the two constant-zero column strips
    hcat_ref[0:1, :, :] = jnp.zeros((1, Wp, 3 * Ch), cdt)
    hcat_ref[H + 1:H + 2, :, :] = jnp.zeros((1, Wp, 3 * Ch), cdt)
    hcat_ref[1:H + 1, 0:1, 0:Ch] = jnp.zeros((H, 1, Ch), cdt)
    hcat_ref[1:H + 1, Wp - 1:Wp, 2 * Ch:3 * Ch] = jnp.zeros((H, 1, Ch), cdt)

    # ---- conv1 (3 fused-tap dots per tile) + ReLU -> hcat (im2col layout) --
    for t in range(n_tiles):
        r0 = t * TH
        acc = None                                  # seed with first tap
        for dy in range(3):
            patch = xcat_ref[r0 + dy:r0 + dy + TH, :, :].reshape(
                TH * Wp, 3 * C1)
            d = jnp.dot(patch, w1_ref[dy], preferred_element_type=jnp.float32)
            acc = d if acc is None else acc + d
        h3 = jnp.maximum(acc + b1, 0.0).reshape(TH, Wp, Ch)
        if pad_cols:
            h3 = jnp.where(colmask, h3, 0.0)        # junk cols act as zero pad
        h3 = h3.astype(cdt)
        hcat_ref[1 + r0:1 + r0 + TH, :, Ch:2 * Ch] = h3                  # dx=1
        hcat_ref[1 + r0:1 + r0 + TH, 1:Wp, 0:Ch] = h3[:, 0:Wp - 1, :]    # dx=0
        hcat_ref[1 + r0:1 + r0 + TH, 0:Wp - 1, 2 * Ch:3 * Ch] = (
            h3[:, 1:Wp, :])                                              # dx=2

    # ---- conv2 (3 fused-tap dots per tile) + affine coupling + global ------
    j2 = jnp.zeros((), jnp.float32)
    for t in range(n_tiles):
        r0 = t * TH
        acc = None
        for dy in range(3):
            patch = hcat_ref[r0 + dy:r0 + dy + TH, :, :].reshape(
                TH * Wp, 3 * Ch)
            d = jnp.dot(patch, w2_ref[dy], preferred_element_type=jnp.float32)
            acc = d if acc is None else acc + d
        a = (acc + b2) * 0.1                  # FrEIA scales subnet output by 0.1
        s = clamp * jnp.tanh(a[:, :C2])       # (TH*Wp, C2)
        t_shift = a[:, C2:]
        x2 = x2_ref[0, r0:r0 + TH, :, :].reshape(TH * Wp, C2)
        x2n = x2 * jnp.exp(s) + t_shift
        if pad_cols:
            j2 = j2 + jnp.sum(jnp.where(colmask, s.reshape(TH, Wp, C2), 0.0))
        else:
            j2 = j2 + jnp.sum(s)

        x1 = x1_ref[0, r0:r0 + TH, :, :].reshape(TH * Wp, C1)
        y_ref[0, r0:r0 + TH, :, 0:C1] = (x1 * gs1 + go1).reshape(
            TH, Wp, C1).astype(y_ref.dtype)
        y_ref[0, r0:r0 + TH, :, C1:] = (x2n * gs2 + go2).reshape(
            TH, Wp, C2).astype(y_ref.dtype)
        if pad_cols:
            # keep the invariant "padded columns are zero" for the next step
            y_ref[0, r0:r0 + TH, W:Wp, :] = jnp.zeros(
                (TH, pad_cols, C), y_ref.dtype)

    ld_ref[...] = jnp.reshape(j2, (1, 1, 1))


# ----------------------------------------------------------------------------
# Kernel: one AllInOneBlock forward with a 1x1 coupling subnet (per batch
# element). The whole image is processed in a single tile (HBM-bound step).
# ----------------------------------------------------------------------------
def _flow_step_kernel_k1(x1_ref, x2_ref, w1_ref, b1_ref, w2_ref, b2_ref,
                         gs_ref, go_ref, y_ref, ld_ref,
                         *, H, W, Wp, C1, C2, Ch, clamp, cdt):
    M = H * Wp
    C = C1 + C2
    pad_cols = Wp - W

    b1 = b1_ref[...]
    b2 = b2_ref[...]
    gs = gs_ref[...]
    go = go_ref[...]
    gs1, gs2 = gs[:, :C1], gs[:, C1:]
    go1, go2 = go[:, :C1], go[:, C1:]

    x1 = x1_ref[0].reshape(M, C1)
    h = jnp.maximum(
        jnp.dot(x1.astype(cdt), w1_ref[...],
                preferred_element_type=jnp.float32) + b1, 0.0)
    a = (jnp.dot(h.astype(cdt), w2_ref[...],
                 preferred_element_type=jnp.float32) + b2) * 0.1
    s = clamp * jnp.tanh(a[:, :C2])
    t_shift = a[:, C2:]
    x2 = x2_ref[0].reshape(M, C2)
    x2n = x2 * jnp.exp(s) + t_shift

    if pad_cols:
        colmask = jax.lax.broadcasted_iota(jnp.int32, (1, Wp, 1), 1) < W
        j2 = jnp.sum(jnp.where(colmask, s.reshape(H, Wp, C2), 0.0))
    else:
        j2 = jnp.sum(s)

    y_ref[0, :, :, 0:C1] = (x1 * gs1 + go1).reshape(
        H, Wp, C1).astype(y_ref.dtype)
    y_ref[0, :, :, C1:] = (x2n * gs2 + go2).reshape(
        H, Wp, C2).astype(y_ref.dtype)
    if pad_cols:
        y_ref[0, :, W:Wp, :] = jnp.zeros((H, pad_cols, C), y_ref.dtype)

    ld_ref[...] = jnp.reshape(j2, (1, 1, 1))


# ----------------------------------------------------------------------------
# Wrapper: one flow step via pallas_call (grid over batch).
# Takes (x1, x2) padded to Wp columns (padded columns zero) and returns the
# un-permuted concatenated output plus this step's per-sample log-det.
# ----------------------------------------------------------------------------
def flow_step(x1, x2, prm, *, W_true, clamp=2.0, row_tile=None,
              compute_dtype=jnp.float32,
              vmem_limit_bytes=48 * 1024 * 1024):
    B, H, Wp, C1 = x1.shape
    C2 = x2.shape[-1]
    C = C1 + C2
    k = prm["k"]
    Ch = prm["w1"].shape[-1]

    # Hoisted batch-invariant scalar math (softplus(beta=0.5) global-scale
    # activation and the global-scaling log-det term).
    gs = 0.2 * jax.nn.softplus(0.5 * prm["gscale"])            # (1, C)
    go = prm["goff"]
    glog_term = (H * W_true) * jnp.sum(jnp.log(gs))            # scalar

    cparams = pltpu.CompilerParams(
        dimension_semantics=("parallel",),
        vmem_limit_bytes=vmem_limit_bytes)

    out_shape = (jax.ShapeDtypeStruct((B, H, Wp, C), x1.dtype),
                 jax.ShapeDtypeStruct((B, 1, 1), jnp.float32))
    out_specs = (pl.BlockSpec((1, H, Wp, C), lambda b: (b, 0, 0, 0)),
                 pl.BlockSpec((1, 1, 1), lambda b: (b, 0, 0)))

    if k == 3:
        if row_tile is None:
            row_tile = 1
            for d in range(H, 0, -1):       # biggest divisor of H, <=512 rows
                if H % d == 0 and d * Wp <= 512:
                    row_tile = d
                    break
        assert H % row_tile == 0, "row_tile must divide H"

        # dx-fused weights: (3, 3*Cin, Cout)
        w1 = prm["w1"].reshape(3, 3 * C1, Ch).astype(compute_dtype)
        w2 = prm["w2"].reshape(3, 3 * Ch, 2 * C2).astype(compute_dtype)
        kern = functools.partial(_flow_step_kernel_k3, H=H, W=W_true, Wp=Wp,
                                 C1=C1, C2=C2, Ch=Ch, clamp=clamp,
                                 row_tile=row_tile, cdt=compute_dtype)
        y, ld = pl.pallas_call(
            kern, out_shape=out_shape, grid=(B,),
            in_specs=[
                pl.BlockSpec((1, H, Wp, C1), lambda b: (b, 0, 0, 0)),
                pl.BlockSpec((1, H, Wp, C2), lambda b: (b, 0, 0, 0)),
                _resident_spec((3, 3 * C1, Ch)),
                _resident_spec((1, Ch)),
                _resident_spec((3, 3 * Ch, 2 * C2)),
                _resident_spec((1, 2 * C2)),
                _resident_spec((1, C)),
                _resident_spec((1, C)),
            ],
            out_specs=out_specs,
            scratch_shapes=[
                pltpu.VMEM((H + 2, Wp, 3 * C1), compute_dtype),   # x im2col
                pltpu.VMEM((H + 2, Wp, 3 * Ch), compute_dtype),   # h im2col
            ],
            compiler_params=cparams,
        )(x1, x2, w1, prm["b1"], w2, prm["b2"], gs, go)
    else:  # k == 1: plain matmuls, no scratch, one tile for the whole image
        w1 = prm["w1"].reshape(C1, Ch).astype(compute_dtype)
        w2 = prm["w2"].reshape(Ch, 2 * C2).astype(compute_dtype)
        kern = functools.partial(_flow_step_kernel_k1, H=H, W=W_true, Wp=Wp,
                                 C1=C1, C2=C2, Ch=Ch, clamp=clamp,
                                 cdt=compute_dtype)
        y, ld = pl.pallas_call(
            kern, out_shape=out_shape, grid=(B,),
            in_specs=[
                pl.BlockSpec((1, H, Wp, C1), lambda b: (b, 0, 0, 0)),
                pl.BlockSpec((1, H, Wp, C2), lambda b: (b, 0, 0, 0)),
                _resident_spec((C1, Ch)),
                _resident_spec((1, Ch)),
                _resident_spec((Ch, 2 * C2)),
                _resident_spec((1, 2 * C2)),
                _resident_spec((1, C)),
                _resident_spec((1, C)),
            ],
            out_specs=out_specs,
            compiler_params=cparams,
        )(x1, x2, w1, prm["b1"], w2, prm["b2"], gs, go)

    return y, ld.reshape(B) + glog_term


def fastflow_forward(x_nchw, params, clamp=2.0, row_tile=None,
                     compute_dtype=jnp.float32):
    """FastFlow.forward: returns (output, log_jac_dets). x_nchw is NCHW."""
    x = jnp.transpose(x_nchw, (0, 2, 3, 1))          # -> NHWC for the kernels
    B, H, W, C = x.shape
    Wp = ((W + 7) // 8) * 8                          # sublane-aligned width
    if Wp != W:
        x = jnp.pad(x, ((0, 0), (0, 0), (0, Wp - W), (0, 0)))
    C2 = C // 2
    C1 = C - C2
    total_ld = jnp.zeros((B,), jnp.float32)

    # The hard permutation of each AllInOneBlock is applied lazily: the kernel
    # produces the un-permuted concatenated output and the static channel
    # gather below is fused by XLA into the next step's split / the final
    # transpose -- no CxC permutation matmul runs in-kernel.
    u = x
    x1, x2 = x[..., :C1], x[..., C1:]
    for prm in params:
        y, ld = flow_step(x1, x2, prm, W_true=W, clamp=clamp,
                          row_tile=row_tile, compute_dtype=compute_dtype)
        total_ld = total_ld + ld
        u = jnp.take(y, prm["perm"], axis=-1)
        x1, x2 = u[..., :C1], u[..., C1:]

    if Wp != W:
        u = u[:, :, :W, :]
    return jnp.transpose(u, (0, 3, 1, 2)), total_ld


# ----------------------------------------------------------------------------
# Deterministic parameter init (shapes follow AllInOneBlock + subnet_conv_func)
# ----------------------------------------------------------------------------
def init_fastflow_params(key, C, flow_steps, conv3x3_only=False,
                         hidden_ratio=1.0):
    C2 = C // 2
    C1 = C - C2
    params = []
    for i in range(flow_steps):
        k = 1 if (i % 2 == 1 and not conv3x3_only) else 3
        Ch = int(C1 * hidden_ratio)
        key, k1, k2, k3, k4, k5 = jax.random.split(key, 6)
        fan1 = float(C1 * k * k)
        fan2 = float(Ch * k * k)
        w1 = jax.random.uniform(k1, (k, k, C1, Ch), jnp.float32, -1., 1.) / jnp.sqrt(fan1)
        b1 = jax.random.uniform(k2, (1, Ch), jnp.float32, -1., 1.) / jnp.sqrt(fan1)
        w2 = jax.random.uniform(k3, (k, k, Ch, 2 * C2), jnp.float32, -1., 1.) / jnp.sqrt(fan2)
        b2 = jax.random.uniform(k4, (1, 2 * C2), jnp.float32, -1., 1.) / jnp.sqrt(fan2)
        perm = jax.random.permutation(k5, C)      # hard perm (permute_soft=False)
        # global_affine_init=1.0, SOFTPLUS parameterization
        g0 = 2.0 * jnp.log(jnp.exp(0.5 * 10.0 * 1.0) - 1.0)
        gscale = jnp.full((1, C), g0, jnp.float32)
        goff = jnp.zeros((1, C), jnp.float32)
        params.append(dict(k=k, w1=w1, b1=b1, w2=w2, b2=b2, perm=perm,
                           gscale=gscale, goff=goff))
    return params


# ----------------------------------------------------------------------------
# Pure-JAX reference (same math, XLA convs) for a sanity check.
# ----------------------------------------------------------------------------
def _ref_forward(x_nchw, params, clamp=2.0):
    x = jnp.transpose(x_nchw, (0, 2, 3, 1))
    B, H, W, C = x.shape
    C2 = C // 2
    C1 = C - C2
    total_ld = jnp.zeros((B,), jnp.float32)
    dn = ("NHWC", "HWIO", "NHWC")
    hi = jax.lax.Precision.HIGHEST
    for prm in params:
        x1, x2 = x[..., :C1], x[..., C1:]
        h = jax.lax.conv_general_dilated(x1, prm["w1"], (1, 1), "SAME",
                                         dimension_numbers=dn, precision=hi)
        h = jax.nn.relu(h + prm["b1"].reshape(1, 1, 1, -1))
        a = jax.lax.conv_general_dilated(h, prm["w2"], (1, 1), "SAME",
                                         dimension_numbers=dn, precision=hi)
        a = (a + prm["b2"].reshape(1, 1, 1, -1)) * 0.1
        sub_jac = clamp * jnp.tanh(a[..., :C2])
        x2n = x2 * jnp.exp(sub_jac) + a[..., C2:]
        j2 = jnp.sum(sub_jac, axis=(1, 2, 3))
        xo = jnp.concatenate([x1, x2n], axis=-1)
        gscale = 0.2 * jax.nn.softplus(0.5 * prm["gscale"])
        y = xo * gscale.reshape(1, 1, 1, C) + prm["goff"].reshape(1, 1, 1, C)
        x = jnp.take(y, prm["perm"], axis=-1)
        total_ld = total_ld + j2 + (H * W) * jnp.sum(jnp.log(gscale))
    return jnp.transpose(x, (0, 3, 1, 2)), total_ld


if __name__ == "__main__":
    key = jax.random.PRNGKey(0)
    kx, kp, kx2 = jax.random.split(key, 3)
    clamp = 2.0

    # Config 1: W NOT a multiple of 8 -> exercises the W-padding / masked
    # log-det path; row_tile=2 exercises the multi-tile conv + hcat halo.
    B, C, H, W = 2, 8, 8, 13
    flow_steps = 2            # step 0 -> 3x3 subnet, step 1 -> 1x1 subnet
    x = jax.random.normal(kx, (B, C, H, W), jnp.float32)
    params = init_fastflow_params(kp, C, flow_steps,
                                  conv3x3_only=False, hidden_ratio=1.0)
    ref_out, ref_ld = _ref_forward(x, params, clamp)

    fwd_f32 = jax.jit(lambda xx: fastflow_forward(
        xx, params, clamp=clamp, row_tile=2, compute_dtype=jnp.float32))
    out, logdet = fwd_f32(x)
    jax.block_until_ready((out, logdet))
    assert out.shape == (B, C, H, W)
    assert logdet.shape == (B,)
    assert jnp.allclose(out, ref_out, rtol=1e-3, atol=1e-2), "f32 output mismatch (W=13)"
    assert jnp.allclose(logdet, ref_ld, rtol=1e-3, atol=1e-2), "f32 logdet mismatch (W=13)"

    # Config 2: aligned W (no padding / masking path), default row tiling.
    Bb, Cb, Hb, Wb = 2, 8, 8, 16
    xb = jax.random.normal(kx2, (Bb, Cb, Hb, Wb), jnp.float32)
    params_b = init_fastflow_params(jax.random.fold_in(kp, 1), Cb, 2)
    ref_out_b, ref_ld_b = _ref_forward(xb, params_b, clamp)
    out_b, ld_b = jax.jit(lambda xx: fastflow_forward(
        xx, params_b, clamp=clamp))(xb)
    jax.block_until_ready((out_b, ld_b))
    assert jnp.allclose(out_b, ref_out_b, rtol=1e-3, atol=1e-2), "f32 output mismatch (W=16)"
    assert jnp.allclose(ld_b, ref_ld_b, rtol=1e-3, atol=1e-2), "f32 logdet mismatch (W=16)"

    # bf16 MXU path (weights + matmul operands bf16, f32 accumulation,
    # f32 activations between steps). Looser tolerance vs the f32 reference.
    out_h, ld_h = jax.jit(lambda xx: fastflow_forward(
        xx, params, clamp=clamp, compute_dtype=jnp.bfloat16))(x)
    jax.block_until_ready((out_h, ld_h))
    assert jnp.allclose(out_h, ref_out, rtol=5e-2, atol=1e-1), "bf16 output mismatch"
    assert jnp.allclose(ld_h, ref_ld, rtol=5e-2, atol=5e-1), "bf16 logdet mismatch"

    print("KERNEL_OK")
</pallas_src>

<mosaic_0001>
module attributes {stable_mosaic.version = 11 : i64} {
  func.func @_flow_step_kernel_k3(%arg0: i32, %arg1: memref<1x8x16x4xf32, #tpu.memory_space<vmem>>, %arg2: memref<1x8x16x4xf32, #tpu.memory_space<vmem>>, %arg3: memref<3x12x4xf32, #tpu.memory_space<vmem>>, %arg4: memref<1x4xf32, #tpu.memory_space<vmem>>, %arg5: memref<3x12x8xf32, #tpu.memory_space<vmem>>, %arg6: memref<1x8xf32, #tpu.memory_space<vmem>>, %arg7: memref<1x8xf32, #tpu.memory_space<vmem>>, %arg8: memref<1x8xf32, #tpu.memory_space<vmem>>, %arg9: memref<1x8x16x8xf32, #tpu.memory_space<vmem>>, %arg10: memref<1x1x1xf32, #tpu.memory_space<vmem>>, %arg11: memref<10x16x12xf32, #tpu.memory_space<vmem>>, %arg12: memref<10x16x12xf32, #tpu.memory_space<vmem>>) attributes {dimension_semantics = [#tpu.dimension_semantics<parallel>], iteration_bounds = array<i64: 2>, scalar_prefetch = 0 : i64, scratch_operands = 2 : i64, tpu.core_type = #tpu.core_type<tc>, window_params = [{transform_indices = @transform_0, window_bounds = array<i64: 1, 8, 16, 4>}, {transform_indices = @transform_1, window_bounds = array<i64: 1, 8, 16, 4>}, {pipeline_mode = #tpu.pipeline_mode<synchronous>, transform_indices = @transform_2, window_bounds = array<i64: 3, 12, 4>}, {pipeline_mode = #tpu.pipeline_mode<synchronous>, transform_indices = @transform_3, window_bounds = array<i64: 1, 4>}, {pipeline_mode = #tpu.pipeline_mode<synchronous>, transform_indices = @transform_4, window_bounds = array<i64: 3, 12, 8>}, {pipeline_mode = #tpu.pipeline_mode<synchronous>, transform_indices = @transform_5, window_bounds = array<i64: 1, 8>}, {pipeline_mode = #tpu.pipeline_mode<synchronous>, transform_indices = @transform_6, window_bounds = array<i64: 1, 8>}, {pipeline_mode = #tpu.pipeline_mode<synchronous>, transform_indices = @transform_7, window_bounds = array<i64: 1, 8>}, {transform_indices = @transform_8, window_bounds = array<i64: 1, 8, 16, 8>}, {transform_indices = @transform_9, window_bounds = array<i64: 1, 1, 1>}]} {
    %c0 = arith.constant 0 : index
    %c0_0 = arith.constant 0 : index
    %0 = vector.load %arg4[%c0, %c0_0] : memref<1x4xf32, #tpu.memory_space<vmem>>, vector<1x4xf32>
    %c0_1 = arith.constant 0 : index
    %c0_2 = arith.constant 0 : index
    %1 = vector.load %arg6[%c0_1, %c0_2] : memref<1x8xf32, #tpu.memory_space<vmem>>, vector<1x8xf32>
    %c0_3 = arith.constant 0 : index
    %c0_4 = arith.constant 0 : index
    %2 = vector.load %arg7[%c0_3, %c0_4] : memref<1x8xf32, #tpu.memory_space<vmem>>, vector<1x8xf32>
    %c0_5 = arith.constant 0 : index
    %c0_6 = arith.constant 0 : index
    %3 = vector.load %arg8[%c0_5, %c0_6] : memref<1x8xf32, #tpu.memory_space<vmem>>, vector<1x8xf32>
    %4 = vector.extract_strided_slice %2 {offsets = [0, 0], sizes = [1, 4], strides = [1, 1]} : vector<1x8xf32> to vector<1x4xf32>
    %5 = vector.extract_strided_slice %2 {offsets = [0, 4], sizes = [1, 4], strides = [1, 1]} : vector<1x8xf32> to vector<1x4xf32>
    %6 = vector.extract_strided_slice %3 {offsets = [0, 0], sizes = [1, 4], strides = [1, 1]} : vector<1x8xf32> to vector<1x4xf32>
    %7 = vector.extract_strided_slice %3 {offsets = [0, 4], sizes = [1, 4], strides = [1, 1]} : vector<1x8xf32> to vector<1x4xf32>
    %8 = tpu.iota {dimensions = array<i32: 1>} : vector<1x16x1xi32>
    %c13_i32 = arith.constant 13 : i32
    %9 = vector.broadcast %c13_i32 : i32 to vector<1x16x1xi32>
    %10 = arith.cmpi slt, %8, %9 : vector<1x16x1xi32>
    %cst = arith.constant 0.000000e+00 : f32
    %11 = vector.broadcast %cst : f32 to vector<1x16x12xf32>
    %c0_7 = arith.constant 0 : index
    %c0_8 = arith.constant 0 : index
    %c0_9 = arith.constant 0 : index
    %12 = vector.load %arg11[%c0_7, %c0_8, %c0_9] : memref<10x16x12xf32, #tpu.memory_space<vmem>>, vector<1x16x12xf32>
    tpu.vector_store %arg11[%c0_7, %c0_8, %c0_9], %11 {strides = array<i32>} : memref<10x16x12xf32, #tpu.memory_space<vmem>>, vector<1x16x12xf32>,
    %cst_10 = arith.constant 0.000000e+00 : f32
    %13 = vector.broadcast %cst_10 : f32 to vector<1x16x12xf32>
    %c9 = arith.constant 9 : index
    %c0_11 = arith.constant 0 : index
    %c0_12 = arith.constant 0 : index
    %14 = vector.load %arg11[%c9, %c0_11, %c0_12] : memref<10x16x12xf32, #tpu.memory_space<vmem>>, vector<1x16x12xf32>
    tpu.vector_store %arg11[%c9, %c0_11, %c0_12], %13 {strides = array<i32>} : memref<10x16x12xf32, #tpu.memory_space<vmem>>, vector<1x16x12xf32>,
    %c0_13 = arith.constant 0 : index
    %c0_14 = arith.constant 0 : index
    %c0_15 = arith.constant 0 : index
    %c0_16 = arith.constant 0 : index
    %15 = vector.load %arg1[%c0_13, %c0_14, %c0_15, %c0_16] : memref<1x8x16x4xf32, #tpu.memory_space<vmem>>, vector<1x8x16x4xf32>
    %16 = vector.shape_cast %15 : vector<1x8x16x4xf32> to vector<8x16x4xf32>
    %c1 = arith.constant 1 : index
    %c0_17 = arith.constant 0 : index
    %c4 = arith.constant 4 : index
    %17 = vector.load %arg11[%c1, %c0_17, %c4] : memref<10x16x12xf32, #tpu.memory_space<vmem>>, vector<8x16x4xf32>
    tpu.vector_store %arg11[%c1, %c0_17, %c4], %16 {strides = array<i32>} : memref<10x16x12xf32, #tpu.memory_space<vmem>>, vector<8x16x4xf32>,
    %cst_18 = arith.constant 0.000000e+00 : f32
    %18 = vector.broadcast %cst_18 : f32 to vector<8x1x4xf32>
    %c1_19 = arith.constant 1 : index
    %c0_20 = arith.constant 0 : index
    %c0_21 = arith.constant 0 : index
    %19 = vector.load %arg11[%c1_19, %c0_20, %c0_21] : memref<10x16x12xf32, #tpu.memory_space<vmem>>, vector<8x1x4xf32>
    tpu.vector_store %arg11[%c1_19, %c0_20, %c0_21], %18 {strides = array<i32>} : memref<10x16x12xf32, #tpu.memory_space<vmem>>, vector<8x1x4xf32>,
    %c0_22 = arith.constant 0 : index
    %c0_23 = arith.constant 0 : index
    %c0_24 = arith.constant 0 : index
    %c0_25 = arith.constant 0 : index
    %20 = vector.load %arg1[%c0_22, %c0_23, %c0_24, %c0_25] : memref<1x8x16x4xf32, #tpu.memory_space<vmem>>, vector<1x8x15x4xf32>
    %21 = vector.shape_cast %20 : vector<1x8x15x4xf32> to vector<8x15x4xf32>
    %c1_26 = arith.constant 1 : index
    %c1_27 = arith.constant 1 : index
    %c0_28 = arith.constant 0 : index
    %22 = vector.load %arg11[%c1_26, %c1_27, %c0_28] : memref<10x16x12xf32, #tpu.memory_space<vmem>>, vector<8x15x4xf32>
    tpu.vector_store %arg11[%c1_26, %c1_27, %c0_28], %21 {strides = array<i32>} : memref<10x16x12xf32, #tpu.memory_space<vmem>>, vector<8x15x4xf32>,
    %c0_29 = arith.constant 0 : index
    %c0_30 = arith.constant 0 : index
    %c1_31 = arith.constant 1 : index
    %c0_32 = arith.constant 0 : index
    %23 = vector.load %arg1[%c0_29, %c0_30, %c1_31, %c0_32] : memref<1x8x16x4xf32, #tpu.memory_space<vmem>>, vector<1x8x15x4xf32>
    %24 = vector.shape_cast %23 : vector<1x8x15x4xf32> to vector<8x15x4xf32>
    %c1_33 = arith.constant 1 : index
    %c0_34 = arith.constant 0 : index
    %c8 = arith.constant 8 : index
    %25 = vector.load %arg11[%c1_33, %c0_34, %c8] : memref<10x16x12xf32, #tpu.memory_space<vmem>>, vector<8x15x4xf32>
    tpu.vector_store %arg11[%c1_33, %c0_34, %c8], %24 {strides = array<i32>} : memref<10x16x12xf32, #tpu.memory_space<vmem>>, vector<8x15x4xf32>,
    %cst_35 = arith.constant 0.000000e+00 : f32
    %26 = vector.broadcast %cst_35 : f32 to vector<8x1x4xf32>
    %c1_36 = arith.constant 1 : index
    %c15 = arith.constant 15 : index
    %c8_37 = arith.constant 8 : index
    %27 = vector.load %arg11[%c1_36, %c15, %c8_37] : memref<10x16x12xf32, #tpu.memory_space<vmem>>, vector<8x1x4xf32>
    tpu.vector_store %arg11[%c1_36, %c15, %c8_37], %26 {strides = array<i32>} : memref<10x16x12xf32, #tpu.memory_space<vmem>>, vector<8x1x4xf32>,
    %cst_38 = arith.constant 0.000000e+00 : f32
    %28 = vector.broadcast %cst_38 : f32 to vector<1x16x12xf32>
    %c0_39 = arith.constant 0 : index
    %c0_40 = arith.constant 0 : index
    %c0_41 = arith.constant 0 : index
    %29 = vector.load %arg12[%c0_39, %c0_40, %c0_41] : memref<10x16x12xf32, #tpu.memory_space<vmem>>, vector<1x16x12xf32>
    tpu.vector_store %arg12[%c0_39, %c0_40, %c0_41], %28 {strides = array<i32>} : memref<10x16x12xf32, #tpu.memory_space<vmem>>, vector<1x16x12xf32>,
    %cst_42 = arith.constant 0.000000e+00 : f32
    %30 = vector.broadcast %cst_42 : f32 to vector<1x16x12xf32>
    %c9_43 = arith.constant 9 : index
    %c0_44 = arith.constant 0 : index
    %c0_45 = arith.constant 0 : index
    %31 = vector.load %arg12[%c9_43, %c0_44, %c0_45] : memref<10x16x12xf32, #tpu.memory_space<vmem>>, vector<1x16x12xf32>
    tpu.vector_store %arg12[%c9_43, %c0_44, %c0_45], %30 {strides = array<i32>} : memref<10x16x12xf32, #tpu.memory_space<vmem>>, vector<1x16x12xf32>,
    %cst_46 = arith.constant 0.000000e+00 : f32
    %32 = vector.broadcast %cst_46 : f32 to vector<8x1x4xf32>
    %c1_47 = arith.constant 1 : index
    %c0_48 = arith.constant 0 : index
    %c0_49 = arith.constant 0 : index
    %33 = vector.load %arg12[%c1_47, %c0_48, %c0_49] : memref<10x16x12xf32, #tpu.memory_space<vmem>>, vector<8x1x4xf32>
    tpu.vector_store %arg12[%c1_47, %c0_48, %c0_49], %32 {strides = array<i32>} : memref<10x16x12xf32, #tpu.memory_space<vmem>>, vector<8x1x4xf32>,
    %cst_50 = arith.constant 0.000000e+00 : f32
    %34 = vector.broadcast %cst_50 : f32 to vector<8x1x4xf32>
    %c1_51 = arith.constant 1 : index
    %c15_52 = arith.constant 15 : index
    %c8_53 = arith.constant 8 : index
    %35 = vector.load %arg12[%c1_51, %c15_52, %c8_53] : memref<10x16x12xf32, #tpu.memory_space<vmem>>, vector<8x1x4xf32>
    tpu.vector_store %arg12[%c1_51, %c15_52, %c8_53], %34 {strides = array<i32>} : memref<10x16x12xf32, #tpu.memory_space<vmem>>, vector<8x1x4xf32>,
    %c0_54 = arith.constant 0 : index
    %c0_55 = arith.constant 0 : index
    %c0_56 = arith.constant 0 : index
    %36 = vector.load %arg11[%c0_54, %c0_55, %c0_56] : memref<10x16x12xf32, #tpu.memory_space<vmem>>, vector<2x16x12xf32>
    %37 = vector.shape_cast %36 : vector<2x16x12xf32> to vector<32x12xf32>
    %c0_57 = arith.constant 0 : index
    %c0_58 = arith.constant 0 : index
    %c0_59 = arith.constant 0 : index
    %38 = vector.load %arg3[%c0_57, %c0_58, %c0_59] : memref<3x12x4xf32, #tpu.memory_space<vmem>>, vector<1x12x4xf32>
    %39 = vector.shape_cast %38 : vector<1x12x4xf32> to vector<12x4xf32>
    %cst_60 = arith.constant dense<0.000000e+00> : vector<32x4xf32>
    %40 = tpu.matmul %37, %39, %cst_60 {dimension_numbers = #tpu.dot_dimension_numbers<[1], [0], [0], [1], [0, 0, 1, 1], [], []>} : vector<32x12xf32>, vector<12x4xf32>, vector<32x4xf32> -> vector<32x4xf32>
    %c1_61 = arith.constant 1 : index
    %c0_62 = arith.constant 0 : index
    %c0_63 = arith.constant 0 : index
    %41 = vector.load %arg11[%c1_61, %c0_62, %c0_63] : memref<10x16x12xf32, #tpu.memory_space<vmem>>, vector<2x16x12xf32>
    %42 = vector.shape_cast %41 : vector<2x16x12xf32> to vector<32x12xf32>
    %c1_64 = arith.constant 1 : index
    %c0_65 = arith.constant 0 : index
    %c0_66 = arith.constant 0 : index
    %43 = vector.load %arg3[%c1_64, %c0_65, %c0_66] : memref<3x12x4xf32, #tpu.memory_space<vmem>>, vector<1x12x4xf32>
    %44 = vector.shape_cast %43 : vector<1x12x4xf32> to vector<12x4xf32>
    %cst_67 = arith.constant dense<0.000000e+00> : vector<32x4xf32>
    %45 = tpu.matmul %42, %44, %cst_67 {dimension_numbers = #tpu.dot_dimension_numbers<[1], [0], [0], [1], [0, 0, 1, 1], [], []>} : vector<32x12xf32>, vector<12x4xf32>, vector<32x4xf32> -> vector<32x4xf32>
    %46 = arith.addf %40, %45 : vector<32x4xf32>
    %c2 = arith.constant 2 : index
    %c0_68 = arith.constant 0 : index
    %c0_69 = arith.constant 0 : index
    %47 = vector.load %arg11[%c2, %c0_68, %c0_69] : memref<10x16x12xf32, #tpu.memory_space<vmem>>, vector<2x16x12xf32>
    %48 = vector.shape_cast %47 : vector<2x16x12xf32> to vector<32x12xf32>
    %c2_70 = arith.constant 2 : index
    %c0_71 = arith.constant 0 : index
    %c0_72 = arith.constant 0 : index
    %49 = vector.load %arg3[%c2_70, %c0_71, %c0_72] : memref<3x12x4xf32, #tpu.memory_space<vmem>>, vector<1x12x4xf32>
    %50 = vector.shape_cast %49 : vector<1x12x4xf32> to vector<12x4xf32>
    %cst_73 = arith.constant dense<0.000000e+00> : vector<32x4xf32>
    %51 = tpu.matmul %48, %50, %cst_73 {dimension_numbers = #tpu.dot_dimension_numbers<[1], [0], [0], [1], [0, 0, 1, 1], [], []>} : vector<32x12xf32>, vector<12x4xf32>, vector<32x4xf32> -> vector<32x4xf32>
    %52 = arith.addf %46, %51 : vector<32x4xf32>
    %53 = vector.broadcast %0 : vector<1x4xf32> to vector<32x4xf32>
    %54 = arith.addf %52, %53 : vector<32x4xf32>
    %cst_74 = arith.constant 0.000000e+00 : f32
    %55 = vector.broadcast %cst_74 : f32 to vector<32x4xf32>
    %56 = arith.maximumf %54, %55 : vector<32x4xf32>
    %57 = vector.shape_cast %56 : vector<32x4xf32> to vector<2x16x4xf32>
    %cst_75 = arith.constant 0.000000e+00 : f32
    %58 = vector.shape_cast %10 : vector<1x16x1xi1> to vector<1x16x1xi1>
    %59 = vector.broadcast %58 : vector<1x16x1xi1> to vector<2x16x4xi1>
    %60 = vector.broadcast %cst_75 : f32 to vector<2x16x4xf32>
    %61 = arith.select %59, %57, %60 : vector<2x16x4xi1>, vector<2x16x4xf32>
    %c1_76 = arith.constant 1 : index
    %c0_77 = arith.constant 0 : index
    %c4_78 = arith.constant 4 : index
    %62 = vector.load %arg12[%c1_76, %c0_77, %c4_78] : memref<10x16x12xf32, #tpu.memory_space<vmem>>, vector<2x16x4xf32>
    tpu.vector_store %arg12[%c1_76, %c0_77, %c4_78], %61 {strides = array<i32>} : memref<10x16x12xf32, #tpu.memory_space<vmem>>, vector<2x16x4xf32>,
    %63 = vector.extract_strided_slice %61 {offsets = [0, 0, 0], sizes = [2, 15, 4], strides = [1, 1, 1]} : vector<2x16x4xf32> to vector<2x15x4xf32>
    %c1_79 = arith.constant 1 : index
    %c1_80 = arith.constant 1 : index
    %c0_81 = arith.constant 0 : index
    %64 = vector.load %arg12[%c1_79, %c1_80, %c0_81] : memref<10x16x12xf32, #tpu.memory_space<vmem>>, vector<2x15x4xf32>
    tpu.vector_store %arg12[%c1_79, %c1_80, %c0_81], %63 {strides = array<i32>} : memref<10x16x12xf32, #tpu.memory_space<vmem>>, vector<2x15x4xf32>,
    %65 = vector.extract_strided_slice %61 {offsets = [0, 1, 0], sizes = [2, 15, 4], strides = [1, 1, 1]} : vector<2x16x4xf32> to vector<2x15x4xf32>
    %c1_82 = arith.constant 1 : index
    %c0_83 = arith.constant 0 : index
    %c8_84 = arith.constant 8 : index
    %66 = vector.load %arg12[%c1_82, %c0_83, %c8_84] : memref<10x16x12xf32, #tpu.memory_space<vmem>>, vector<2x15x4xf32>
    tpu.vector_store %arg12[%c1_82, %c0_83, %c8_84], %65 {strides = array<i32>} : memref<10x16x12xf32, #tpu.memory_space<vmem>>, vector<2x15x4xf32>,
    %c2_85 = arith.constant 2 : index
    %c0_86 = arith.constant 0 : index
    %c0_87 = arith.constant 0 : index
    %67 = vector.load %arg11[%c2_85, %c0_86, %c0_87] : memref<10x16x12xf32, #tpu.memory_space<vmem>>, vector<2x16x12xf32>
    %68 = vector.shape_cast %67 : vector<2x16x12xf32> to vector<32x12xf32>
    %c0_88 = arith.constant 0 : index
    %c0_89 = arith.constant 0 : index
    %c0_90 = arith.constant 0 : index
    %69 = vector.load %arg3[%c0_88, %c0_89, %c0_90] : memref<3x12x4xf32, #tpu.memory_space<vmem>>, vector<1x12x4xf32>
    %70 = vector.shape_cast %69 : vector<1x12x4xf32> to vector<12x4xf32>
    %cst_91 = arith.constant dense<0.000000e+00> : vector<32x4xf32>
    %71 = tpu.matmul %68, %70, %cst_91 {dimension_numbers = #tpu.dot_dimension_numbers<[1], [0], [0], [1], [0, 0, 1, 1], [], []>} : vector<32x12xf32>, vector<12x4xf32>, vector<32x4xf32> -> vector<32x4xf32>
    %c3 = arith.constant 3 : index
    %c0_92 = arith.constant 0 : index
    %c0_93 = arith.constant 0 : index
    %72 = vector.load %arg11[%c3, %c0_92, %c0_93] : memref<10x16x12xf32, #tpu.memory_space<vmem>>, vector<2x16x12xf32>
    %73 = vector.shape_cast %72 : vector<2x16x12xf32> to vector<32x12xf32>
    %c1_94 = arith.constant 1 : index
    %c0_95 = arith.constant 0 : index
    %c0_96 = arith.constant 0 : index
    %74 = vector.load %arg3[%c1_94, %c0_95, %c0_96] : memref<3x12x4xf32, #tpu.memory_space<vmem>>, vector<1x12x4xf32>
    %75 = vector.shape_cast %74 : vector<1x12x4xf32> to vector<12x4xf32>
    %cst_97 = arith.constant dense<0.000000e+00> : vector<32x4xf32>
    %76 = tpu.matmul %73, %75, %cst_97 {dimension_numbers = #tpu.dot_dimension_numbers<[1], [0], [0], [1], [0, 0, 1, 1], [], []>} : vector<32x12xf32>, vector<12x4xf32>, vector<32x4xf32> -> vector<32x4xf32>
    %77 = arith.addf %71, %76 : vector<32x4xf32>
    %c4_98 = arith.constant 4 : index
    %c0_99 = arith.constant 0 : index
    %c0_100 = arith.constant 0 : index
    %78 = vector.load %arg11[%c4_98, %c0_99, %c0_100] : memref<10x16x12xf32, #tpu.memory_space<vmem>>, vector<2x16x12xf32>
    %79 = vector.shape_cast %78 : vector<2x16x12xf32> to vector<32x12xf32>
    %c2_101 = arith.constant 2 : index
    %c0_102 = arith.constant 0 : index
    %c0_103 = arith.constant 0 : index
    %80 = vector.load %arg3[%c2_101, %c0_102, %c0_103] : memref<3x12x4xf32, #tpu.memory_space<vmem>>, vector<1x12x4xf32>
    %81 = vector.shape_cast %80 : vector<1x12x4xf32> to vector<12x4xf32>
    %cst_104 = arith.constant dense<0.000000e+00> : vector<32x4xf32>
    %82 = tpu.matmul %79, %81, %cst_104 {dimension_numbers = #tpu.dot_dimension_numbers<[1], [0], [0], [1], [0, 0, 1, 1], [], []>} : vector<32x12xf32>, vector<12x4xf32>, vector<32x4xf32> -> vector<32x4xf32>
    %83 = arith.addf %77, %82 : vector<32x4xf32>
    %84 = vector.broadcast %0 : vector<1x4xf32> to vector<32x4xf32>
    %85 = arith.addf %83, %84 : vector<32x4xf32>
    %cst_105 = arith.constant 0.000000e+00 : f32
    %86 = vector.broadcast %cst_105 : f32 to vector<32x4xf32>
    %87 = arith.maximumf %85, %86 : vector<32x4xf32>
    %88 = vector.shape_cast %87 : vector<32x4xf32> to vector<2x16x4xf32>
    %cst_106 = arith.constant 0.000000e+00 : f32
    %89 = vector.shape_cast %10 : vector<1x16x1xi1> to vector<1x16x1xi1>
    %90 = vector.broadcast %89 : vector<1x16x1xi1> to vector<2x16x4xi1>
    %91 = vector.broadcast %cst_106 : f32 to vector<2x16x4xf32>
    %92 = arith.select %90, %88, %91 : vector<2x16x4xi1>, vector<2x16x4xf32>
    %c3_107 = arith.constant 3 : index
    %c0_108 = arith.constant 0 : index
    %c4_109 = arith.constant 4 : index
    %93 = vector.load %arg12[%c3_107, %c0_108, %c4_109] : memref<10x16x12xf32, #tpu.memory_space<vmem>>, vector<2x16x4xf32>
    tpu.vector_store %arg12[%c3_107, %c0_108, %c4_109], %92 {strides = array<i32>} : memref<10x16x12xf32, #tpu.memory_space<vmem>>, vector<2x16x4xf32>,
    %94 = vector.extract_strided_slice %92 {offsets = [0, 0, 0], sizes = [2, 15, 4], strides = [1, 1, 1]} : vector<2x16x4xf32> to vector<2x15x4xf32>
    %c3_110 = arith.constant 3 : index
    %c1_111 = arith.constant 1 : index
    %c0_112 = arith.constant 0 : index
    %95 = vector.load %arg12[%c3_110, %c1_111, %c0_112] : memref<10x16x12xf32, #tpu.memory_space<vmem>>, vector<2x15x4xf32>
    tpu.vector_store %arg12[%c3_110, %c1_111, %c0_112], %94 {strides = array<i32>} : memref<10x16x12xf32, #tpu.memory_space<vmem>>, vector<2x15x4xf32>,
    %96 = vector.extract_strided_slice %92 {offsets = [0, 1, 0], sizes = [2, 15, 4], strides = [1, 1, 1]} : vector<2x16x4xf32> to vector<2x15x4xf32>
    %c3_113 = arith.constant 3 : index
    %c0_114 = arith.constant 0 : index
    %c8_115 = arith.constant 8 : index
    %97 = vector.load %arg12[%c3_113, %c0_114, %c8_115] : memref<10x16x12xf32, #tpu.memory_space<vmem>>, vector<2x15x4xf32>
    tpu.vector_store %arg12[%c3_113, %c0_114, %c8_115], %96 {strides = array<i32>} : memref<10x16x12xf32, #tpu.memory_space<vmem>>, vector<2x15x4xf32>,
    %c4_116 = arith.constant 4 : index
    %c0_117 = arith.constant 0 : index
    %c0_118 = arith.constant 0 : index
    %98 = vector.load %arg11[%c4_116, %c0_117, %c0_118] : memref<10x16x12xf32, #tpu.memory_space<vmem>>, vector<2x16x12xf32>
    %99 = vector.shape_cast %98 : vector<2x16x12xf32> to vector<32x12xf32>
    %c0_119 = arith.constant 0 : index
    %c0_120 = arith.constant 0 : index
    %c0_121 = arith.constant 0 : index
    %100 = vector.load %arg3[%c0_119, %c0_120, %c0_121] : memref<3x12x4xf32, #tpu.memory_space<vmem>>, vector<1x12x4xf32>
    %101 = vector.shape_cast %100 : vector<1x12x4xf32> to vector<12x4xf32>
    %cst_122 = arith.constant dense<0.000000e+00> : vector<32x4xf32>
    %102 = tpu.matmul %99, %101, %cst_122 {dimension_numbers = #tpu.dot_dimension_numbers<[1], [0], [0], [1], [0, 0, 1, 1], [], []>} : vector<32x12xf32>, vector<12x4xf32>, vector<32x4xf32> -> vector<32x4xf32>
    %c5 = arith.constant 5 : index
    %c0_123 = arith.constant 0 : index
    %c0_124 = arith.constant 0 : index
    %103 = vector.load %arg11[%c5, %c0_123, %c0_124] : memref<10x16x12xf32, #tpu.memory_space<vmem>>, vector<2x16x12xf32>
    %104 = vector.shape_cast %103 : vector<2x16x12xf32> to vector<32x12xf32>
    %c1_125 = arith.constant 1 : index
    %c0_126 = arith.constant 0 : index
    %c0_127 = arith.constant 0 : index
    %105 = vector.load %arg3[%c1_125, %c0_126, %c0_127] : memref<3x12x4xf32, #tpu.memory_space<vmem>>, vector<1x12x4xf32>
    %106 = vector.shape_cast %105 : vector<1x12x4xf32> to vector<12x4xf32>
    %cst_128 = arith.constant dense<0.000000e+00> : vector<32x4xf32>
    %107 = tpu.matmul %104, %106, %cst_128 {dimension_numbers = #tpu.dot_dimension_numbers<[1], [0], [0], [1], [0, 0, 1, 1], [], []>} : vector<32x12xf32>, vector<12x4xf32>, vector<32x4xf32> -> vector<32x4xf32>
    %108 = arith.addf %102, %107 : vector<32x4xf32>
    %c6 = arith.constant 6 : index
    %c0_129 = arith.constant 0 : index
    %c0_130 = arith.constant 0 : index
    %109 = vector.load %arg11[%c6, %c0_129, %c0_130] : memref<10x16x12xf32, #tpu.memory_space<vmem>>, vector<2x16x12xf32>
    %110 = vector.shape_cast %109 : vector<2x16x12xf32> to vector<32x12xf32>
    %c2_131 = arith.constant 2 : index
    %c0_132 = arith.constant 0 : index
    %c0_133 = arith.constant 0 : index
    %111 = vector.load %arg3[%c2_131, %c0_132, %c0_133] : memref<3x12x4xf32, #tpu.memory_space<vmem>>, vector<1x12x4xf32>
    %112 = vector.shape_cast %111 : vector<1x12x4xf32> to vector<12x4xf32>
    %cst_134 = arith.constant dense<0.000000e+00> : vector<32x4xf32>
    %113 = tpu.matmul %110, %112, %cst_134 {dimension_numbers = #tpu.dot_dimension_numbers<[1], [0], [0], [1], [0, 0, 1, 1], [], []>} : vector<32x12xf32>, vector<12x4xf32>, vector<32x4xf32> -> vector<32x4xf32>
    %114 = arith.addf %108, %113 : vector<32x4xf32>
    %115 = vector.broadcast %0 : vector<1x4xf32> to vector<32x4xf32>
    %116 = arith.addf %114, %115 : vector<32x4xf32>
    %cst_135 = arith.constant 0.000000e+00 : f32
    %117 = vector.broadcast %cst_135 : f32 to vector<32x4xf32>
    %118 = arith.maximumf %116, %117 : vector<32x4xf32>
    %119 = vector.shape_cast %118 : vector<32x4xf32> to vector<2x16x4xf32>
    %cst_136 = arith.constant 0.000000e+00 : f32
    %120 = vector.shape_cast %10 : vector<1x16x1xi1> to vector<1x16x1xi1>
    %121 = vector.broadcast %120 : vector<1x16x1xi1> to vector<2x16x4xi1>
    %122 = vector.broadcast %cst_136 : f32 to vector<2x16x4xf32>
    %123 = arith.select %121, %119, %122 : vector<2x16x4xi1>, vector<2x16x4xf32>
    %c5_137 = arith.constant 5 : index
    %c0_138 = arith.constant 0 : index
    %c4_139 = arith.constant 4 : index
    %124 = vector.load %arg12[%c5_137, %c0_138, %c4_139] : memref<10x16x12xf32, #tpu.memory_space<vmem>>, vector<2x16x4xf32>
    tpu.vector_store %arg12[%c5_137, %c0_138, %c4_139], %123 {strides = array<i32>} : memref<10x16x12xf32, #tpu.memory_space<vmem>>, vector<2x16x4xf32>,
    %125 = vector.extract_strided_slice %123 {offsets = [0, 0, 0], sizes = [2, 15, 4], strides = [1, 1, 1]} : vector<2x16x4xf32> to vector<2x15x4xf32>
    %c5_140 = arith.constant 5 : index
    %c1_141 = arith.constant 1 : index
    %c0_142 = arith.constant 0 : index
    %126 = vector.load %arg12[%c5_140, %c1_141, %c0_142] : memref<10x16x12xf32, #tpu.memory_space<vmem>>, vector<2x15x4xf32>
    tpu.vector_store %arg12[%c5_140, %c1_141, %c0_142], %125 {strides = array<i32>} : memref<10x16x12xf32, #tpu.memory_space<vmem>>, vector<2x15x4xf32>,
    %127 = vector.extract_strided_slice %123 {offsets = [0, 1, 0], sizes = [2, 15, 4], strides = [1, 1, 1]} : vector<2x16x4xf32> to vector<2x15x4xf32>
    %c5_143 = arith.constant 5 : index
    %c0_144 = arith.constant 0 : index
    %c8_145 = arith.constant 8 : index
    %128 = vector.load %arg12[%c5_143, %c0_144, %c8_145] : memref<10x16x12xf32, #tpu.memory_space<vmem>>, vector<2x15x4xf32>
    tpu.vector_store %arg12[%c5_143, %c0_144, %c8_145], %127 {strides = array<i32>} : memref<10x16x12xf32, #tpu.memory_space<vmem>>, vector<2x15x4xf32>,
    %c6_146 = arith.constant 6 : index
    %c0_147 = arith.constant 0 : index
    %c0_148 = arith.constant 0 : index
    %129 = vector.load %arg11[%c6_146, %c0_147, %c0_148] : memref<10x16x12xf32, #tpu.memory_space<vmem>>, vector<2x16x12xf32>
    %130 = vector.shape_cast %129 : vector<2x16x12xf32> to vector<32x12xf32>
    %c0_149 = arith.constant 0 : index
    %c0_150 = arith.constant 0 : index
    %c0_151 = arith.constant 0 : index
    %131 = vector.load %arg3[%c0_149, %c0_150, %c0_151] : memref<3x12x4xf32, #tpu.memory_space<vmem>>, vector<1x12x4xf32>
    %132 = vector.shape_cast %131 : vector<1x12x4xf32> to vector<12x4xf32>
    %cst_152 = arith.constant dense<0.000000e+00> : vector<32x4xf32>
    %133 = tpu.matmul %130, %132, %cst_152 {dimension_numbers = #tpu.dot_dimension_numbers<[1], [0], [0], [1], [0, 0, 1, 1], [], []>} : vector<32x12xf32>, vector<12x4xf32>, vector<32x4xf32> -> vector<32x4xf32>
    %c7 = arith.constant 7 : index
    %c0_153 = arith.constant 0 : index
    %c0_154 = arith.constant 0 : index
    %134 = vector.load %arg11[%c7, %c0_153, %c0_154] : memref<10x16x12xf32, #tpu.memory_space<vmem>>, vector<2x16x12xf32>
    %135 = vector.shape_cast %134 : vector<2x16x12xf32> to vector<32x12xf32>
    %c1_155 = arith.constant 1 : index
    %c0_156 = arith.constant 0 : index
    %c0_157 = arith.constant 0 : index
    %136 = vector.load %arg3[%c1_155, %c0_156, %c0_157] : memref<3x12x4xf32, #tpu.memory_space<vmem>>, vector<1x12x4xf32>
    %137 = vector.shape_cast %136 : vector<1x12x4xf32> to vector<12x4xf32>
    %cst_158 = arith.constant dense<0.000000e+00> : vector<32x4xf32>
    %138 = tpu.matmul %135, %137, %cst_158 {dimension_numbers = #tpu.dot_dimension_numbers<[1], [0], [0], [1], [0, 0, 1, 1], [], []>} : vector<32x12xf32>, vector<12x4xf32>, vector<32x4xf32> -> vector<32x4xf32>
    %139 = arith.addf %133, %138 : vector<32x4xf32>
    %c8_159 = arith.constant 8 : index
    %c0_160 = arith.constant 0 : index
    %c0_161 = arith.constant 0 : index
    %140 = vector.load %arg11[%c8_159, %c0_160, %c0_161] : memref<10x16x12xf32, #tpu.memory_space<vmem>>, vector<2x16x12xf32>
    %141 = vector.shape_cast %140 : vector<2x16x12xf32> to vector<32x12xf32>
    %c2_162 = arith.constant 2 : index
    %c0_163 = arith.constant 0 : index
    %c0_164 = arith.constant 0 : index
    %142 = vector.load %arg3[%c2_162, %c0_163, %c0_164] : memref<3x12x4xf32, #tpu.memory_space<vmem>>, vector<1x12x4xf32>
    %143 = vector.shape_cast %142 : vector<1x12x4xf32> to vector<12x4xf32>
    %cst_165 = arith.constant dense<0.000000e+00> : vector<32x4xf32>
    %144 = tpu.matmul %141, %143, %cst_165 {dimension_numbers = #tpu.dot_dimension_numbers<[1], [0], [0], [1], [0, 0, 1, 1], [], []>} : vector<32x12xf32>, vector<12x4xf32>, vector<32x4xf32> -> vector<32x4xf32>
    %145 = arith.addf %139, %144 : vector<32x4xf32>
    %146 = vector.broadcast %0 : vector<1x4xf32> to vector<32x4xf32>
    %147 = arith.addf %145, %146 : vector<32x4xf32>
    %cst_166 = arith.constant 0.000000e+00 : f32
    %148 = vector.broadcast %cst_166 : f32 to vector<32x4xf32>
    %149 = arith.maximumf %147, %148 : vector<32x4xf32>
    %150 = vector.shape_cast %149 : vector<32x4xf32> to vector<2x16x4xf32>
    %cst_167 = arith.constant 0.000000e+00 : f32
    %151 = vector.shape_cast %10 : vector<1x16x1xi1> to vector<1x16x1xi1>
    %152 = vector.broadcast %151 : vector<1x16x1xi1> to vector<2x16x4xi1>
    %153 = vector.broadcast %cst_167 : f32 to vector<2x16x4xf32>
    %154 = arith.select %152, %150, %153 : vector<2x16x4xi1>, vector<2x16x4xf32>
    %c7_168 = arith.constant 7 : index
    %c0_169 = arith.constant 0 : index
    %c4_170 = arith.constant 4 : index
    %155 = vector.load %arg12[%c7_168, %c0_169, %c4_170] : memref<10x16x12xf32, #tpu.memory_space<vmem>>, vector<2x16x4xf32>
    tpu.vector_store %arg12[%c7_168, %c0_169, %c4_170], %154 {strides = array<i32>} : memref<10x16x12xf32, #tpu.memory_space<vmem>>, vector<2x16x4xf32>,
    %156 = vector.extract_strided_slice %154 {offsets = [0, 0, 0], sizes = [2, 15, 4], strides = [1, 1, 1]} : vector<2x16x4xf32> to vector<2x15x4xf32>
    %c7_171 = arith.constant 7 : index
    %c1_172 = arith.constant 1 : index
    %c0_173 = arith.constant 0 : index
    %157 = vector.load %arg12[%c7_171, %c1_172, %c0_173] : memref<10x16x12xf32, #tpu.memory_space<vmem>>, vector<2x15x4xf32>
    tpu.vector_store %arg12[%c7_171, %c1_172, %c0_173], %156 {strides = array<i32>} : memref<10x16x12xf32, #tpu.memory_space<vmem>>, vector<2x15x4xf32>,
    %158 = vector.extract_strided_slice %154 {offsets = [0, 1, 0], sizes = [2, 15, 4], strides = [1, 1, 1]} : vector<2x16x4xf32> to vector<2x15x4xf32>
    %c7_174 = arith.constant 7 : index
    %c0_175 = arith.constant 0 : index
    %c8_176 = arith.constant 8 : index
    %159 = vector.load %arg12[%c7_174, %c0_175, %c8_176] : memref<10x16x12xf32, #tpu.memory_space<vmem>>, vector<2x15x4xf32>
    tpu.vector_store %arg12[%c7_174, %c0_175, %c8_176], %158 {strides = array<i32>} : memref<10x16x12xf32, #tpu.memory_space<vmem>>, vector<2x15x4xf32>,
    %c0_177 = arith.constant 0 : index
    %c0_178 = arith.constant 0 : index
    %c0_179 = arith.constant 0 : index
    %160 = vector.load %arg12[%c0_177, %c0_178, %c0_179] : memref<10x16x12xf32, #tpu.memory_space<vmem>>, vector<2x16x12xf32>
    %161 = vector.shape_cast %160 : vector<2x16x12xf32> to vector<32x12xf32>
    %c0_180 = arith.constant 0 : index
    %c0_181 = arith.constant 0 : index
    %c0_182 = arith.constant 0 : index
    %162 = vector.load %arg5[%c0_180, %c0_181, %c0_182] : memref<3x12x8xf32, #tpu.memory_space<vmem>>, vector<1x12x8xf32>
    %163 = vector.shape_cast %162 : vector<1x12x8xf32> to vector<12x8xf32>
    %cst_183 = arith.constant dense<0.000000e+00> : vector<32x8xf32>
    %164 = tpu.matmul %161, %163, %cst_183 {dimension_numbers = #tpu.dot_dimension_numbers<[1], [0], [0], [1], [0, 0, 1, 1], [], []>} : vector<32x12xf32>, vector<12x8xf32>, vector<32x8xf32> -> vector<32x8xf32>
    %c1_184 = arith.constant 1 : index
    %c0_185 = arith.constant 0 : index
    %c0_186 = arith.constant 0 : index
    %165 = vector.load %arg12[%c1_184, %c0_185, %c0_186] : memref<10x16x12xf32, #tpu.memory_space<vmem>>, vector<2x16x12xf32>
    %166 = vector.shape_cast %165 : vector<2x16x12xf32> to vector<32x12xf32>
    %c1_187 = arith.constant 1 : index
    %c0_188 = arith.constant 0 : index
    %c0_189 = arith.constant 0 : index
    %167 = vector.load %arg5[%c1_187, %c0_188, %c0_189] : memref<3x12x8xf32, #tpu.memory_space<vmem>>, vector<1x12x8xf32>
    %168 = vector.shape_cast %167 : vector<1x12x8xf32> to vector<12x8xf32>
    %cst_190 = arith.constant dense<0.000000e+00> : vector<32x8xf32>
    %169 = tpu.matmul %166, %168, %cst_190 {dimension_numbers = #tpu.dot_dimension_numbers<[1], [0], [0], [1], [0, 0, 1, 1], [], []>} : vector<32x12xf32>, vector<12x8xf32>, vector<32x8xf32> -> vector<32x8xf32>
    %170 = arith.addf %164, %169 : vector<32x8xf32>
    %c2_191 = arith.constant 2 : index
    %c0_192 = arith.constant 0 : index
    %c0_193 = arith.constant 0 : index
    %171 = vector.load %arg12[%c2_191, %c0_192, %c0_193] : memref<10x16x12xf32, #tpu.memory_space<vmem>>, vector<2x16x12xf32>
    %172 = vector.shape_cast %171 : vector<2x16x12xf32> to vector<32x12xf32>
    %c2_194 = arith.constant 2 : index
    %c0_195 = arith.constant 0 : index
    %c0_196 = arith.constant 0 : index
    %173 = vector.load %arg5[%c2_194, %c0_195, %c0_196] : memref<3x12x8xf32, #tpu.memory_space<vmem>>, vector<1x12x8xf32>
    %174 = vector.shape_cast %173 : vector<1x12x8xf32> to vector<12x8xf32>
    %cst_197 = arith.constant dense<0.000000e+00> : vector<32x8xf32>
    %175 = tpu.matmul %172, %174, %cst_197 {dimension_numbers = #tpu.dot_dimension_numbers<[1], [0], [0], [1], [0, 0, 1, 1], [], []>} : vector<32x12xf32>, vector<12x8xf32>, vector<32x8xf32> -> vector<32x8xf32>
    %176 = arith.addf %170, %175 : vector<32x8xf32>
    %177 = vector.broadcast %1 : vector<1x8xf32> to vector<32x8xf32>
    %178 = arith.addf %176, %177 : vector<32x8xf32>
    %cst_198 = arith.constant 1.000000e-01 : f32
    %179 = vector.broadcast %cst_198 : f32 to vector<32x8xf32>
    %180 = arith.mulf %178, %179 : vector<32x8xf32>
    %181 = vector.extract_strided_slice %180 {offsets = [0, 0], sizes = [32, 4], strides = [1, 1]} : vector<32x8xf32> to vector<32x4xf32>
    %182 = math.tanh %181 : vector<32x4xf32>
    %cst_199 = arith.constant 2.000000e+00 : f32
    %183 = vector.broadcast %cst_199 : f32 to vector<32x4xf32>
    %184 = arith.mulf %183, %182 : vector<32x4xf32>
    %185 = vector.extract_strided_slice %180 {offsets = [0, 4], sizes = [32, 4], strides = [1, 1]} : vector<32x8xf32> to vector<32x4xf32>
    %c0_200 = arith.constant 0 : index
    %c0_201 = arith.constant 0 : index
    %c0_202 = arith.constant 0 : index
    %c0_203 = arith.constant 0 : index
    %186 = vector.load %arg2[%c0_200, %c0_201, %c0_202, %c0_203] : memref<1x8x16x4xf32, #tpu.memory_space<vmem>>, vector<1x2x16x4xf32>
    %187 = vector.shape_cast %186 : vector<1x2x16x4xf32> to vector<2x16x4xf32>
    %188 = vector.shape_cast %187 : vector<2x16x4xf32> to vector<32x4xf32>
    %189 = math.exp %184 : vector<32x4xf32>
    %190 = arith.mulf %188, %189 : vector<32x4xf32>
    %191 = arith.addf %190, %185 : vector<32x4xf32>
    %192 = vector.shape_cast %184 : vector<32x4xf32> to vector<2x16x4xf32>
    %cst_204 = arith.constant 0.000000e+00 : f32
    %193 = vector.shape_cast %10 : vector<1x16x1xi1> to vector<1x16x1xi1>
    %194 = vector.broadcast %193 : vector<1x16x1xi1> to vector<2x16x4xi1>
    %195 = vector.broadcast %cst_204 : f32 to vector<2x16x4xf32>
    %196 = arith.select %194, %192, %195 : vector<2x16x4xi1>, vector<2x16x4xf32>
    %197 = vector.shape_cast %196 : vector<2x16x4xf32> to vector<1x2x16x4xf32>
    %cst_205 = arith.constant dense<0.000000e+00> : vector<1xf32>
    %198 = vector.multi_reduction <add>, %197, %cst_205 [1, 2, 3] : vector<1x2x16x4xf32> to vector<1xf32>
    %199 = vector.shape_cast %198 : vector<1xf32> to vector<1x1x1x1xf32>
    %200 = vector.extract %199[0, 0, 0, 0] : f32 from vector<1x1x1x1xf32>
    %cst_206 = arith.constant 0.000000e+00 : f32
    %201 = arith.addf %cst_206, %200 : f32
    %c0_207 = arith.constant 0 : index
    %c0_208 = arith.constant 0 : index
    %c0_209 = arith.constant 0 : index
    %c0_210 = arith.constant 0 : index
    %202 = vector.load %arg1[%c0_207, %c0_208, %c0_209, %c0_210] : memref<1x8x16x4xf32, #tpu.memory_space<vmem>>, vector<1x2x16x4xf32>
    %203 = vector.shape_cast %202 : vector<1x2x16x4xf32> to vector<2x16x4xf32>
    %204 = vector.shape_cast %203 : vector<2x16x4xf32> to vector<32x4xf32>
    %205 = vector.broadcast %4 : vector<1x4xf32> to vector<32x4xf32>
    %206 = arith.mulf %204, %205 : vector<32x4xf32>
    %207 = vector.broadcast %6 : vector<1x4xf32> to vector<32x4xf32>
    %208 = arith.addf %206, %207 : vector<32x4xf32>
    %209 = vector.shape_cast %208 : vector<32x4xf32> to vector<2x16x4xf32>
    %c0_211 = arith.constant 0 : index
    %c0_212 = arith.constant 0 : index
    %c0_213 = arith.constant 0 : index
    %c0_214 = arith.constant 0 : index
    %210 = vector.load %arg9[%c0_211, %c0_212, %c0_213, %c0_214] : memref<1x8x16x8xf32, #tpu.memory_space<vmem>>, vector<1x2x16x4xf32>
    %211 = vector.shape_cast %210 : vector<1x2x16x4xf32> to vector<2x16x4xf32>
    %212 = vector.shape_cast %209 : vector<2x16x4xf32> to vector<1x2x16x4xf32>
    tpu.vector_store %arg9[%c0_211, %c0_212, %c0_213, %c0_214], %212 {strides = array<i32>} : memref<1x8x16x8xf32, #tpu.memory_space<vmem>>, vector<1x2x16x4xf32>,
    %213 = vector.broadcast %5 : vector<1x4xf32> to vector<32x4xf32>
    %214 = arith.mulf %191, %213 : vector<32x4xf32>
    %215 = vector.broadcast %7 : vector<1x4xf32> to vector<32x4xf32>
    %216 = arith.addf %214, %215 : vector<32x4xf32>
    %217 = vector.shape_cast %216 : vector<32x4xf32> to vector<2x16x4xf32>
    %c0_215 = arith.constant 0 : index
    %c0_216 = arith.constant 0 : index
    %c0_217 = arith.constant 0 : index
    %c4_218 = arith.constant 4 : index
    %218 = vector.load %arg9[%c0_215, %c0_216, %c0_217, %c4_218] : memref<1x8x16x8xf32, #tpu.memory_space<vmem>>, vector<1x2x16x4xf32>
    %219 = vector.shape_cast %218 : vector<1x2x16x4xf32> to vector<2x16x4xf32>
    %220 = vector.shape_cast %217 : vector<2x16x4xf32> to vector<1x2x16x4xf32>
    tpu.vector_store %arg9[%c0_215, %c0_216, %c0_217, %c4_218], %220 {strides = array<i32>} : memref<1x8x16x8xf32, #tpu.memory_space<vmem>>, vector<1x2x16x4xf32>,
    %cst_219 = arith.constant 0.000000e+00 : f32
    %221 = vector.broadcast %cst_219 : f32 to vector<2x3x8xf32>
    %c0_220 = arith.constant 0 : index
    %c0_221 = arith.constant 0 : index
    %c13 = arith.constant 13 : index
    %c0_222 = arith.constant 0 : index
    %222 = vector.load %arg9[%c0_220, %c0_221, %c13, %c0_222] : memref<1x8x16x8xf32, #tpu.memory_space<vmem>>, vector<1x2x3x8xf32>
    %223 = vector.shape_cast %222 : vector<1x2x3x8xf32> to vector<2x3x8xf32>
    %224 = vector.shape_cast %221 : vector<2x3x8xf32> to vector<1x2x3x8xf32>
    tpu.vector_store %arg9[%c0_220, %c0_221, %c13, %c0_222], %224 {strides = array<i32>} : memref<1x8x16x8xf32, #tpu.memory_space<vmem>>, vector<1x2x3x8xf32>,
    %c2_223 = arith.constant 2 : index
    %c0_224 = arith.constant 0 : index
    %c0_225 = arith.constant 0 : index
    %225 = vector.load %arg12[%c2_223, %c0_224, %c0_225] : memref<10x16x12xf32, #tpu.memory_space<vmem>>, vector<2x16x12xf32>
    %226 = vector.shape_cast %225 : vector<2x16x12xf32> to vector<32x12xf32>
    %c0_226 = arith.constant 0 : index
    %c0_227 = arith.constant 0 : index
    %c0_228 = arith.constant 0 : index
    %227 = vector.load %arg5[%c0_226, %c0_227, %c0_228] : memref<3x12x8xf32, #tpu.memory_space<vmem>>, vector<1x12x8xf32>
    %228 = vector.shape_cast %227 : vector<1x12x8xf32> to vector<12x8xf32>
    %cst_229 = arith.constant dense<0.000000e+00> : vector<32x8xf32>
    %229 = tpu.matmul %226, %228, %cst_229 {dimension_numbers = #tpu.dot_dimension_numbers<[1], [0], [0], [1], [0, 0, 1, 1], [], []>} : vector<32x12xf32>, vector<12x8xf32>, vector<32x8xf32> -> vector<32x8xf32>
    %c3_230 = arith.constant 3 : index
    %c0_231 = arith.constant 0 : index
    %c0_232 = arith.constant 0 : index
    %230 = vector.load %arg12[%c3_230, %c0_231, %c0_232] : memref<10x16x12xf32, #tpu.memory_space<vmem>>, vector<2x16x12xf32>
    %231 = vector.shape_cast %230 : vector<2x16x12xf32> to vector<32x12xf32>
    %c1_233 = arith.constant 1 : index
    %c0_234 = arith.constant 0 : index
    %c0_235 = arith.constant 0 : index
    %232 = vector.load %arg5[%c1_233, %c0_234, %c0_235] : memref<3x12x8xf32, #tpu.memory_space<vmem>>, vector<1x12x8xf32>
    %233 = vector.shape_cast %232 : vector<1x12x8xf32> to vector<12x8xf32>
    %cst_236 = arith.constant dense<0.000000e+00> : vector<32x8xf32>
    %234 = tpu.matmul %231, %233, %cst_236 {dimension_numbers = #tpu.dot_dimension_numbers<[1], [0], [0], [1], [0, 0, 1, 1], [], []>} : vector<32x12xf32>, vector<12x8xf32>, vector<32x8xf32> -> vector<32x8xf32>
    %235 = arith.addf %229, %234 : vector<32x8xf32>
    %c4_237 = arith.constant 4 : index
    %c0_238 = arith.constant 0 : index
    %c0_239 = arith.constant 0 : index
    %236 = vector.load %arg12[%c4_237, %c0_238, %c0_239] : memref<10x16x12xf32, #tpu.memory_space<vmem>>, vector<2x16x12xf32>
    %237 = vector.shape_cast %236 : vector<2x16x12xf32> to vector<32x12xf32>
    %c2_240 = arith.constant 2 : index
    %c0_241 = arith.constant 0 : index
    %c0_242 = arith.constant 0 : index
    %238 = vector.load %arg5[%c2_240, %c0_241, %c0_242] : memref<3x12x8xf32, #tpu.memory_space<vmem>>, vector<1x12x8xf32>
    %239 = vector.shape_cast %238 : vector<1x12x8xf32> to vector<12x8xf32>
    %cst_243 = arith.constant dense<0.000000e+00> : vector<32x8xf32>
    %240 = tpu.matmul %237, %239, %cst_243 {dimension_numbers = #tpu.dot_dimension_numbers<[1], [0], [0], [1], [0, 0, 1, 1], [], []>} : vector<32x12xf32>, vector<12x8xf32>, vector<32x8xf32> -> vector<32x8xf32>
    %241 = arith.addf %235, %240 : vector<32x8xf32>
    %242 = vector.broadcast %1 : vector<1x8xf32> to vector<32x8xf32>
    %243 = arith.addf %241, %242 : vector<32x8xf32>
    %cst_244 = arith.constant 1.000000e-01 : f32
    %244 = vector.broadcast %cst_244 : f32 to vector<32x8xf32>
    %245 = arith.mulf %243, %244 : vector<32x8xf32>
    %246 = vector.extract_strided_slice %245 {offsets = [0, 0], sizes = [32, 4], strides = [1, 1]} : vector<32x8xf32> to vector<32x4xf32>
    %247 = math.tanh %246 : vector<32x4xf32>
    %cst_245 = arith.constant 2.000000e+00 : f32
    %248 = vector.broadcast %cst_245 : f32 to vector<32x4xf32>
    %249 = arith.mulf %248, %247 : vector<32x4xf32>
    %250 = vector.extract_strided_slice %245 {offsets = [0, 4], sizes = [32, 4], strides = [1, 1]} : vector<32x8xf32> to vector<32x4xf32>
    %c0_246 = arith.constant 0 : index
    %c2_247 = arith.constant 2 : index
    %c0_248 = arith.constant 0 : index
    %c0_249 = arith.constant 0 : index
    %251 = vector.load %arg2[%c0_246, %c2_247, %c0_248, %c0_249] : memref<1x8x16x4xf32, #tpu.memory_space<vmem>>, vector<1x2x16x4xf32>
    %252 = vector.shape_cast %251 : vector<1x2x16x4xf32> to vector<2x16x4xf32>
    %253 = vector.shape_cast %252 : vector<2x16x4xf32> to vector<32x4xf32>
    %254 = math.exp %249 : vector<32x4xf32>
    %255 = arith.mulf %253, %254 : vector<32x4xf32>
    %256 = arith.addf %255, %250 : vector<32x4xf32>
    %257 = vector.shape_cast %249 : vector<32x4xf32> to vector<2x16x4xf32>
    %cst_250 = arith.constant 0.000000e+00 : f32
    %258 = vector.shape_cast %10 : vector<1x16x1xi1> to vector<1x16x1xi1>
    %259 = vector.broadcast %258 : vector<1x16x1xi1> to vector<2x16x4xi1>
    %260 = vector.broadcast %cst_250 : f32 to vector<2x16x4xf32>
    %261 = arith.select %259, %257, %260 : vector<2x16x4xi1>, vector<2x16x4xf32>
    %262 = vector.shape_cast %261 : vector<2x16x4xf32> to vector<1x2x16x4xf32>
    %cst_251 = arith.constant dense<0.000000e+00> : vector<1xf32>
    %263 = vector.multi_reduction <add>, %262, %cst_251 [1, 2, 3] : vector<1x2x16x4xf32> to vector<1xf32>
    %264 = vector.shape_cast %263 : vector<1xf32> to vector<1x1x1x1xf32>
    %265 = vector.extract %264[0, 0, 0, 0] : f32 from vector<1x1x1x1xf32>
    %266 = arith.addf %201, %265 : f32
    %c0_252 = arith.constant 0 : index
    %c2_253 = arith.constant 2 : index
    %c0_254 = arith.constant 0 : index
    %c0_255 = arith.constant 0 : index
    %267 = vector.load %arg1[%c0_252, %c2_253, %c0_254, %c0_255] : memref<1x8x16x4xf32, #tpu.memory_space<vmem>>, vector<1x2x16x4xf32>
    %268 = vector.shape_cast %267 : vector<1x2x16x4xf32> to vector<2x16x4xf32>
    %269 = vector.shape_cast %268 : vector<2x16x4xf32> to vector<32x4xf32>
    %270 = vector.broadcast %4 : vector<1x4xf32> to vector<32x4xf32>
    %271 = arith.mulf %269, %270 : vector<32x4xf32>
    %272 = vector.broadcast %6 : vector<1x4xf32> to vector<32x4xf32>
    %273 = arith.addf %271, %272 : vector<32x4xf32>
    %274 = vector.shape_cast %273 : vector<32x4xf32> to vector<2x16x4xf32>
    %c0_256 = arith.constant 0 : index
    %c2_257 = arith.constant 2 : index
    %c0_258 = arith.constant 0 : index
    %c0_259 = arith.constant 0 : index
    %275 = vector.load %arg9[%c0_256, %c2_257, %c0_258, %c0_259] : memref<1x8x16x8xf32, #tpu.memory_space<vmem>>, vector<1x2x16x4xf32>
    %276 = vector.shape_cast %275 : vector<1x2x16x4xf32> to vector<2x16x4xf32>
    %277 = vector.shape_cast %274 : vector<2x16x4xf32> to vector<1x2x16x4xf32>
    tpu.vector_store %arg9[%c0_256, %c2_257, %c0_258, %c0_259], %277 {strides = array<i32>} : memref<1x8x16x8xf32, #tpu.memory_space<vmem>>, vector<1x2x16x4xf32>,
    %278 = vector.broadcast %5 : vector<1x4xf32> to vector<32x4xf32>
    %279 = arith.mulf %256, %278 : vector<32x4xf32>
    %280 = vector.broadcast %7 : vector<1x4xf32> to vector<32x4xf32>
    %281 = arith.addf %279, %280 : vector<32x4xf32>
    %282 = vector.shape_cast %281 : vector<32x4xf32> to vector<2x16x4xf32>
    %c0_260 = arith.constant 0 : index
    %c2_261 = arith.constant 2 : index
    %c0_262 = arith.constant 0 : index
    %c4_263 = arith.constant 4 : index
    %283 = vector.load %arg9[%c0_260, %c2_261, %c0_262, %c4_263] : memref<1x8x16x8xf32, #tpu.memory_space<vmem>>, vector<1x2x16x4xf32>
    %284 = vector.shape_cast %283 : vector<1x2x16x4xf32> to vector<2x16x4xf32>
    %285 = vector.shape_cast %282 : vector<2x16x4xf32> to vector<1x2x16x4xf32>
    tpu.vector_store %arg9[%c0_260, %c2_261, %c0_262, %c4_263], %285 {strides = array<i32>} : memref<1x8x16x8xf32, #tpu.memory_space<vmem>>, vector<1x2x16x4xf32>,
    %cst_264 = arith.constant 0.000000e+00 : f32
    %286 = vector.broadcast %cst_264 : f32 to vector<2x3x8xf32>
    %c0_265 = arith.constant 0 : index
    %c2_266 = arith.constant 2 : index
    %c13_267 = arith.constant 13 : index
    %c0_268 = arith.constant 0 : index
    %287 = vector.load %arg9[%c0_265, %c2_266, %c13_267, %c0_268] : memref<1x8x16x8xf32, #tpu.memory_space<vmem>>, vector<1x2x3x8xf32>
    %288 = vector.shape_cast %287 : vector<1x2x3x8xf32> to vector<2x3x8xf32>
    %289 = vector.shape_cast %286 : vector<2x3x8xf32> to vector<1x2x3x8xf32>
    tpu.vector_store %arg9[%c0_265, %c2_266, %c13_267, %c0_268], %289 {strides = array<i32>} : memref<1x8x16x8xf32, #tpu.memory_space<vmem>>, vector<1x2x3x8xf32>,
    %c4_269 = arith.constant 4 : index
    %c0_270 = arith.constant 0 : index
    %c0_271 = arith.constant 0 : index
    %290 = vector.load %arg12[%c4_269, %c0_270, %c0_271] : memref<10x16x12xf32, #tpu.memory_space<vmem>>, vector<2x16x12xf32>
    %291 = vector.shape_cast %290 : vector<2x16x12xf32> to vector<32x12xf32>
    %c0_272 = arith.constant 0 : index
    %c0_273 = arith.constant 0 : index
    %c0_274 = arith.constant 0 : index
    %292 = vector.load %arg5[%c0_272, %c0_273, %c0_274] : memref<3x12x8xf32, #tpu.memory_space<vmem>>, vector<1x12x8xf32>
    %293 = vector.shape_cast %292 : vector<1x12x8xf32> to vector<12x8xf32>
    %cst_275 = arith.constant dense<0.000000e+00> : vector<32x8xf32>
    %294 = tpu.matmul %291, %293, %cst_275 {dimension_numbers = #tpu.dot_dimension_numbers<[1], [0], [0], [1], [0, 0, 1, 1], [], []>} : vector<32x12xf32>, vector<12x8xf32>, vector<32x8xf32> -> vector<32x8xf32>
    %c5_276 = arith.constant 5 : index
    %c0_277 = arith.constant 0 : index
    %c0_278 = arith.constant 0 : index
    %295 = vector.load %arg12[%c5_276, %c0_277, %c0_278] : memref<10x16x12xf32, #tpu.memory_space<vmem>>, vector<2x16x12xf32>
    %296 = vector.shape_cast %295 : vector<2x16x12xf32> to vector<32x12xf32>
    %c1_279 = arith.constant 1 : index
    %c0_280 = arith.constant 0 : index
    %c0_281 = arith.constant 0 : index
    %297 = vector.load %arg5[%c1_279, %c0_280, %c0_281] : memref<3x12x8xf32, #tpu.memory_space<vmem>>, vector<1x12x8xf32>
    %298 = vector.shape_cast %297 : vector<1x12x8xf32> to vector<12x8xf32>
    %cst_282 = arith.constant dense<0.000000e+00> : vector<32x8xf32>
    %299 = tpu.matmul %296, %298, %cst_282 {dimension_numbers = #tpu.dot_dimension_numbers<[1], [0], [0], [1], [0, 0, 1, 1], [], []>} : vector<32x12xf32>, vector<12x8xf32>, vector<32x8xf32> -> vector<32x8xf32>
    %300 = arith.addf %294, %299 : vector<32x8xf32>
    %c6_283 = arith.constant 6 : index
    %c0_284 = arith.constant 0 : index
    %c0_285 = arith.constant 0 : index
    %301 = vector.load %arg12[%c6_283, %c0_284, %c0_285] : memref<10x16x12xf32, #tpu.memory_space<vmem>>, vector<2x16x12xf32>
    %302 = vector.shape_cast %301 : vector<2x16x12xf32> to vector<32x12xf32>
    %c2_286 = arith.constant 2 : index
    %c0_287 = arith.constant 0 : index
    %c0_288 = arith.constant 0 : index
    %303 = vector.load %arg5[%c2_286, %c0_287, %c0_288] : memref<3x12x8xf32, #tpu.memory_space<vmem>>, vector<1x12x8xf32>
    %304 = vector.shape_cast %303 : vector<1x12x8xf32> to vector<12x8xf32>
    %cst_289 = arith.constant dense<0.000000e+00> : vector<32x8xf32>
    %305 = tpu.matmul %302, %304, %cst_289 {dimension_numbers = #tpu.dot_dimension_numbers<[1], [0], [0], [1], [0, 0, 1, 1], [], []>} : vector<32x12xf32>, vector<12x8xf32>, vector<32x8xf32> -> vector<32x8xf32>
    %306 = arith.addf %300, %305 : vector<32x8xf32>
    %307 = vector.broadcast %1 : vector<1x8xf32> to vector<32x8xf32>
    %308 = arith.addf %306, %307 : vector<32x8xf32>
    %cst_290 = arith.constant 1.000000e-01 : f32
    %309 = vector.broadcast %cst_290 : f32 to vector<32x8xf32>
    %310 = arith.mulf %308, %309 : vector<32x8xf32>
    %311 = vector.extract_strided_slice %310 {offsets = [0, 0], sizes = [32, 4], strides = [1, 1]} : vector<32x8xf32> to vector<32x4xf32>
    %312 = math.tanh %311 : vector<32x4xf32>
    %cst_291 = arith.constant 2.000000e+00 : f32
    %313 = vector.broadcast %cst_291 : f32 to vector<32x4xf32>
    %314 = arith.mulf %313, %312 : vector<32x4xf32>
    %315 = vector.extract_strided_slice %310 {offsets = [0, 4], sizes = [32, 4], strides = [1, 1]} : vector<32x8xf32> to vector<32x4xf32>
    %c0_292 = arith.constant 0 : index
    %c4_293 = arith.constant 4 : index
    %c0_294 = arith.constant 0 : index
    %c0_295 = arith.constant 0 : index
    %316 = vector.load %arg2[%c0_292, %c4_293, %c0_294, %c0_295] : memref<1x8x16x4xf32, #tpu.memory_space<vmem>>, vector<1x2x16x4xf32>
    %317 = vector.shape_cast %316 : vector<1x2x16x4xf32> to vector<2x16x4xf32>
    %318 = vector.shape_cast %317 : vector<2x16x4xf32> to vector<32x4xf32>
    %319 = math.exp %314 : vector<32x4xf32>
    %320 = arith.mulf %318, %319 : vector<32x4xf32>
    %321 = arith.addf %320, %315 : vector<32x4xf32>
    %322 = vector.shape_cast %314 : vector<32x4xf32> to vector<2x16x4xf32>
    %cst_296 = arith.constant 0.000000e+00 : f32
    %323 = vector.shape_cast %10 : vector<1x16x1xi1> to vector<1x16x1xi1>
    %324 = vector.broadcast %323 : vector<1x16x1xi1> to vector<2x16x4xi1>
    %325 = vector.broadcast %cst_296 : f32 to vector<2x16x4xf32>
    %326 = arith.select %324, %322, %325 : vector<2x16x4xi1>, vector<2x16x4xf32>
    %327 = vector.shape_cast %326 : vector<2x16x4xf32> to vector<1x2x16x4xf32>
    %cst_297 = arith.constant dense<0.000000e+00> : vector<1xf32>
    %328 = vector.multi_reduction <add>, %327, %cst_297 [1, 2, 3] : vector<1x2x16x4xf32> to vector<1xf32>
    %329 = vector.shape_cast %328 : vector<1xf32> to vector<1x1x1x1xf32>
    %330 = vector.extract %329[0, 0, 0, 0] : f32 from vector<1x1x1x1xf32>
    %331 = arith.addf %266, %330 : f32
    %c0_298 = arith.constant 0 : index
    %c4_299 = arith.constant 4 : index
    %c0_300 = arith.constant 0 : index
    %c0_301 = arith.constant 0 : index
    %332 = vector.load %arg1[%c0_298, %c4_299, %c0_300, %c0_301] : memref<1x8x16x4xf32, #tpu.memory_space<vmem>>, vector<1x2x16x4xf32>
    %333 = vector.shape_cast %332 : vector<1x2x16x4xf32> to vector<2x16x4xf32>
    %334 = vector.shape_cast %333 : vector<2x16x4xf32> to vector<32x4xf32>
    %335 = vector.broadcast %4 : vector<1x4xf32> to vector<32x4xf32>
    %336 = arith.mulf %334, %335 : vector<32x4xf32>
    %337 = vector.broadcast %6 : vector<1x4xf32> to vector<32x4xf32>
    %338 = arith.addf %336, %337 : vector<32x4xf32>
    %339 = vector.shape_cast %338 : vector<32x4xf32> to vector<2x16x4xf32>
    %c0_302 = arith.constant 0 : index
    %c4_303 = arith.constant 4 : index
    %c0_304 = arith.constant 0 : index
    %c0_305 = arith.constant 0 : index
    %340 = vector.load %arg9[%c0_302, %c4_303, %c0_304, %c0_305] : memref<1x8x16x8xf32, #tpu.memory_space<vmem>>, vector<1x2x16x4xf32>
    %341 = vector.shape_cast %340 : vector<1x2x16x4xf32> to vector<2x16x4xf32>
    %342 = vector.shape_cast %339 : vector<2x16x4xf32> to vector<1x2x16x4xf32>
    tpu.vector_store %arg9[%c0_302, %c4_303, %c0_304, %c0_305], %342 {strides = array<i32>} : memref<1x8x16x8xf32, #tpu.memory_space<vmem>>, vector<1x2x16x4xf32>,
    %343 = vector.broadcast %5 : vector<1x4xf32> to vector<32x4xf32>
    %344 = arith.mulf %321, %343 : vector<32x4xf32>
    %345 = vector.broadcast %7 : vector<1x4xf32> to vector<32x4xf32>
    %346 = arith.addf %344, %345 : vector<32x4xf32>
    %347 = vector.shape_cast %346 : vector<32x4xf32> to vector<2x16x4xf32>
    %c0_306 = arith.constant 0 : index
    %c4_307 = arith.constant 4 : index
    %c0_308 = arith.constant 0 : index
    %c4_309 = arith.constant 4 : index
    %348 = vector.load %arg9[%c0_306, %c4_307, %c0_308, %c4_309] : memref<1x8x16x8xf32, #tpu.memory_space<vmem>>, vector<1x2x16x4xf32>
    %349 = vector.shape_cast %348 : vector<1x2x16x4xf32> to vector<2x16x4xf32>
    %350 = vector.shape_cast %347 : vector<2x16x4xf32> to vector<1x2x16x4xf32>
    tpu.vector_store %arg9[%c0_306, %c4_307, %c0_308, %c4_309], %350 {strides = array<i32>} : memref<1x8x16x8xf32, #tpu.memory_space<vmem>>, vector<1x2x16x4xf32>,
    %cst_310 = arith.constant 0.000000e+00 : f32
    %351 = vector.broadcast %cst_310 : f32 to vector<2x3x8xf32>
    %c0_311 = arith.constant 0 : index
    %c4_312 = arith.constant 4 : index
    %c13_313 = arith.constant 13 : index
    %c0_314 = arith.constant 0 : index
    %352 = vector.load %arg9[%c0_311, %c4_312, %c13_313, %c0_314] : memref<1x8x16x8xf32, #tpu.memory_space<vmem>>, vector<1x2x3x8xf32>
    %353 = vector.shape_cast %352 : vector<1x2x3x8xf32> to vector<2x3x8xf32>
    %354 = vector.shape_cast %351 : vector<2x3x8xf32> to vector<1x2x3x8xf32>
    tpu.vector_store %arg9[%c0_311, %c4_312, %c13_313, %c0_314], %354 {strides = array<i32>} : memref<1x8x16x8xf32, #tpu.memory_space<vmem>>, vector<1x2x3x8xf32>,
    %c6_315 = arith.constant 6 : index
    %c0_316 = arith.constant 0 : index
    %c0_317 = arith.constant 0 : index
    %355 = vector.load %arg12[%c6_315, %c0_316, %c0_317] : memref<10x16x12xf32, #tpu.memory_space<vmem>>, vector<2x16x12xf32>
    %356 = vector.shape_cast %355 : vector<2x16x12xf32> to vector<32x12xf32>
    %c0_318 = arith.constant 0 : index
    %c0_319 = arith.constant 0 : index
    %c0_320 = arith.constant 0 : index
    %357 = vector.load %arg5[%c0_318, %c0_319, %c0_320] : memref<3x12x8xf32, #tpu.memory_space<vmem>>, vector<1x12x8xf32>
    %358 = vector.shape_cast %357 : vector<1x12x8xf32> to vector<12x8xf32>
    %cst_321 = arith.constant dense<0.000000e+00> : vector<32x8xf32>
    %359 = tpu.matmul %356, %358, %cst_321 {dimension_numbers = #tpu.dot_dimension_numbers<[1], [0], [0], [1], [0, 0, 1, 1], [], []>} : vector<32x12xf32>, vector<12x8xf32>, vector<32x8xf32> -> vector<32x8xf32>
    %c7_322 = arith.constant 7 : index
    %c0_323 = arith.constant 0 : index
    %c0_324 = arith.constant 0 : index
    %360 = vector.load %arg12[%c7_322, %c0_323, %c0_324] : memref<10x16x12xf32, #tpu.memory_space<vmem>>, vector<2x16x12xf32>
    %361 = vector.shape_cast %360 : vector<2x16x12xf32> to vector<32x12xf32>
    %c1_325 = arith.constant 1 : index
    %c0_326 = arith.constant 0 : index
    %c0_327 = arith.constant 0 : index
    %362 = vector.load %arg5[%c1_325, %c0_326, %c0_327] : memref<3x12x8xf32, #tpu.memory_space<vmem>>, vector<1x12x8xf32>
    %363 = vector.shape_cast %362 : vector<1x12x8xf32> to vector<12x8xf32>
    %cst_328 = arith.constant dense<0.000000e+00> : vector<32x8xf32>
    %364 = tpu.matmul %361, %363, %cst_328 {dimension_numbers = #tpu.dot_dimension_numbers<[1], [0], [0], [1], [0, 0, 1, 1], [], []>} : vector<32x12xf32>, vector<12x8xf32>, vector<32x8xf32> -> vector<32x8xf32>
    %365 = arith.addf %359, %364 : vector<32x8xf32>
    %c8_329 = arith.constant 8 : index
    %c0_330 = arith.constant 0 : index
    %c0_331 = arith.constant 0 : index
    %366 = vector.load %arg12[%c8_329, %c0_330, %c0_331] : memref<10x16x12xf32, #tpu.memory_space<vmem>>, vector<2x16x12xf32>
    %367 = vector.shape_cast %366 : vector<2x16x12xf32> to vector<32x12xf32>
    %c2_332 = arith.constant 2 : index
    %c0_333 = arith.constant 0 : index
    %c0_334 = arith.constant 0 : index
    %368 = vector.load %arg5[%c2_332, %c0_333, %c0_334] : memref<3x12x8xf32, #tpu.memory_space<vmem>>, vector<1x12x8xf32>
    %369 = vector.shape_cast %368 : vector<1x12x8xf32> to vector<12x8xf32>
    %cst_335 = arith.constant dense<0.000000e+00> : vector<32x8xf32>
    %370 = tpu.matmul %367, %369, %cst_335 {dimension_numbers = #tpu.dot_dimension_numbers<[1], [0], [0], [1], [0, 0, 1, 1], [], []>} : vector<32x12xf32>, vector<12x8xf32>, vector<32x8xf32> -> vector<32x8xf32>
    %371 = arith.addf %365, %370 : vector<32x8xf32>
    %372 = vector.broadcast %1 : vector<1x8xf32> to vector<32x8xf32>
    %373 = arith.addf %371, %372 : vector<32x8xf32>
    %cst_336 = arith.constant 1.000000e-01 : f32
    %374 = vector.broadcast %cst_336 : f32 to vector<32x8xf32>
    %375 = arith.mulf %373, %374 : vector<32x8xf32>
    %376 = vector.extract_strided_slice %375 {offsets = [0, 0], sizes = [32, 4], strides = [1, 1]} : vector<32x8xf32> to vector<32x4xf32>
    %377 = math.tanh %376 : vector<32x4xf32>
    %cst_337 = arith.constant 2.000000e+00 : f32
    %378 = vector.broadcast %cst_337 : f32 to vector<32x4xf32>
    %379 = arith.mulf %378, %377 : vector<32x4xf32>
    %380 = vector.extract_strided_slice %375 {offsets = [0, 4], sizes = [32, 4], strides = [1, 1]} : vector<32x8xf32> to vector<32x4xf32>
    %c0_338 = arith.constant 0 : index
    %c6_339 = arith.constant 6 : index
    %c0_340 = arith.constant 0 : index
    %c0_341 = arith.constant 0 : index
    %381 = vector.load %arg2[%c0_338, %c6_339, %c0_340, %c0_341] : memref<1x8x16x4xf32, #tpu.memory_space<vmem>>, vector<1x2x16x4xf32>
    %382 = vector.shape_cast %381 : vector<1x2x16x4xf32> to vector<2x16x4xf32>
    %383 = vector.shape_cast %382 : vector<2x16x4xf32> to vector<32x4xf32>
    %384 = math.exp %379 : vector<32x4xf32>
    %385 = arith.mulf %383, %384 : vector<32x4xf32>
    %386 = arith.addf %385, %380 : vector<32x4xf32>
    %387 = vector.shape_cast %379 : vector<32x4xf32> to vector<2x16x4xf32>
    %cst_342 = arith.constant 0.000000e+00 : f32
    %388 = vector.shape_cast %10 : vector<1x16x1xi1> to vector<1x16x1xi1>
    %389 = vector.broadcast %388 : vector<1x16x1xi1> to vector<2x16x4xi1>
    %390 = vector.broadcast %cst_342 : f32 to vector<2x16x4xf32>
    %391 = arith.select %389, %387, %390 : vector<2x16x4xi1>, vector<2x16x4xf32>
    %392 = vector.shape_cast %391 : vector<2x16x4xf32> to vector<1x2x16x4xf32>
    %cst_343 = arith.constant dense<0.000000e+00> : vector<1xf32>
    %393 = vector.multi_reduction <add>, %392, %cst_343 [1, 2, 3] : vector<1x2x16x4xf32> to vector<1xf32>
    %394 = vector.shape_cast %393 : vector<1xf32> to vector<1x1x1x1xf32>
    %395 = vector.extract %394[0, 0, 0, 0] : f32 from vector<1x1x1x1xf32>
    %396 = arith.addf %331, %395 : f32
    %c0_344 = arith.constant 0 : index
    %c6_345 = arith.constant 6 : index
    %c0_346 = arith.constant 0 : index
    %c0_347 = arith.constant 0 : index
    %397 = vector.load %arg1[%c0_344, %c6_345, %c0_346, %c0_347] : memref<1x8x16x4xf32, #tpu.memory_space<vmem>>, vector<1x2x16x4xf32>
    %398 = vector.shape_cast %397 : vector<1x2x16x4xf32> to vector<2x16x4xf32>
    %399 = vector.shape_cast %398 : vector<2x16x4xf32> to vector<32x4xf32>
    %400 = vector.broadcast %4 : vector<1x4xf32> to vector<32x4xf32>
    %401 = arith.mulf %399, %400 : vector<32x4xf32>
    %402 = vector.broadcast %6 : vector<1x4xf32> to vector<32x4xf32>
    %403 = arith.addf %401, %402 : vector<32x4xf32>
    %404 = vector.shape_cast %403 : vector<32x4xf32> to vector<2x16x4xf32>
    %c0_348 = arith.constant 0 : index
    %c6_349 = arith.constant 6 : index
    %c0_350 = arith.constant 0 : index
    %c0_351 = arith.constant 0 : index
    %405 = vector.load %arg9[%c0_348, %c6_349, %c0_350, %c0_351] : memref<1x8x16x8xf32, #tpu.memory_space<vmem>>, vector<1x2x16x4xf32>
    %406 = vector.shape_cast %405 : vector<1x2x16x4xf32> to vector<2x16x4xf32>
    %407 = vector.shape_cast %404 : vector<2x16x4xf32> to vector<1x2x16x4xf32>
    tpu.vector_store %arg9[%c0_348, %c6_349, %c0_350, %c0_351], %407 {strides = array<i32>} : memref<1x8x16x8xf32, #tpu.memory_space<vmem>>, vector<1x2x16x4xf32>,
    %408 = vector.broadcast %5 : vector<1x4xf32> to vector<32x4xf32>
    %409 = arith.mulf %386, %408 : vector<32x4xf32>
    %410 = vector.broadcast %7 : vector<1x4xf32> to vector<32x4xf32>
    %411 = arith.addf %409, %410 : vector<32x4xf32>
    %412 = vector.shape_cast %411 : vector<32x4xf32> to vector<2x16x4xf32>
    %c0_352 = arith.constant 0 : index
    %c6_353 = arith.constant 6 : index
    %c0_354 = arith.constant 0 : index
    %c4_355 = arith.constant 4 : index
    %413 = vector.load %arg9[%c0_352, %c6_353, %c0_354, %c4_355] : memref<1x8x16x8xf32, #tpu.memory_space<vmem>>, vector<1x2x16x4xf32>
    %414 = vector.shape_cast %413 : vector<1x2x16x4xf32> to vector<2x16x4xf32>
    %415 = vector.shape_cast %412 : vector<2x16x4xf32> to vector<1x2x16x4xf32>
    tpu.vector_store %arg9[%c0_352, %c6_353, %c0_354, %c4_355], %415 {strides = array<i32>} : memref<1x8x16x8xf32, #tpu.memory_space<vmem>>, vector<1x2x16x4xf32>,
    %cst_356 = arith.constant 0.000000e+00 : f32
    %416 = vector.broadcast %cst_356 : f32 to vector<2x3x8xf32>
    %c0_357 = arith.constant 0 : index
    %c6_358 = arith.constant 6 : index
    %c13_359 = arith.constant 13 : index
    %c0_360 = arith.constant 0 : index
    %417 = vector.load %arg9[%c0_357, %c6_358, %c13_359, %c0_360] : memref<1x8x16x8xf32, #tpu.memory_space<vmem>>, vector<1x2x3x8xf32>
    %418 = vector.shape_cast %417 : vector<1x2x3x8xf32> to vector<2x3x8xf32>
    %419 = vector.shape_cast %416 : vector<2x3x8xf32> to vector<1x2x3x8xf32>
    tpu.vector_store %arg9[%c0_357, %c6_358, %c13_359, %c0_360], %419 {strides = array<i32>} : memref<1x8x16x8xf32, #tpu.memory_space<vmem>>, vector<1x2x3x8xf32>,
    %420 = vector.broadcast %396 : f32 to vector<1x1x1xf32>
    %c0_361 = arith.constant 0 : index
    %c0_362 = arith.constant 0 : index
    %c0_363 = arith.constant 0 : index
    %421 = vector.load %arg10[%c0_361, %c0_362, %c0_363] : memref<1x1x1xf32, #tpu.memory_space<vmem>>, vector<1x1x1xf32>
    tpu.vector_store %arg10[%c0_361, %c0_362, %c0_363], %420 {strides = array<i32>} : memref<1x1x1xf32, #tpu.memory_space<vmem>>, vector<1x1x1xf32>,
    return
  }
  func.func @transform_0(%arg0: i32) -> (i32, i32, i32, i32) {
    %c0_i32 = arith.constant 0 : i32
    %c0_i32_0 = arith.constant 0 : i32
    %c0_i32_1 = arith.constant 0 : i32
    %c0_i32_2 = arith.constant 0 : i32
    return %arg0, %c0_i32, %c0_i32_0, %c0_i32_1 : i32, i32, i32, i32
  }
  func.func @transform_1(%arg0: i32) -> (i32, i32, i32, i32) {
    %c0_i32 = arith.constant 0 : i32
    %c0_i32_0 = arith.constant 0 : i32
    %c0_i32_1 = arith.constant 0 : i32
    %c0_i32_2 = arith.constant 0 : i32
    return %arg0, %c0_i32, %c0_i32_0, %c0_i32_1 : i32, i32, i32, i32
  }
  func.func @transform_2(%arg0: i32) -> (i32, i32, i32) {
    %c0_i32 = arith.constant 0 : i32
    %c0_i32_0 = arith.constant 0 : i32
    %c0_i32_1 = arith.constant 0 : i32
    %c0_i32_2 = arith.constant 0 : i32
    return %c0_i32, %c0_i32_0, %c0_i32_1 : i32, i32, i32
  }
  func.func @transform_3(%arg0: i32) -> (i32, i32) {
    %c0_i32 = arith.constant 0 : i32
    %c0_i32_0 = arith.constant 0 : i32
    %c0_i32_1 = arith.constant 0 : i32
    return %c0_i32, %c0_i32_0 : i32, i32
  }
  func.func @transform_4(%arg0: i32) -> (i32, i32, i32) {
    %c0_i32 = arith.constant 0 : i32
    %c0_i32_0 = arith.constant 0 : i32
    %c0_i32_1 = arith.constant 0 : i32
    %c0_i32_2 = arith.constant 0 : i32
    return %c0_i32, %c0_i32_0, %c0_i32_1 : i32, i32, i32
  }
  func.func @transform_5(%arg0: i32) -> (i32, i32) {
    %c0_i32 = arith.constant 0 : i32
    %c0_i32_0 = arith.constant 0 : i32
    %c0_i32_1 = arith.constant 0 : i32
    return %c0_i32, %c0_i32_0 : i32, i32
  }
  func.func @transform_6(%arg0: i32) -> (i32, i32) {
    %c0_i32 = arith.constant 0 : i32
    %c0_i32_0 = arith.constant 0 : i32
    %c0_i32_1 = arith.constant 0 : i32
    return %c0_i32, %c0_i32_0 : i32, i32
  }
  func.func @transform_7(%arg0: i32) -> (i32, i32) {
    %c0_i32 = arith.constant 0 : i32
    %c0_i32_0 = arith.constant 0 : i32
    %c0_i32_1 = arith.constant 0 : i32
    return %c0_i32, %c0_i32_0 : i32, i32
  }
  func.func @transform_8(%arg0: i32) -> (i32, i32, i32, i32) {
    %c0_i32 = arith.constant 0 : i32
    %c0_i32_0 = arith.constant 0 : i32
    %c0_i32_1 = arith.constant 0 : i32
    %c0_i32_2 = arith.constant 0 : i32
    return %arg0, %c0_i32, %c0_i32_0, %c0_i32_1 : i32, i32, i32, i32
  }
  func.func @transform_9(%arg0: i32) -> (i32, i32, i32) {
    %c0_i32 = arith.constant 0 : i32
    %c0_i32_0 = arith.constant 0 : i32
    %c0_i32_1 = arith.constant 0 : i32
    return %arg0, %c0_i32, %c0_i32_0 : i32, i32, i32
  }
}

module attributes {stable_mosaic.version = 11 : i64} {
  func.func @_flow_step_kernel_k1(%arg0: i32, %arg1: memref<1x8x16x4xf32, #tpu.memory_space<vmem>>, %arg2: memref<1x8x16x4xf32, #tpu.memory_space<vmem>>, %arg3: memref<4x4xf32, #tpu.memory_space<vmem>>, %arg4: memref<1x4xf32, #tpu.memory_space<vmem>>, %arg5: memref<4x8xf32, #tpu.memory_space<vmem>>, %arg6: memref<1x8xf32, #tpu.memory_space<vmem>>, %arg7: memref<1x8xf32, #tpu.memory_space<vmem>>, %arg8: memref<1x8xf32, #tpu.memory_space<vmem>>, %arg9: memref<1x8x16x8xf32, #tpu.memory_space<vmem>>, %arg10: memref<1x1x1xf32, #tpu.memory_space<vmem>>) attributes {dimension_semantics = [#tpu.dimension_semantics<parallel>], iteration_bounds = array<i64: 2>, scalar_prefetch = 0 : i64, scratch_operands = 0 : i64, tpu.core_type = #tpu.core_type<tc>, window_params = [{transform_indices = @transform_0, window_bounds = array<i64: 1, 8, 16, 4>}, {transform_indices = @transform_1, window_bounds = array<i64: 1, 8, 16, 4>}, {pipeline_mode = #tpu.pipeline_mode<synchronous>, transform_indices = @transform_2, window_bounds = array<i64: 4, 4>}, {pipeline_mode = #tpu.pipeline_mode<synchronous>, transform_indices = @transform_3, window_bounds = array<i64: 1, 4>}, {pipeline_mode = #tpu.pipeline_mode<synchronous>, transform_indices = @transform_4, window_bounds = array<i64: 4, 8>}, {pipeline_mode = #tpu.pipeline_mode<synchronous>, transform_indices = @transform_5, window_bounds = array<i64: 1, 8>}, {pipeline_mode = #tpu.pipeline_mode<synchronous>, transform_indices = @transform_6, window_bounds = array<i64: 1, 8>}, {pipeline_mode = #tpu.pipeline_mode<synchronous>, transform_indices = @transform_7, window_bounds = array<i64: 1, 8>}, {transform_indices = @transform_8, window_bounds = array<i64: 1, 8, 16, 8>}, {transform_indices = @transform_9, window_bounds = array<i64: 1, 1, 1>}]} {
    %c0 = arith.constant 0 : index
    %c0_0 = arith.constant 0 : index
    %0 = vector.load %arg4[%c0, %c0_0] : memref<1x4xf32, #tpu.memory_space<vmem>>, vector<1x4xf32>
    %c0_1 = arith.constant 0 : index
    %c0_2 = arith.constant 0 : index
    %1 = vector.load %arg6[%c0_1, %c0_2] : memref<1x8xf32, #tpu.memory_space<vmem>>, vector<1x8xf32>
    %c0_3 = arith.constant 0 : index
    %c0_4 = arith.constant 0 : index
    %2 = vector.load %arg7[%c0_3, %c0_4] : memref<1x8xf32, #tpu.memory_space<vmem>>, vector<1x8xf32>
    %c0_5 = arith.constant 0 : index
    %c0_6 = arith.constant 0 : index
    %3 = vector.load %arg8[%c0_5, %c0_6] : memref<1x8xf32, #tpu.memory_space<vmem>>, vector<1x8xf32>
    %4 = vector.extract_strided_slice %2 {offsets = [0, 0], sizes = [1, 4], strides = [1, 1]} : vector<1x8xf32> to vector<1x4xf32>
    %5 = vector.extract_strided_slice %2 {offsets = [0, 4], sizes = [1, 4], strides = [1, 1]} : vector<1x8xf32> to vector<1x4xf32>
    %6 = vector.extract_strided_slice %3 {offsets = [0, 0], sizes = [1, 4], strides = [1, 1]} : vector<1x8xf32> to vector<1x4xf32>
    %7 = vector.extract_strided_slice %3 {offsets = [0, 4], sizes = [1, 4], strides = [1, 1]} : vector<1x8xf32> to vector<1x4xf32>
    %c0_7 = arith.constant 0 : index
    %c0_8 = arith.constant 0 : index
    %c0_9 = arith.constant 0 : index
    %c0_10 = arith.constant 0 : index
    %8 = vector.load %arg1[%c0_7, %c0_8, %c0_9, %c0_10] : memref<1x8x16x4xf32, #tpu.memory_space<vmem>>, vector<1x8x16x4xf32>
    %9 = vector.shape_cast %8 : vector<1x8x16x4xf32> to vector<8x16x4xf32>
    %10 = vector.shape_cast %9 : vector<8x16x4xf32> to vector<128x4xf32>
    %c0_11 = arith.constant 0 : index
    %c0_12 = arith.constant 0 : index
    %11 = vector.load %arg3[%c0_11, %c0_12] : memref<4x4xf32, #tpu.memory_space<vmem>>, vector<4x4xf32>
    %cst = arith.constant dense<0.000000e+00> : vector<128x4xf32>
    %12 = tpu.matmul %10, %11, %cst {dimension_numbers = #tpu.dot_dimension_numbers<[1], [0], [0], [1], [0, 0, 1, 1], [], []>} : vector<128x4xf32>, vector<4x4xf32>, vector<128x4xf32> -> vector<128x4xf32>
    %13 = vector.broadcast %0 : vector<1x4xf32> to vector<128x4xf32>
    %14 = arith.addf %12, %13 : vector<128x4xf32>
    %cst_13 = arith.constant 0.000000e+00 : f32
    %15 = vector.broadcast %cst_13 : f32 to vector<128x4xf32>
    %16 = arith.maximumf %14, %15 : vector<128x4xf32>
    %c0_14 = arith.constant 0 : index
    %c0_15 = arith.constant 0 : index
    %17 = vector.load %arg5[%c0_14, %c0_15] : memref<4x8xf32, #tpu.memory_space<vmem>>, vector<4x8xf32>
    %cst_16 = arith.constant dense<0.000000e+00> : vector<128x8xf32>
    %18 = tpu.matmul %16, %17, %cst_16 {dimension_numbers = #tpu.dot_dimension_numbers<[1], [0], [0], [1], [0, 0, 1, 1], [], []>} : vector<128x4xf32>, vector<4x8xf32>, vector<128x8xf32> -> vector<128x8xf32>
    %19 = vector.broadcast %1 : vector<1x8xf32> to vector<128x8xf32>
    %20 = arith.addf %18, %19 : vector<128x8xf32>
    %cst_17 = arith.constant 1.000000e-01 : f32
    %21 = vector.broadcast %cst_17 : f32 to vector<128x8xf32>
    %22 = arith.mulf %20, %21 : vector<128x8xf32>
    %23 = vector.extract_strided_slice %22 {offsets = [0, 0], sizes = [128, 4], strides = [1, 1]} : vector<128x8xf32> to vector<128x4xf32>
    %24 = math.tanh %23 : vector<128x4xf32>
    %cst_18 = arith.constant 2.000000e+00 : f32
    %25 = vector.broadcast %cst_18 : f32 to vector<128x4xf32>
    %26 = arith.mulf %25, %24 : vector<128x4xf32>
    %27 = vector.extract_strided_slice %22 {offsets = [0, 4], sizes = [128, 4], strides = [1, 1]} : vector<128x8xf32> to vector<128x4xf32>
    %c0_19 = arith.constant 0 : index
    %c0_20 = arith.constant 0 : index
    %c0_21 = arith.constant 0 : index
    %c0_22 = arith.constant 0 : index
    %28 = vector.load %arg2[%c0_19, %c0_20, %c0_21, %c0_22] : memref<1x8x16x4xf32, #tpu.memory_space<vmem>>, vector<1x8x16x4xf32>
    %29 = vector.shape_cast %28 : vector<1x8x16x4xf32> to vector<8x16x4xf32>
    %30 = vector.shape_cast %29 : vector<8x16x4xf32> to vector<128x4xf32>
    %31 = math.exp %26 : vector<128x4xf32>
    %32 = arith.mulf %30, %31 : vector<128x4xf32>
    %33 = arith.addf %32, %27 : vector<128x4xf32>
    %34 = tpu.iota {dimensions = array<i32: 1>} : vector<1x16x1xi32>
    %c13_i32 = arith.constant 13 : i32
    %35 = vector.broadcast %c13_i32 : i32 to vector<1x16x1xi32>
    %36 = arith.cmpi slt, %34, %35 : vector<1x16x1xi32>
    %37 = vector.shape_cast %26 : vector<128x4xf32> to vector<8x16x4xf32>
    %cst_23 = arith.constant 0.000000e+00 : f32
    %38 = vector.shape_cast %36 : vector<1x16x1xi1> to vector<1x16x1xi1>
    %39 = vector.broadcast %38 : vector<1x16x1xi1> to vector<8x16x4xi1>
    %40 = vector.broadcast %cst_23 : f32 to vector<8x16x4xf32>
    %41 = arith.select %39, %37, %40 : vector<8x16x4xi1>, vector<8x16x4xf32>
    %42 = vector.shape_cast %41 : vector<8x16x4xf32> to vector<1x8x16x4xf32>
    %cst_24 = arith.constant dense<0.000000e+00> : vector<1xf32>
    %43 = vector.multi_reduction <add>, %42, %cst_24 [1, 2, 3] : vector<1x8x16x4xf32> to vector<1xf32>
    %44 = vector.shape_cast %43 : vector<1xf32> to vector<1x1x1x1xf32>
    %45 = vector.extract %44[0, 0, 0, 0] : f32 from vector<1x1x1x1xf32>
    %46 = vector.broadcast %4 : vector<1x4xf32> to vector<128x4xf32>
    %47 = arith.mulf %10, %46 : vector<128x4xf32>
    %48 = vector.broadcast %6 : vector<1x4xf32> to vector<128x4xf32>
    %49 = arith.addf %47, %48 : vector<128x4xf32>
    %50 = vector.shape_cast %49 : vector<128x4xf32> to vector<8x16x4xf32>
    %c0_25 = arith.constant 0 : index
    %c0_26 = arith.constant 0 : index
    %c0_27 = arith.constant 0 : index
    %c0_28 = arith.constant 0 : index
    %51 = vector.load %arg9[%c0_25, %c0_26, %c0_27, %c0_28] : memref<1x8x16x8xf32, #tpu.memory_space<vmem>>, vector<1x8x16x4xf32>
    %52 = vector.shape_cast %51 : vector<1x8x16x4xf32> to vector<8x16x4xf32>
    %53 = vector.shape_cast %50 : vector<8x16x4xf32> to vector<1x8x16x4xf32>
    tpu.vector_store %arg9[%c0_25, %c0_26, %c0_27, %c0_28], %53 {strides = array<i32>} : memref<1x8x16x8xf32, #tpu.memory_space<vmem>>, vector<1x8x16x4xf32>,
    %54 = vector.broadcast %5 : vector<1x4xf32> to vector<128x4xf32>
    %55 = arith.mulf %33, %54 : vector<128x4xf32>
    %56 = vector.broadcast %7 : vector<1x4xf32> to vector<128x4xf32>
    %57 = arith.addf %55, %56 : vector<128x4xf32>
    %58 = vector.shape_cast %57 : vector<128x4xf32> to vector<8x16x4xf32>
    %c0_29 = arith.constant 0 : index
    %c0_30 = arith.constant 0 : index
    %c0_31 = arith.constant 0 : index
    %c4 = arith.constant 4 : index
    %59 = vector.load %arg9[%c0_29, %c0_30, %c0_31, %c4] : memref<1x8x16x8xf32, #tpu.memory_space<vmem>>, vector<1x8x16x4xf32>
    %60 = vector.shape_cast %59 : vector<1x8x16x4xf32> to vector<8x16x4xf32>
    %61 = vector.shape_cast %58 : vector<8x16x4xf32> to vector<1x8x16x4xf32>
    tpu.vector_store %arg9[%c0_29, %c0_30, %c0_31, %c4], %61 {strides = array<i32>} : memref<1x8x16x8xf32, #tpu.memory_space<vmem>>, vector<1x8x16x4xf32>,
    %cst_32 = arith.constant 0.000000e+00 : f32
    %62 = vector.broadcast %cst_32 : f32 to vector<8x3x8xf32>
    %c0_33 = arith.constant 0 : index
    %c0_34 = arith.constant 0 : index
    %c13 = arith.constant 13 : index
    %c0_35 = arith.constant 0 : index
    %63 = vector.load %arg9[%c0_33, %c0_34, %c13, %c0_35] : memref<1x8x16x8xf32, #tpu.memory_space<vmem>>, vector<1x8x3x8xf32>
    %64 = vector.shape_cast %63 : vector<1x8x3x8xf32> to vector<8x3x8xf32>
    %65 = vector.shape_cast %62 : vector<8x3x8xf32> to vector<1x8x3x8xf32>
    tpu.vector_store %arg9[%c0_33, %c0_34, %c13, %c0_35], %65 {strides = array<i32>} : memref<1x8x16x8xf32, #tpu.memory_space<vmem>>, vector<1x8x3x8xf32>,
    %66 = vector.broadcast %45 : f32 to vector<1x1x1xf32>
    %c0_36 = arith.constant 0 : index
    %c0_37 = arith.constant 0 : index
    %c0_38 = arith.constant 0 : index
    %67 = vector.load %arg10[%c0_36, %c0_37, %c0_38] : memref<1x1x1xf32, #tpu.memory_space<vmem>>, vector<1x1x1xf32>
    tpu.vector_store %arg10[%c0_36, %c0_37, %c0_38], %66 {strides = array<i32>} : memref<1x1x1xf32, #tpu.memory_space<vmem>>, vector<1x1x1xf32>,
    return
  }
  func.func @transform_0(%arg0: i32) -> (i32, i32, i32, i32) {
    %c0_i32 = arith.constant 0 : i32
    %c0_i32_0 = arith.constant 0 : i32
    %c0_i32_1 = arith.constant 0 : i32
    %c0_i32_2 = arith.constant 0 : i32
    return %arg0, %c0_i32, %c0_i32_0, %c0_i32_1 : i32, i32, i32, i32
  }
  func.func @transform_1(%arg0: i32) -> (i32, i32, i32, i32) {
    %c0_i32 = arith.constant 0 : i32
    %c0_i32_0 = arith.constant 0 : i32
    %c0_i32_1 = arith.constant 0 : i32
    %c0_i32_2 = arith.constant 0 : i32
    return %arg0, %c0_i32, %c0_i32_0, %c0_i32_1 : i32, i32, i32, i32
  }
  func.func @transform_2(%arg0: i32) -> (i32, i32) {
    %c0_i32 = arith.constant 0 : i32
    %c0_i32_0 = arith.constant 0 : i32
    %c0_i32_1 = arith.constant 0 : i32
    return %c0_i32, %c0_i32_0 : i32, i32
  }
  func.func @transform_3(%arg0: i32) -> (i32, i32) {
    %c0_i32 = arith.constant 0 : i32
    %c0_i32_0 = arith.constant 0 : i32
    %c0_i32_1 = arith.constant 0 : i32
    return %c0_i32, %c0_i32_0 : i32, i32
  }
  func.func @transform_4(%arg0: i32) -> (i32, i32) {
    %c0_i32 = arith.constant 0 : i32
    %c0_i32_0 = arith.constant 0 : i32
    %c0_i32_1 = arith.constant 0 : i32
    return %c0_i32, %c0_i32_0 : i32, i32
  }
  func.func @transform_5(%arg0: i32) -> (i32, i32) {
    %c0_i32 = arith.constant 0 : i32
    %c0_i32_0 = arith.constant 0 : i32
    %c0_i32_1 = arith.constant 0 : i32
    return %c0_i32, %c0_i32_0 : i32, i32
  }
  func.func @transform_6(%arg0: i32) -> (i32, i32) {
    %c0_i32 = arith.constant 0 : i32
    %c0_i32_0 = arith.constant 0 : i32
    %c0_i32_1 = arith.constant 0 : i32
    return %c0_i32, %c0_i32_0 : i32, i32
  }
  func.func @transform_7(%arg0: i32) -> (i32, i32) {
    %c0_i32 = arith.constant 0 : i32
    %c0_i32_0 = arith.constant 0 : i32
    %c0_i32_1 = arith.constant 0 : i32
    return %c0_i32, %c0_i32_0 : i32, i32
  }
  func.func @transform_8(%arg0: i32) -> (i32, i32, i32, i32) {
    %c0_i32 = arith.constant 0 : i32
    %c0_i32_0 = arith.constant 0 : i32
    %c0_i32_1 = arith.constant 0 : i32
    %c0_i32_2 = arith.constant 0 : i32
    return %arg0, %c0_i32, %c0_i32_0, %c0_i32_1 : i32, i32, i32, i32
  }
  func.func @transform_9(%arg0: i32) -> (i32, i32, i32) {
    %c0_i32 = arith.constant 0 : i32
    %c0_i32_0 = arith.constant 0 : i32
    %c0_i32_1 = arith.constant 0 : i32
    return %arg0, %c0_i32, %c0_i32_0 : i32, i32, i32
  }
}

</mosaic_0001>

<bundles_post_ra>
// kernel: _lambda_.3
= control target key start
LH: loop header
LB: loop body
LE: loop exit
PB: predicated region body
PF: predicated region fallthrough
CT: control target
= control target key end

     0   :  { %s1624_s30 = smov 0   ;;  %s2092_s0 = inlined_call_operand.vmem [shape: f32[2,8,16,4], index: 0, kind: input, shape index: {}]   ;;  %s2093_s1 = inlined_call_operand.vmem [shape: f32[2,8,16,4], index: 1, kind: input, shape index: {}]   ;;  %s2094_s2 = inlined_call_operand.vmem [shape: f32[4,4], index: 2, kind: input, shape index: {}]   ;;  %s2095_s3 = inlined_call_operand.vmem [shape: f32[1,4], index: 3, kind: input, shape index: {}]   ;;  %s2096_s4 = inlined_call_operand.vmem [shape: f32[4,8], index: 4, kind: input, shape index: {}]   ;;  %s2097_s5 = inlined_call_operand.vmem [shape: f32[1,8], index: 5, kind: input, shape index: {}]   ;;  %s2098_s6 = inlined_call_operand.vmem [shape: f32[1,8], index: 6, kind: input, shape index: {}]   ;;  %s2099_s7 = inlined_call_operand.vmem [shape: f32[1,8], index: 7, kind: input, shape index: {}]   ;;  %s2100_s8 = inlined_call_operand.vmem [shape: f32[2,8,16,8], index: 8, kind: output, shape index: {0}]   ;;  %s2101_s9 = inlined_call_operand.vmem [shape: f32[2,1,1], index: 9, kind: output, shape index: {1}]  }
   0x1 LB: > { %s1346_s10 = sadd.s32 4294967295, %s1569_s30   ;;  %p1350_p0 = scmp.ge.s32.totalorder %s1569_s30, 1  ;;  %s1569_s30 = sphi %s1624_s30, %s20_s30  }
   0x2   : > { %p300_p1 = scmp.lt.s32.totalorder %s1569_s30, 3 }
   0x4   : > { %p301_p2 = pnand %p1350_p0, %p300_p1 }
   0x5   : > { %v382_v0 = vld [vmem:[%s2094_s2] sm:$0xf] (!%p301_p2)  ;;  %vm438_vm0 = vcmask (!%p301_p2), 1043456   ;;  %p344_p3 = scmp.lt.s32.totalorder (!%p301_p2), %s1346_s10, 1  ;;  %vm389_vm1 = vcmask (!%p301_p2), 31744   ;;  %s1571_s11 = smov (!%p301_p2), 124  }
   0x6   : > { %304 = sbr.rel (%p301_p2) target bundleno = 802 (0x322), region = 52  ;;  %1434 = vmatprep.subr.msk.mxu0 (!%p301_p2), %vm438_vm0, %v382_v0  ;;  %v1651_v1 = vld [vmem:[%s2098_s6] ss:$0 sm:$0xff] (!%p301_p2)  ;;  %vm1252_vm3 = vcmask (!%p301_p2), 0   ;;  %vm1225_vm4 = vcmask (!%p301_p2), 64544   ;;  %vm1242_vm5 = vcmask (!%p301_p2), 59392  }
   0x7   : > { %1435 = vmatpush3.msk.msra.mxu0 (!%p301_p2), %vm438_vm0, %v382_v0  ;;  %v1672_v11 = vld [vmem:[%s2099_s7] ss:$0 sm:$0xff] (!%p301_p2) }
   0x8   : > { %v603_v51 = vld [vmem:[%s2096_s4] sm:$0xf] (!%p301_p2) }
   0x9   : > { %1460 = vmatprep.subr.msk.mxu1 (!%p301_p2), %vm438_vm0, %v603_v51  ;;  %v1357_v52 = vld [vmem:[%s2095_s3] ss:$0 sm:$0xff] (!%p301_p2) }
   0xa   : > { %1461 = vmatpush3.msk.msra.mxu1 (!%p301_p2), %vm438_vm0, %v603_v51 }
   0xd   : > { %s2103_s10 = smov (!%p344_p3, %s1346_s10), 1 }
   0xe   : > { %s1640_s13 = sshll.u32 %s2103_s10, 7  ;;  %s361_s18 = scalar_lea.vmem %s2101_s9, %s2103_s10 }
   0xf   : > { %s1646_s16 = scalar_lea.vmem %s2092_s0, %s1640_s13  ;;  %s1667_s21 = scalar_lea.vmem %s2100_s8, %s1640_s13 }
  0x10   : > { %v366_v2 = vld [vmem:[%s1646_s16] sm:$0xff]  ;;  %v367_v3 = vld [vmem:[%s1646_s16 + $0x8] sm:$0xff]  ;;  %v368_v4 = vld [vmem:[%s1646_s16 + $0x10] sm:$0xff]  ;;  %s1942_s15 = scalar_lea.vmem %s2093_s1, %s1640_s13  ;;  %s1572_s13 = smov 4  }
  0x11   : > { %1436 = vmatprep.mubr.msk.f32.mxu0 %vm389_vm1, %v366_v2  ;;  %v1069_v5 = vmul.f32 %v1651_v1, %v366_v2  ;;  %v1070_v6 = vmul.f32 %v1651_v1, %v367_v3  ;;  %v1071_v7 = vmul.f32 %v1651_v1, %v368_v4  ;;  %v369_v8 = vld [vmem:[%s1646_s16 + $0x18] sm:$0xff]  ;;  %v370_v9 = vld [vmem:[%s1646_s16 + $0x20] sm:$0xff]  ;;  %v371_v10 = vld [vmem:[%s1646_s16 + $0x28] sm:$0xff] }
  0x12   : > { %1437 = vmatmul.mubr.msk.f32.vlgmr.msra.gmra.mrb[0].mxu0 %vm389_vm1, %v367_v3  ;;  %v1072_v12 = vmul.f32 %v1651_v1, %v369_v8  ;;  %v1073_v13 = vmul.f32 %v1651_v1, %v370_v9  ;;  %v1074_v14 = vmul.f32 %v1651_v1, %v371_v10  ;;  %v372_v15 = vld [vmem:[%s1646_s16 + $0x30] sm:$0xff]  ;;  %v373_v20 = vld [vmem:[%s1646_s16 + $0x38] sm:$0xff]  ;;  %v374_v25 = vld [vmem:[%s1646_s16 + $0x40] sm:$0xff] }
  0x13   : > { %v1091_v16 = vadd.f32 %v1672_v11, %v1069_v5  ;;  %v1092_v17 = vadd.f32 %v1672_v11, %v1070_v6  ;;  %1439 = vmatprep.mubr.msk.f32.mxu0 %vm389_vm1, %v368_v4  ;;  %v1093_v18 = vadd.f32 %v1672_v11, %v1071_v7  ;;  %v1075_v19 = vmul.f32 %v1651_v1, %v372_v15  ;;  %v375_v26 = vld [vmem:[%s1646_s16 + $0x48] sm:$0xff]  ;;  %v376_v27 = vld [vmem:[%s1646_s16 + $0x50] sm:$0xff]  ;;  %v377_v32 = vld [vmem:[%s1646_s16 + $0x58] sm:$0xff] }
  0x14   : > { %v1094_v21 = vadd.f32 %v1672_v11, %v1072_v12  ;;  %v1095_v22 = vadd.f32 %v1672_v11, %v1073_v13  ;;  %v1096_v23 = vadd.f32 %v1672_v11, %v1074_v14  ;;  %v1076_v24 = vmul.f32 %v1651_v1, %v373_v20  ;;  %v378_v33 = vld [vmem:[%s1646_s16 + $0x60] sm:$0xff]  ;;  %v379_v34 = vld [vmem:[%s1646_s16 + $0x68] sm:$0xff]  ;;  %v380_v39 = vld [vmem:[%s1646_s16 + $0x70] sm:$0xff] }
  0x15   : > { %1107 = vst.msk [vmem:[%s1667_s21] sm:$0xff] %vm389_vm1, %v1091_v16  ;;  %1108 = vst.msk [vmem:[%s1667_s21 + $0x8] sm:$0xff] %vm389_vm1, %v1092_v17  ;;  %v1097_v28 = vadd.f32 %v1672_v11, %v1075_v19  ;;  %v1077_v29 = vmul.f32 %v1651_v1, %v374_v25  ;;  %v1078_v30 = vmul.f32 %v1651_v1, %v375_v26  ;;  %v381_v44 = vld [vmem:[%s1646_s16 + $0x78] sm:$0xff] }
  0x16   : > { %1109 = vst.msk [vmem:[%s1667_s21 + $0x10] sm:$0xff] %vm389_vm1, %v1093_v18  ;;  %v1079_v31 = vmul.f32 %v1651_v1, %v376_v27  ;;  %1440 = vmatmul.mubr.msk.f32.gmra.mrb[2].mxu0 %vm389_vm1, %v369_v8  ;;  %1110 = vst.msk [vmem:[%s1667_s21 + $0x18] sm:$0xff] %vm389_vm1, %v1094_v21  ;;  %v1098_v35 = vadd.f32 %v1672_v11, %v1076_v24  ;;  %v1080_v36 = vmul.f32 %v1651_v1, %v377_v32 }
  0x17   : > { %1111 = vst.msk [vmem:[%s1667_s21 + $0x20] sm:$0xff] %vm389_vm1, %v1095_v22  ;;  %1112 = vst.msk [vmem:[%s1667_s21 + $0x28] sm:$0xff] %vm389_vm1, %v1096_v23  ;;  %v1081_v37 = vmul.f32 %v1651_v1, %v378_v33  ;;  %v1082_v38 = vmul.f32 %v1651_v1, %v379_v34  ;;  %1442 = vmatprep.mubr.msk.f32.mxu0 %vm389_vm1, %v370_v9  ;;  %v1099_v40 = vadd.f32 %v1672_v11, %v1077_v29 }
  0x18   : > { %1113 = vst.msk [vmem:[%s1667_s21 + $0x30] sm:$0xff] %vm389_vm1, %v1097_v28  ;;  %v1100_v41 = vadd.f32 %v1672_v11, %v1078_v30  ;;  %v1101_v42 = vadd.f32 %v1672_v11, %v1079_v31  ;;  %v1083_v43 = vmul.f32 %v1651_v1, %v380_v39  ;;  %1114 = vst.msk [vmem:[%s1667_s21 + $0x38] sm:$0xff] %vm389_vm1, %v1098_v35 }
  0x19   : > { %v1102_v45 = vadd.f32 %v1672_v11, %v1080_v36  ;;  %v1103_v46 = vadd.f32 %v1672_v11, %v1081_v37  ;;  %v1104_v47 = vadd.f32 %v1672_v11, %v1082_v38  ;;  %v1084_v48 = vmul.f32 %v1651_v1, %v381_v44  ;;  %1115 = vst.msk [vmem:[%s1667_s21 + $0x40] sm:$0xff] %vm389_vm1, %v1099_v40 }
  0x1a   : > { %1116 = vst.msk [vmem:[%s1667_s21 + $0x48] sm:$0xff] %vm389_vm1, %v1100_v41  ;;  %1117 = vst.msk [vmem:[%s1667_s21 + $0x50] sm:$0xff] %vm389_vm1, %v1101_v42  ;;  %v1105_v49 = vadd.f32 %v1672_v11, %v1083_v43  ;;  %1443 = vmatmul.mubr.msk.f32.gmra.mrb[4].mxu0 %vm389_vm1, %v371_v10 }
  0x1b   : > { %1118 = vst.msk [vmem:[%s1667_s21 + $0x58] sm:$0xff] %vm389_vm1, %v1102_v45  ;;  %1119 = vst.msk [vmem:[%s1667_s21 + $0x60] sm:$0xff] %vm389_vm1, %v1103_v46  ;;  %v1106_v50 = vadd.f32 %v1672_v11, %v1084_v48  ;;  %1445 = vmatprep.mubr.msk.f32.mxu0 %vm389_vm1, %v372_v15  ;;  %v998_v45 = vlaneseq }
  0x1c   : > { %1120 = vst.msk [vmem:[%s1667_s21 + $0x68] sm:$0xff] %vm389_vm1, %v1104_v47  ;;  %1121 = vst.msk [vmem:[%s1667_s21 + $0x70] sm:$0xff] %vm389_vm1, %v1105_v49 }
  0x1d   : > { %1122 = vst.msk [vmem:[%s1667_s21 + $0x78] sm:$0xff] %vm389_vm1, %v1106_v50  ;;  %v999_v51 = vshrl.u32 %v998_v45, 7 }
  0x1e   : > { %1446 = vmatmul.mubr.msk.f32.gmra.mrb[6].mxu0 %vm389_vm1, %v373_v20 }
  0x1f   : > { %1448 = vmatprep.mubr.msk.f32.mxu0 %vm389_vm1, %v374_v25 }
  0x22   : > { %1449 = vmatmul.mubr.msk.f32.gmra.mrb[8].mxu0 %vm389_vm1, %v375_v26 }
  0x23   : > { %1451 = vmatprep.mubr.msk.f32.mxu0 %vm389_vm1, %v376_v27 }
  0x26   : > { %1452 = vmatmul.mubr.msk.f32.gmra.mrb[10].mxu0 %vm389_vm1, %v377_v32 }
  0x27   : > { %1454 = vmatprep.mubr.msk.f32.mxu0 %vm389_vm1, %v378_v33 }
  0x2a   : > { %1455 = vmatmul.mubr.msk.f32.gmra.mrb[12].mxu0 %vm389_vm1, %v379_v34 }
  0x2b   : > { %1457 = vmatprep.mubr.msk.f32.mxu0 %vm389_vm1, %v380_v39  ;;  %v1787_v39 = vld [vmem:[%s2097_s5] ss:$0 sm:$0xff] }
  0x2e   : > { %1458 = vmatmul.mubr.msk.f32.gmra.mrb[14].mxu0 %vm389_vm1, %v381_v44 }
  0xe5   : > { %v1438_v53 = vpop.f32.mrb[0].mxu0 }
  0xe6   : > { %v514_v54 = vadd.f32 %v1438_v53, %v1357_v52  ;;  %v508_v55 = vpop.f32.mrb[1].mxu0 }
  0xe7   : > { %v509_v56 = vadd.f32 %v1357_v52, %v508_v55 }
  0xe8   : > { %v588_v59 = vmax.f32 %v514_v54, 0.0 }
  0xe9   : > { %v587_v57 = vmax.f32 %v509_v56, 0.0  ;;  %v1441_v58 = vpop.f32.mrb[2].mxu0 }
  0xea   : > { %v524_v60 = vadd.f32 %v1441_v58, %v1357_v52  ;;  %v518_v61 = vpop.f32.mrb[3].mxu0  ;;  %v1798_v58 = vadd.s32 8, %v999_v51 }
  0xeb   : > { %v519_v62 = vadd.f32 %v1357_v52, %v518_v61  ;;  %1462 = vmatprep.mubr.msk.f32.mxu1 %vm389_vm1, %v587_v57 }
  0xec   : > { %1463 = vmatmul.mubr.msk.f32.vlgmr.msra.gmra.mrb[0].mxu1 %vm389_vm1, %v588_v59  ;;  %v590_v2 = vmax.f32 %v524_v60, 0.0  ;;  %vm1002_vm2 = vcmp.lt.s32.totalorder %v1798_v58, 13 }
  0xed   : > { %v589_v63 = vmax.f32 %v519_v62, 0.0  ;;  %v1444_v0 = vpop.f32.mrb[4].mxu0 }
  0xee   : > { %v534_v3 = vadd.f32 %v1444_v0, %v1357_v52  ;;  %v528_v4 = vpop.f32.mrb[5].mxu0 }
  0xef   : > { %v529_v5 = vadd.f32 %v1357_v52, %v528_v4  ;;  %1465 = vmatprep.mubr.msk.f32.mxu1 %vm389_vm1, %v589_v63 }
  0xf0   : > { %1466 = vmatmul.mubr.msk.f32.gmra.mrb[2].mxu1 %vm389_vm1, %v590_v2  ;;  %v592_v8 = vmax.f32 %v534_v3, 0.0 }
  0xf1   : > { %v591_v6 = vmax.f32 %v529_v5, 0.0  ;;  %v1447_v7 = vpop.f32.mrb[6].mxu0 }
  0xf2   : > { %v544_v9 = vadd.f32 %v1447_v7, %v1357_v52  ;;  %v538_v10 = vpop.f32.mrb[7].mxu0 }
  0xf3   : > { %v539_v12 = vadd.f32 %v1357_v52, %v538_v10  ;;  %1468 = vmatprep.mubr.msk.f32.mxu1 %vm389_vm1, %v591_v6 }
  0xf4   : > { %1469 = vmatmul.mubr.msk.f32.gmra.mrb[4].mxu1 %vm389_vm1, %v592_v8  ;;  %v594_v15 = vmax.f32 %v544_v9, 0.0 }
  0xf5   : > { %v593_v13 = vmax.f32 %v539_v12, 0.0  ;;  %v1450_v14 = vpop.f32.mrb[8].mxu0 }
  0xf6   : > { %v554_v16 = vadd.f32 %v1450_v14, %v1357_v52  ;;  %v548_v17 = vpop.f32.mrb[9].mxu0 }
  0xf7   : > { %v549_v18 = vadd.f32 %v1357_v52, %v548_v17  ;;  %1471 = vmatprep.mubr.msk.f32.mxu1 %vm389_vm1, %v593_v13 }
  0xf8   : > { %1472 = vmatmul.mubr.msk.f32.gmra.mrb[6].mxu1 %vm389_vm1, %v594_v15  ;;  %v596_v21 = vmax.f32 %v554_v16, 0.0 }
  0xf9   : > { %v595_v19 = vmax.f32 %v549_v18, 0.0  ;;  %v1453_v20 = vpop.f32.mrb[10].mxu0 }
  0xfa   : > { %v564_v22 = vadd.f32 %v1453_v20, %v1357_v52  ;;  %v558_v23 = vpop.f32.mrb[11].mxu0 }
  0xfb   : > { %v559_v24 = vadd.f32 %v1357_v52, %v558_v23  ;;  %1474 = vmatprep.mubr.msk.f32.mxu1 %vm389_vm1, %v595_v19 }
  0xfc   : > { %1475 = vmatmul.mubr.msk.f32.gmra.mrb[8].mxu1 %vm389_vm1, %v596_v21  ;;  %v598_v27 = vmax.f32 %v564_v22, 0.0 }
  0xfd   : > { %v597_v25 = vmax.f32 %v559_v24, 0.0  ;;  %v1456_v26 = vpop.f32.mrb[12].mxu0 }
  0xfe   : > { %v574_v28 = vadd.f32 %v1456_v26, %v1357_v52  ;;  %v568_v29 = vpop.f32.mrb[13].mxu0 }
  0xff   : > { %v569_v30 = vadd.f32 %v1357_v52, %v568_v29  ;;  %1477 = vmatprep.mubr.msk.f32.mxu1 %vm389_vm1, %v597_v25 }
 0x100   : > { %1478 = vmatmul.mubr.msk.f32.gmra.mrb[10].mxu1 %vm389_vm1, %v598_v27  ;;  %v600_v33 = vmax.f32 %v574_v28, 0.0 }
 0x101   : > { %v599_v31 = vmax.f32 %v569_v30, 0.0  ;;  %v1459_v32 = vpop.f32.mrb[14].mxu0 }
 0x102   : > { %v584_v34 = vadd.f32 %v1459_v32, %v1357_v52  ;;  %v578_v35 = vpop.f32.mrb[15].mxu0 }
 0x103   : > { %v579_v36 = vadd.f32 %v1357_v52, %v578_v35  ;;  %1480 = vmatprep.mubr.msk.f32.mxu1 %vm389_vm1, %v599_v31 }
 0x104   : > { %v602_v37 = vmax.f32 %v584_v34, 0.0  ;;  %1481 = vmatmul.mubr.msk.f32.gmra.mrb[12].mxu1 %vm389_vm1, %v600_v33 }
 0x105   : > { %v601_v38 = vmax.f32 %v579_v36, 0.0 }
 0x107   : > { %1483 = vmatprep.mubr.msk.f32.mxu1 %vm389_vm1, %v601_v38 }
 0x108   : > { %1484 = vmatmul.mubr.msk.f32.gmra.mrb[14].mxu1 %vm389_vm1, %v602_v37 }
 0x1bf   : > { %v1464_v40 = vpop.f32.mrb[0].mxu1 }
 0x1c0   : > { %v733_v41 = vadd.f32 %v1464_v40, %v1787_v39  ;;  %v727_v42 = vpop.f32.mrb[1].mxu1 }
 0x1c1   : > { %v728_v43 = vadd.f32 %v1787_v39, %v727_v42 }
 0x1c2   : > { %v807_v44 = vmul.f32 0.1, %v733_v41 }
 0x1c3   : > { %v806_v46 = vmul.f32 0.1, %v728_v43  ;;  %v1467_v47 = vpop.f32.mrb[2].mxu1 }
 0x1c4   : > { %1499 = vtanh.f32 %v807_v44  ;;  %v743_v48 = vadd.f32 %v1467_v47, %v1787_v39  ;;  %936 = vrot.lane.b32.xlu0 %v807_v44, %s1571_s11  ;;  %v737_v49 = vpop.f32.mrb[3].mxu1 }
 0x1c5   : > { %1501 = vtanh.f32 %v806_v46  ;;  %v738_v50 = vadd.f32 %v1787_v39, %v737_v49 }
 0x1c6   : > { %v809_v52 = vmul.f32 0.1, %v743_v48 }
 0x1c7   : > { %v808_v53 = vmul.f32 0.1, %v738_v50  ;;  %v1470_v54 = vpop.f32.mrb[4].mxu1 }
 0x1c8   : > { %1503 = vtanh.f32 %v809_v52  ;;  %v753_v55 = vadd.f32 %v1470_v54, %v1787_v39  ;;  %940 = vrot.lane.b32.xlu1 %v809_v52, %s1571_s11  ;;  %v747_v56 = vpop.f32.mrb[5].mxu1  ;;  %934 = vrot.lane.b32.xlu0 %v806_v46, %s1571_s11 }
 0x1c9   : > { %1505 = vtanh.f32 %v808_v53  ;;  %v748_v57 = vadd.f32 %v1787_v39, %v747_v56 }
 0x1ca   : > { %v811_v59 = vmul.f32 0.1, %v753_v55 }
 0x1cb   : > { %v810_v60 = vmul.f32 0.1, %v748_v57  ;;  %v1473_v61 = vpop.f32.mrb[6].mxu1 }
 0x1cc   : > { %1507 = vtanh.f32 %v811_v59  ;;  %v763_v62 = vadd.f32 %v1473_v61, %v1787_v39  ;;  %v757_v63 = vpop.f32.mrb[7].mxu1  ;;  %938 = vrot.lane.b32.xlu1 %v808_v53, %s1571_s11 }
 0x1cd   : > { %1509 = vtanh.f32 %v810_v60  ;;  %v758_v0 = vadd.f32 %v1787_v39, %v757_v63  ;;  %942 = vrot.lane.b32.xlu0 %v810_v60, %s1571_s11 }
 0x1ce   : > { %v1500_v2 = vpop.eup %1499  ;;  %v813_v3 = vmul.f32 0.1, %v763_v62 }
 0x1cf   : > { %v1502_v4 = vpop.eup %1501  ;;  %v1805_v5 = vmul.f32 2.0, %v1500_v2  ;;  %v812_v6 = vmul.f32 0.1, %v758_v0  ;;  %v1476_v7 = vpop.f32.mrb[8].mxu1 }
 0x1d0   : > { %v1807_v8 = vmul.f32 2.0, %v1502_v4  ;;  %1511 = vtanh.f32 %v813_v3  ;;  %v773_v9 = vadd.f32 %v1476_v7, %v1787_v39  ;;  %v767_v10 = vpop.f32.mrb[9].mxu1  ;;  %944 = vrot.lane.b32.xlu1 %v811_v59, %s1571_s11 }
 0x1d1   : > { %v1008_v12 = vsel %vm1002_vm2, %v1805_v5, 0.0  ;;  %1513 = vtanh.f32 %v812_v6  ;;  %v768_v13 = vadd.f32 %v1787_v39, %v767_v10 }
 0x1d2   : > { %v1504_v14 = vpop.eup %1503  ;;  %v1024_v15 = vsel %vm389_vm1, %v1008_v12, 0.0  ;;  %v1023_v16 = vsel %vm389_vm1, %v1807_v8, 0.0  ;;  %v815_v17 = vmul.f32 0.1, %v773_v9 }
 0x1d3   : > { %v1506_v18 = vpop.eup %1505  ;;  %v1025_v19 = vadd.f32 %v1024_v15, %v1023_v16  ;;  %v1818_v20 = vmul.f32 2.0, %v1504_v14  ;;  %v814_v21 = vmul.f32 0.1, %v768_v13  ;;  %v1479_v22 = vpop.f32.mrb[10].mxu1 }
 0x1d4   : > { %v1820_v23 = vmul.f32 2.0, %v1506_v18  ;;  %v783_v24 = vadd.f32 %v1479_v22, %v1787_v39  ;;  %v777_v25 = vpop.f32.mrb[11].mxu1  ;;  %948 = vrot.lane.b32.xlu1 %v813_v3, %s1571_s11  ;;  %1515 = vtanh.f32 %v815_v17 }
 0x1d5   : > { %v1010_v26 = vsel %vm1002_vm2, %v1818_v20, 0.0  ;;  %v778_v27 = vadd.f32 %v1787_v39, %v777_v25  ;;  %950 = vrot.lane.b32.xlu0 %v814_v21, %s1571_s11  ;;  %1517 = vtanh.f32 %v814_v21 }
 0x1d6   : > { %v1508_v28 = vpop.eup %1507  ;;  %v1026_v29 = vsel %vm389_vm1, %v1820_v23, 0.0  ;;  %v817_v33 = vmul.f32 0.1, %v783_v24  ;;  %v1028_v35 = vsel %vm389_vm1, %v1010_v26, 0.0 }
 0x1d7   : > { %v1510_v30 = vpop.eup %1509  ;;  %v1027_v31 = vadd.f32 %v1026_v29, %v1025_v19  ;;  %v1831_v32 = vmul.f32 2.0, %v1508_v28  ;;  %v1482_v34 = vpop.f32.mrb[12].mxu1  ;;  %v816_v37 = vmul.f32 0.1, %v778_v27 }
 0x1d8   : > { %v1834_v36 = vmul.f32 2.0, %v1510_v30  ;;  %v793_v38 = vadd.f32 %v1482_v34, %v1787_v39  ;;  %v787_v40 = vpop.f32.mrb[13].mxu1  ;;  %946 = vrot.lane.b32.xlu1 %v812_v6, %s1571_s11  ;;  %1519 = vtanh.f32 %v817_v33 }
 0x1d9   : > { %v1012_v41 = vsel %vm1002_vm2, %v1831_v32, 0.0  ;;  %v1029_v42 = vadd.f32 %v1028_v35, %v1027_v31  ;;  %1521 = vtanh.f32 %v816_v37  ;;  %v788_v52 = vadd.f32 %v1787_v39, %v787_v40 }
 0x1da   : > { %v1512_v43 = vpop.eup %1511  ;;  %v1030_v44 = vsel %vm389_vm1, %v1834_v36, 0.0  ;;  %v819_v48 = vmul.f32 0.1, %v793_v38  ;;  %v1032_v50 = vsel %vm389_vm1, %v1012_v41, 0.0 }
 0x1db   : > { %v1514_v45 = vpop.eup %1513  ;;  %v1031_v46 = vadd.f32 %v1030_v44, %v1029_v42  ;;  %v1843_v47 = vmul.f32 2.0, %v1512_v43  ;;  %v1485_v49 = vpop.f32.mrb[14].mxu1  ;;  %v818_v59 = vmul.f32 0.1, %v788_v52 }
 0x1dc   : > { %v1846_v51 = vmul.f32 2.0, %v1514_v45  ;;  %v803_v53 = vadd.f32 %v1485_v49, %v1787_v39  ;;  %v797_v54 = vpop.f32.mrb[15].mxu1  ;;  %952 = vrot.lane.b32.xlu1 %v815_v17, %s1571_s11  ;;  %1523 = vtanh.f32 %v819_v48 }
 0x1dd   : > { %v1014_v55 = vsel %vm1002_vm2, %v1843_v47, 0.0  ;;  %v1033_v56 = vadd.f32 %v1032_v50, %v1031_v46  ;;  %v798_v63 = vadd.f32 %v1787_v39, %v797_v54  ;;  %958 = vrot.lane.b32.xlu0 %v818_v59, %s1571_s11  ;;  %1525 = vtanh.f32 %v818_v59 }
 0x1de   : > { %v1034_v57 = vsel %vm389_vm1, %v1846_v51, 0.0  ;;  %v1516_v60 = vpop.eup %1515  ;;  %v821_v62 = vmul.f32 0.1, %v803_v53  ;;  %v1036_v2 = vsel %vm389_vm1, %v1014_v55, 0.0  ;;  %v874_v59 = vmul.f32 1.442695, %v1820_v23 }
 0x1df   : > { %v1035_v61 = vadd.f32 %v1034_v57, %v1033_v56  ;;  %v1518_v0 = vpop.eup %1517  ;;  %v1858_v3 = vmul.f32 2.0, %v1516_v60  ;;  %v820_v7 = vmul.f32 0.1, %v798_v63  ;;  %v876_v57 = vmul.f32 1.442695, %v1818_v20 }
 0x1e0   : > { %956 = vrot.lane.b32.xlu1 %v817_v33, %s1571_s11  ;;  %v1862_v4 = vmul.f32 2.0, %v1518_v0  ;;  %1527 = vtanh.f32 %v821_v62  ;;  %v880_v60 = vmul.f32 1.442695, %v1831_v32  ;;  %v882_v20 = vmul.f32 1.442695, %v1846_v51 }
 0x1e1   : > { %v1037_v6 = vadd.f32 %v1036_v2, %v1035_v61  ;;  %v1016_v9 = vsel %vm1002_vm2, %v1858_v3, 0.0  ;;  %1529 = vtanh.f32 %v820_v7 }
 0x1e2   : > { %v1520_v39 = vpop.eup %1519  ;;  %v1038_v10 = vsel %vm389_vm1, %v1862_v4, 0.0  ;;  %v1040_v15 = vsel %vm389_vm1, %v1016_v9, 0.0 }
 0x1e3   : > { %v1522_v12 = vpop.eup %1521  ;;  %v1039_v13 = vadd.f32 %v1038_v10, %v1037_v6  ;;  %v1869_v14 = vmul.f32 2.0, %v1520_v39  ;;  %v855_v6 = vld [vmem:[%s1942_s15 + $0x8] sm:$0xff]  ;;  %v886_v39 = vmul.f32 1.442695, %v1862_v4  ;;  %v854_v10 = vld [vmem:[%s1942_s15] sm:$0xff] }
 0x1e4   : > { %954 = vrot.lane.b32.xlu1 %v816_v37, %s1571_s11  ;;  %v1873_v16 = vmul.f32 2.0, %v1522_v12  ;;  %v856_v12 = vld [vmem:[%s1942_s15 + $0x10] sm:$0xff] }
 0x1e5   : > { %v1018_v17 = vsel %vm1002_vm2, %v1869_v14, 0.0  ;;  %v1041_v18 = vadd.f32 %v1040_v15, %v1039_v13  ;;  %v892_v51 = vmul.f32 1.442695, %v1869_v14 }
 0x1e6   : > { %v1524_v19 = vpop.eup %1523  ;;  %v1042_v21 = vsel %vm389_vm1, %v1873_v16, 0.0  ;;  %v1044_v24 = vsel %vm389_vm1, %v1018_v17, 0.0  ;;  %v890_v13 = vmul.f32 1.442695, %v1873_v16 }
 0x1e7   : > { %v1043_v22 = vadd.f32 %v1042_v21, %v1041_v18  ;;  %v1882_v25 = vmul.f32 2.0, %v1524_v19  ;;  %v1526_v27 = vpop.eup %1525 }
 0x1e8   : > { %960 = vrot.lane.b32.xlu1 %v819_v48, %s1571_s11  ;;  %v1884_v29 = vmul.f32 2.0, %v1526_v27  ;;  %v859_v27 = vld [vmem:[%s1942_s15 + $0x28] sm:$0xff] }
 0x1e9   : > { %v1045_v26 = vadd.f32 %v1044_v24, %v1043_v22  ;;  %v1020_v33 = vsel %vm1002_vm2, %v1882_v25, 0.0  ;;  %v896_v16 = vmul.f32 1.442695, %v1882_v25 }
 0x1ea   : > { %v1528_v28 = vpop.eup %1527  ;;  %v1046_v34 = vsel %vm389_vm1, %v1884_v29, 0.0  ;;  %v1048_v40 = vsel %vm389_vm1, %v1020_v33, 0.0 }
 0x1eb   : > { %v1530_v30 = vpop.eup %1529  ;;  %v1887_v31 = vmul.f32 2.0, %v1528_v28  ;;  %v1047_v38 = vadd.f32 %v1046_v34, %v1045_v26  ;;  %v861_v28 = vld [vmem:[%s1942_s15 + $0x38] sm:$0xff] }
 0x1ec   : > { %964 = vrot.lane.b32.xlu1 %v821_v62, %s1571_s11  ;;  %v1894_v35 = vmul.f32 2.0, %v1530_v30 }
 0x1ed   : > { %v1022_v37 = vsel %vm1002_vm2, %v1887_v31, 0.0  ;;  %v1049_v42 = vadd.f32 %v1048_v40, %v1047_v38  ;;  %v900_v33 = vmul.f32 1.442695, %v1887_v31  ;;  %v860_v31 = vld [vmem:[%s1942_s15 + $0x30] sm:$0xff] }
 0x1ee   : > { %v1050_v41 = vsel %vm389_vm1, %v1894_v35, 0.0  ;;  %v1052_v43 = vsel %vm389_vm1, %v1022_v37, 0.0 }
 0x1ef   : > { %v1051_v44 = vadd.f32 %v1050_v41, %v1049_v42 }
 0x1f0   : > { %962 = vrot.lane.b32.xlu1 %v820_v7, %s1571_s11  ;;  %v857_v7 = vld [vmem:[%s1942_s15 + $0x18] sm:$0xff] }
 0x1f1   : > { %v1053_v45 = vadd.f32 %v1052_v43, %v1051_v44 }
 0x1f4   : > { %1142 = vrot.lane.b32.xlu1 %v1672_v11, %s1571_s11  ;;  %v872_v11 = vmul.f32 1.442695, %v1805_v5  ;;  %v884_v5 = vmul.f32 1.442695, %v1843_v47 }
 0x1f6   : > { %1531 = vpow2.f32 %v872_v11  ;;  %v858_v11 = vld [vmem:[%s1942_s15 + $0x20] sm:$0xff] }
 0x1fc   : > { %1054 = vadd.xlane.f32.xlu0 %v1053_v45 }
 0x200   : > { %v1532_v32 = vpop.eup %1531 }
 0x201   : > { %v903_v17 = vmul.f32 %v1532_v32, %v855_v6  ;;  %v865_v6 = vld [vmem:[%s1942_s15 + $0x58] sm:$0xff] }
 0x212   : > { %1123 = vrot.lane.b32.xlu0 %v1651_v1, %s1571_s11  ;;  %v870_v1 = vmul.f32 1.442695, %v1807_v8  ;;  %v878_v8 = vmul.f32 1.442695, %v1834_v36  ;;  %v888_v36 = vmul.f32 1.442695, %v1858_v3 }
 0x214   : > { %1533 = vpow2.f32 %v870_v1 }
 0x215   : > { %1535 = vpow2.f32 %v876_v57 }
 0x216   : > { %1537 = vpow2.f32 %v874_v59  ;;  %v894_v59 = vmul.f32 1.442695, %v1884_v29  ;;  %v863_v29 = vld [vmem:[%s1942_s15 + $0x48] sm:$0xff] }
 0x217   : > { %1539 = vpow2.f32 %v880_v60 }
 0x218   : > { %1541 = vpow2.f32 %v884_v5  ;;  %v898_v5 = vmul.f32 1.442695, %v1894_v35 }
 0x219   : > { %1543 = vpow2.f32 %v878_v8 }
 0x21a   : > { %1545 = vpow2.f32 %v882_v20 }
 0x21b   : > { %1547 = vpow2.f32 %v888_v36 }
 0x21c   : > { %1549 = vpow2.f32 %v892_v51 }
 0x21d   : > { %1551 = vpow2.f32 %v886_v39 }
 0x21e   : > { %v1534_v0 = vpop.eup %1533  ;;  %1553 = vpow2.f32 %v890_v13 }
 0x21f   : > { %v1536_v2 = vpop.eup %1535  ;;  %v902_v21 = vmul.f32 %v1534_v0, %v854_v10  ;;  %1555 = vpow2.f32 %v896_v16 }
 0x220   : > { %v1538_v9 = vpop.eup %1537  ;;  %v905_v18 = vmul.f32 %v1536_v2, %v857_v7  ;;  %1557 = vpow2.f32 %v900_v33 }
 0x221   : > { %v1540_v19 = vpop.eup %1539  ;;  %v904_v22 = vmul.f32 %v1538_v9, %v856_v12  ;;  %1559 = vpow2.f32 %v894_v59 }
 0x222   : > { %v1542_v24 = vpop.eup %1541  ;;  %v907_v45 = vmul.f32 %v1540_v19, %v859_v27  ;;  %1561 = vpow2.f32 %v898_v5 }
 0x223   : > { %v1544_v44 = vpop.eup %1543 }
 0x224   : > { %v1546_v25 = vpop.eup %1545  ;;  %v906_v36 = vmul.f32 %v1544_v44, %v858_v11 }
 0x225   : > { %v1548_v32 = vpop.eup %1547  ;;  %v908_v0 = vmul.f32 %v1546_v25, %v860_v31 }
 0x226   : > { %v1550_v2 = vpop.eup %1549  ;;  %v911_v13 = vmul.f32 %v1548_v32, %v863_v29 }
 0x227   : > { %v1552_v9 = vpop.eup %1551 }
 0x228   : > { %v1554_v12 = vpop.eup %1553 }
 0x236   : > { %v937_v53 = vpop.permute.xlu0 %936 }
 0x237   : > { %v983_v4 = vadd.f32 %v937_v53, %v903_v17  ;;  %v862_v17 = vld [vmem:[%s1942_s15 + $0x40] sm:$0xff] }
 0x23a   : > { %v941_v58 = vpop.permute.xlu1 %940  ;;  %v935_v55 = vpop.permute.xlu0 %934 }
 0x23b   : > { %v985_v26 = vadd.f32 %v941_v58, %v905_v18  ;;  %v982_v40 = vadd.f32 %v935_v55, %v902_v21  ;;  %v909_v58 = vmul.f32 %v1542_v24, %v861_v28  ;;  %v864_v18 = vld [vmem:[%s1942_s15 + $0x50] sm:$0xff]  ;;  %v1556_v24 = vpop.eup %1555  ;;  %v867_v28 = vld [vmem:[%s1942_s15 + $0x68] sm:$0xff] }
 0x23c   : > { %v1558_v27 = vpop.eup %1557 }
 0x23e   : > { %v1908_v46 = vpop.permute.xlu1 %938 }
 0x23f   : > { %v1927_v61 = vpop.permute.xlu0 %942  ;;  %v984_v34 = vadd.f32 %v1908_v46, %v904_v22 }
 0x240   : > { %v986_v39 = vadd.f32 %v1927_v61, %v906_v36 }
 0x242   : > { %v1910_v48 = vpop.permute.xlu1 %944 }
 0x243   : > { %v987_v8 = vadd.f32 %v1910_v48, %v907_v45  ;;  %v866_v45 = vld [vmem:[%s1942_s15 + $0x60] sm:$0xff] }
 0x246   : > { %v1912_v49 = vpop.permute.xlu1 %948 }
 0x247   : > { %v1933_v63 = vpop.permute.xlu0 %950  ;;  %v989_v60 = vadd.f32 %v1912_v49, %v909_v58  ;;  %v868_v58 = vld [vmem:[%s1942_s15 + $0x70] sm:$0xff] }
 0x24a   : > { %v1914_v50 = vpop.permute.xlu1 %946 }
 0x24b   : > { %v988_v10 = vadd.f32 %v1914_v50, %v908_v0  ;;  %v1573_v0 = vmov 0.0  }
 0x24e   : > { %v1916_v52 = vpop.permute.xlu1 %952 }
 0x24f   : > { %v1945_v47 = vpop.permute.xlu0 %958  ;;  %v991_v21 = vadd.f32 %v1916_v52, %v911_v13 }
 0x252   : > { %v1918_v54 = vpop.permute.xlu1 %956 }
 0x256   : > { %v1921_v56 = vpop.permute.xlu1 %954 }
 0x25a   : > { %v1929_v62 = vpop.permute.xlu1 %960 }
 0x25e   : > { %v1936_v23 = vpop.permute.xlu1 %964 }
 0x262   : > { %v1954_v3 = vpop.permute.xlu1 %962 }
 0x266   : > { %v1963_v38 = vpop.permute.xlu1 %1142 }
 0x289   : > { %v1055_v15 = vpop.xlane.xlu0 %1054 }
 0x28a   : > { %v1056_v14 = vrot.slane %v1055_v15, 4 }
 0x28c   : > { %v1057_v30 = vadd.f32 %v1056_v14, %v1055_v15  ;;  %v913_v15 = vmul.f32 %v1550_v2, %v865_v6 }
 0x28d   : > { %v1961_v37 = vpop.permute.xlu0 %1123 }
 0x28e   : > { %v1058_v41 = vrot.slane %v1057_v30, 2  ;;  %v1129_v42 = vmul.f32 %v1961_v37, %v985_v26  ;;  %v1127_v43 = vmul.f32 %v1961_v37, %v983_v4  ;;  %v1128_v53 = vmul.f32 %v1961_v37, %v984_v34 }
 0x28f   : > { %v1126_v55 = vmul.f32 %v1961_v37, %v982_v40  ;;  %v1133_v51 = vmul.f32 %v1961_v37, %v989_v60  ;;  %v1131_v7 = vmul.f32 %v1961_v37, %v987_v8  ;;  %v1132_v61 = vmul.f32 %v1961_v37, %v988_v10 }
 0x290   : > { %v1148_v46 = vadd.f32 %v1963_v38, %v1129_v42  ;;  %v1146_v1 = vadd.f32 %v1963_v38, %v1127_v43  ;;  %v1059_v57 = vadd.f32 %v1058_v41, %v1057_v30  ;;  %v1147_v35 = vadd.f32 %v1963_v38, %v1128_v53  ;;  %v869_v30 = vld [vmem:[%s1942_s15 + $0x78] sm:$0xff]  ;;  %v1560_v41 = vpop.eup %1559 }
 0x291   : > { %v1145_v48 = vadd.f32 %v1963_v38, %v1126_v55  ;;  %v1152_v14 = vadd.f32 %v1963_v38, %v1133_v51  ;;  %v1150_v19 = vadd.f32 %v1963_v38, %v1131_v7  ;;  %v1130_v50 = vmul.f32 %v1961_v37, %v986_v39  ;;  %v1562_v44 = vpop.eup %1561 }
 0x292   : > { %1183 = vrot.lane.b32.xlu1 %v1148_v46, %s1572_s13  ;;  %1179 = vrot.lane.b32.xlu0 %v1146_v1, %s1572_s13  ;;  %v1060_v20 = vrot.slane %v1059_v57, 1  ;;  %v993_v22 = vadd.f32 %v1918_v54, %v913_v15  ;;  %v910_v4 = vmul.f32 %v1552_v9, %v862_v17  ;;  %v912_v26 = vmul.f32 %v1554_v12, %v864_v18 }
 0x293   : > { %v1151_v16 = vadd.f32 %v1963_v38, %v1132_v61  ;;  %v1149_v33 = vadd.f32 %v1963_v38, %v1130_v50  ;;  %v1135_v54 = vmul.f32 %v1961_v37, %v991_v21  ;;  %v915_v42 = vmul.f32 %v1556_v24, %v867_v28 }
 0x294   : > { %v1061_v49 = vadd.f32 %v1060_v20, %v1059_v57  ;;  %v1137_v52 = vmul.f32 %v1961_v37, %v993_v22  ;;  %v990_v34 = vadd.f32 %v1933_v63, %v910_v4  ;;  %v992_v40 = vadd.f32 %v1921_v56, %v912_v26 }
 0x295   : > { %v917_v43 = vmul.f32 %v1558_v27, %v869_v30  ;;  %v1154_v25 = vadd.f32 %v1963_v38, %v1135_v54  ;;  %v995_v56 = vadd.f32 %v1929_v62, %v915_v42  ;;  %v914_v46 = vmul.f32 %v1560_v41, %v866_v45 }
 0x296   : > { %1486 = vpush %v1061_v49  ;;  %1181 = vrot.lane.b32.xlu1 %v1147_v35, %s1572_s13  ;;  %1177 = vrot.lane.b32.xlu0 %v1145_v48, %s1572_s13  ;;  %v1156_v53 = vadd.f32 %v1963_v38, %v1137_v52  ;;  %v1136_v11 = vmul.f32 %v1961_v37, %v992_v40 }
 0x297   : > { %v1134_v63 = vmul.f32 %v1961_v37, %v990_v34  ;;  %v997_v31 = vadd.f32 %v1936_v23, %v917_v43  ;;  %v916_v1 = vmul.f32 %v1562_v44, %v868_v58  ;;  %v1139_v60 = vmul.f32 %v1961_v37, %v995_v56 }
 0x298   : > { %v1155_v57 = vadd.f32 %v1963_v38, %v1136_v11  ;;  %v994_v5 = vadd.f32 %v1945_v47, %v914_v46 }
 0x299   : > { %v1153_v55 = vadd.f32 %v1963_v38, %v1134_v63  ;;  %v1141_v59 = vmul.f32 %v1961_v37, %v997_v31  ;;  %v996_v62 = vadd.f32 %v1954_v3, %v916_v1  ;;  %v1158_v8 = vadd.f32 %v1963_v38, %v1139_v60 }
 0x29a   : > { %1191 = vrot.lane.b32.xlu1 %v1152_v14, %s1572_s13  ;;  %1187 = vrot.lane.b32.xlu0 %v1150_v19, %s1572_s13  ;;  %v1138_v32 = vmul.f32 %v1961_v37, %v994_v5 }
 0x29b   : > { %v1160_v23 = vadd.f32 %v1963_v38, %v1141_v59  ;;  %v1140_v20 = vmul.f32 %v1961_v37, %v996_v62 }
 0x29c   : > { %v1157_v3 = vadd.f32 %v1963_v38, %v1138_v32 }
 0x29d   : > { %v1159_v47 = vadd.f32 %v1963_v38, %v1140_v20 }
 0x29e   : > { %1189 = vrot.lane.b32.xlu1 %v1151_v16, %s1572_s13  ;;  %1185 = vrot.lane.b32.xlu0 %v1149_v33, %s1572_s13 }
 0x2a2   : > { %1199 = vrot.lane.b32.xlu1 %v1156_v53, %s1572_s13  ;;  %1195 = vrot.lane.b32.xlu0 %v1154_v25, %s1572_s13 }
 0x2a6   : > { %1197 = vrot.lane.b32.xlu1 %v1155_v57, %s1572_s13  ;;  %1193 = vrot.lane.b32.xlu0 %v1153_v55, %s1572_s13 }
 0x2aa   : > { %1207 = vrot.lane.b32.xlu1 %v1160_v23, %s1572_s13  ;;  %1203 = vrot.lane.b32.xlu0 %v1158_v8, %s1572_s13 }
 0x2ae   : > { %1205 = vrot.lane.b32.xlu1 %v1159_v47, %s1572_s13  ;;  %1201 = vrot.lane.b32.xlu0 %v1157_v3, %s1572_s13 }
 0x2c7   : > { %s1487_s19 = spop %1486 }
 0x2c8   : > { %v1251_v37 = vstv %s1487_s19 }
 0x2c9   : > { %1253 = vst.msk [vmem:[%s361_s18] sm:$0x1] %vm1252_vm3, %v1251_v37 }
 0x304   : > { %v1184_v38 = vpop.permute.xlu1 %1183  ;;  %v1180_v36 = vpop.permute.xlu0 %1179 }
 0x305   : > { %1229 = vst.msk [vmem:[%s1667_s21 + $0x18] sm:$0xff] %vm1225_vm4, %v1184_v38  ;;  %1227 = vst.msk [vmem:[%s1667_s21 + $0x8] sm:$0xff] %vm1225_vm4, %v1180_v36 }
 0x306   : > { %1244 = vst.msk [vmem:[%s1667_s21 + $0x1d] sm:$0x7] %vm1242_vm5, %v1573_v0  ;;  %1243 = vst.msk [vmem:[%s1667_s21 + $0xd] sm:$0x7] %vm1242_vm5, %v1573_v0 }
 0x308   : > { %v1182_v51 = vpop.permute.xlu1 %1181  ;;  %v1178_v2 = vpop.permute.xlu0 %1177 }
 0x309   : > { %1228 = vst.msk [vmem:[%s1667_s21 + $0x10] sm:$0xff] %vm1225_vm4, %v1182_v51  ;;  %1226 = vst.msk [vmem:[%s1667_s21] sm:$0xff] %vm1225_vm4, %v1178_v2 }
 0x30c   : > { %v1192_v29 = vpop.permute.xlu1 %1191  ;;  %v1188_v6 = vpop.permute.xlu0 %1187 }
 0x30d   : > { %1233 = vst.msk [vmem:[%s1667_s21 + $0x38] sm:$0xff] %vm1225_vm4, %v1192_v29  ;;  %1231 = vst.msk [vmem:[%s1667_s21 + $0x28] sm:$0xff] %vm1225_vm4, %v1188_v6 }
 0x30e   : > { %1246 = vst.msk [vmem:[%s1667_s21 + $0x3d] sm:$0x7] %vm1242_vm5, %v1573_v0  ;;  %1245 = vst.msk [vmem:[%s1667_s21 + $0x2d] sm:$0x7] %vm1242_vm5, %v1573_v0 }
 0x310   : > { %v1190_v49 = vpop.permute.xlu1 %1189  ;;  %v1186_v35 = vpop.permute.xlu0 %1185 }
 0x311   : > { %1232 = vst.msk [vmem:[%s1667_s21 + $0x30] sm:$0xff] %vm1225_vm4, %v1190_v49  ;;  %1230 = vst.msk [vmem:[%s1667_s21 + $0x20] sm:$0xff] %vm1225_vm4, %v1186_v35 }
 0x314   : > { %v1200_v48 = vpop.permute.xlu1 %1199  ;;  %v1196_v7 = vpop.permute.xlu0 %1195 }
 0x315   : > { %1237 = vst.msk [vmem:[%s1667_s21 + $0x58] sm:$0xff] %vm1225_vm4, %v1200_v48  ;;  %1235 = vst.msk [vmem:[%s1667_s21 + $0x48] sm:$0xff] %vm1225_vm4, %v1196_v7 }
 0x316   : > { %1248 = vst.msk [vmem:[%s1667_s21 + $0x5d] sm:$0x7] %vm1242_vm5, %v1573_v0  ;;  %1247 = vst.msk [vmem:[%s1667_s21 + $0x4d] sm:$0x7] %vm1242_vm5, %v1573_v0 }
 0x318   : > { %v1198_v9 = vpop.permute.xlu1 %1197  ;;  %v1194_v39 = vpop.permute.xlu0 %1193 }
 0x319   : > { %1236 = vst.msk [vmem:[%s1667_s21 + $0x50] sm:$0xff] %vm1225_vm4, %v1198_v9  ;;  %1234 = vst.msk [vmem:[%s1667_s21 + $0x40] sm:$0xff] %vm1225_vm4, %v1194_v39 }
 0x31c   : > { %v1208_v10 = vpop.permute.xlu1 %1207  ;;  %v1204_v12 = vpop.permute.xlu0 %1203 }
 0x31d   : > { %1241 = vst.msk [vmem:[%s1667_s21 + $0x78] sm:$0xff] %vm1225_vm4, %v1208_v10  ;;  %1239 = vst.msk [vmem:[%s1667_s21 + $0x68] sm:$0xff] %vm1225_vm4, %v1204_v12 }
 0x31e   : > { %1250 = vst.msk [vmem:[%s1667_s21 + $0x7d] sm:$0x7] %vm1242_vm5, %v1573_v0  ;;  %1249 = vst.msk [vmem:[%s1667_s21 + $0x6d] sm:$0x7] %vm1242_vm5, %v1573_v0 }
 0x320   : > { %v1206_v13 = vpop.permute.xlu1 %1205  ;;  %v1202_v15 = vpop.permute.xlu0 %1201 }
 0x321   : > { %1240 = vst.msk [vmem:[%s1667_s21 + $0x70] sm:$0xff] %vm1225_vm4, %v1206_v13  ;;  %1238 = vst.msk [vmem:[%s1667_s21 + $0x60] sm:$0xff] %vm1225_vm4, %v1202_v15 }
 0x322 PF: > { %s20_s30 = sadd.s32 1, %s1569_s30  }
 0x323   : > { %p17_p4 = scmp.ge.s32.totalorder %s20_s30, 4  }
 0x325   :  { %19 = sbr.rel (!%p17_p4) target bundleno = 1 (0x1), region = 97 }

// kernel: _lambda_.2
= control target key start
LH: loop header
LB: loop body
LE: loop exit
PB: predicated region body
PF: predicated region fallthrough
CT: control target
= control target key end

     0   :  { %s5032_s30 = smov 0   ;;  %s6281_s0 = inlined_call_operand.vmem [shape: f32[2,8,16,4], index: 0, kind: input, shape index: {}]   ;;  %s6282_s1 = inlined_call_operand.vmem [shape: f32[2,8,16,4], index: 1, kind: input, shape index: {}]   ;;  %s6283_s2 = inlined_call_operand.vmem [shape: f32[3,12,4], index: 2, kind: input, shape index: {}]   ;;  %s6284_s3 = inlined_call_operand.vmem [shape: f32[1,4], index: 3, kind: input, shape index: {}]   ;;  %s6285_s4 = inlined_call_operand.vmem [shape: f32[3,12,8], index: 4, kind: input, shape index: {}]   ;;  %s6286_s5 = inlined_call_operand.vmem [shape: f32[1,8], index: 5, kind: input, shape index: {}]   ;;  %s6287_s6 = inlined_call_operand.vmem [shape: f32[1,8], index: 6, kind: input, shape index: {}]   ;;  %s6288_s7 = inlined_call_operand.vmem [shape: f32[1,8], index: 7, kind: input, shape index: {}]   ;;  %s6289_s8 = inlined_call_operand.vmem [shape: f32[2,8,16,8], index: 8, kind: output, shape index: {0}]   ;;  %s6290_s9 = inlined_call_operand.vmem [shape: f32[2,1,1], index: 9, kind: output, shape index: {1}]  }
   0x1 LB: > { %s4066_s10 = sadd.s32 4294967295, %s4975_s30   ;;  %p4070_p0 = scmp.ge.s32.totalorder %s4975_s30, 1  ;;  %s4975_s30 = sphi %s5032_s30, %s20_s30  }
   0x2   : > { %p300_p1 = scmp.lt.s32.totalorder %s4975_s30, 3 }
   0x4   : > { %p301_p2 = pnand %p4070_p0, %p300_p1 }
   0x5   : > { %p344_p3 = scmp.lt.s32.totalorder (!%p301_p2), %s4066_s10, 1  ;;  %vm475_vm0 = vcmask (!%p301_p2), 24576   ;;  %v4977_v0 = vmov (!%p301_p2), 0.0   ;;  %vm616_vm1 = vcmask (!%p301_p2), 90176   ;;  %v5077_v1 = vld [vmem:[%s6283_s2 + $0x10] sm:$0xff] (!%p301_p2)  ;;  %vm672_vm2 = vcmask (!%p301_p2), 1043456  }
   0x6   : > { %304 = sbr.rel (%p301_p2) target bundleno = 1149 (0x47d), region = 52  ;;  %631 = vst.msk [vmem:[#allocation3 + $0x10] sm:$0x1] (!%p301_p2), %vm475_vm0, %v4977_v0  ;;  %632 = vst.msk [vmem:[#allocation3 + $0x20] sm:$0x1] (!%p301_p2), %vm475_vm0, %v4977_v0  ;;  %vm4978_vm3 = vmmov (!%p301_p2), 1  }
   0x7   : > { %633 = vst.msk [vmem:[#allocation3 + $0x30] sm:$0x1] (!%p301_p2), %vm475_vm0, %v4977_v0  ;;  %634 = vst.msk [vmem:[#allocation3 + $0x40] sm:$0x1] (!%p301_p2), %vm475_vm0, %v4977_v0  ;;  %v4078_v2 = vld [vmem:[%s6283_s2 + $0x18] sm:$0xf] (!%p301_p2) }
   0x8   : > { %635 = vst.msk [vmem:[#allocation3 + $0x50] sm:$0x1] (!%p301_p2), %vm475_vm0, %v4977_v0  ;;  %636 = vst.msk [vmem:[#allocation3 + $0x60] sm:$0x1] (!%p301_p2), %vm475_vm0, %v4977_v0  ;;  %v4676_v3 = vpack.c.bf16 (!%p301_p2), %v4078_v2, %v5077_v1  ;;  %s4979_s19 = smov (!%p301_p2), 4   ;;  %s4980_s20 = smov (!%p301_p2), 8  }
   0x9   : > { %637 = vst.msk [vmem:[#allocation3 + $0x70] sm:$0x1] (!%p301_p2), %vm475_vm0, %v4977_v0  ;;  %638 = vst.msk [vmem:[#allocation3 + $0x80] sm:$0x1] (!%p301_p2), %vm475_vm0, %v4977_v0  ;;  %vm371_vm5 = vcmask (!%p301_p2), 97280   ;;  %v5147_v14 = vld [vmem:[%s6283_s2] sm:$0xff] (!%p301_p2) }
   0xa   : > { %639 = vst.msk [vmem:[#allocation3 + $0x1f] sm:$0x1] (!%p301_p2), %vm616_vm1, %v4977_v0  ;;  %640 = vst.msk [vmem:[#allocation3 + $0x2f] sm:$0x1] (!%p301_p2), %vm616_vm1, %v4977_v0  ;;  %v4098_v13 = vld [vmem:[%s6283_s2 + $0x18] sm:$0xf] (!%p301_p2) }
   0xb   : > { %641 = vst.msk [vmem:[#allocation3 + $0x3f] sm:$0x1] (!%p301_p2), %vm616_vm1, %v4977_v0  ;;  %642 = vst.msk [vmem:[#allocation3 + $0x4f] sm:$0x1] (!%p301_p2), %vm616_vm1, %v4977_v0  ;;  %v652_v15 = vld [vmem:[%s6283_s2 + $0x8] sm:$0xf] (!%p301_p2)  ;;  %v4694_v16 = vpack.c.bf16 (!%p301_p2), %v4098_v13, %v5077_v1 }
   0xc   : > { %643 = vst.msk [vmem:[#allocation3 + $0x5f] sm:$0x1] (!%p301_p2), %vm616_vm1, %v4977_v0  ;;  %644 = vst.msk [vmem:[#allocation3 + $0x6f] sm:$0x1] (!%p301_p2), %vm616_vm1, %v4977_v0  ;;  %v5156_v19 = vpack.c.bf16 (!%p301_p2), %v652_v15, %v5147_v14  ;;  %v1041_v22 = vld [vmem:[%s6283_s2 + $0x8] sm:$0xf] (!%p301_p2) }
   0xd   : > { %s6294_s10 = smov (!%p344_p3, %s4066_s10), 1  ;;  %645 = vst.msk [vmem:[#allocation3 + $0x7f] sm:$0x1] %vm616_vm1, %v4977_v0  ;;  %646 = vst.msk [vmem:[#allocation3 + $0x8f] sm:$0x1] %vm616_vm1, %v4977_v0  ;;  %v5179_v25 = vpack.c.bf16 %v1041_v22, %v5147_v14  ;;  %vm458_vm6 = vcmask 64544  }
   0xe   : > { %s5084_s15 = sshll.u32 %s6294_s10, 7  ;;  %vm5086_vm4 = vmpackc.low %vm672_vm2, %vm4978_vm3  ;;  %372 = vst.msk [vmem:[#allocation2] sm:$0xff] %vm371_vm5, %v4977_v0  ;;  %vm500_vm7 = vcmask 31744   ;;  %vm502_vm8 = vcmask 30720   ;;  %vm598_vm9 = vcmask 97344   ;;  %vm600_vm10 = vcmask 96320   ;;  %s361_s17 = scalar_lea.vmem %s6290_s9, %s6294_s10 }
   0xf   : > { %s5094_s18 = scalar_lea.vmem %s6281_s0, %s5084_s15  ;;  %4678 = vmatprep.subr.msk.bf16.mxu0 %vm5086_vm4, %v4676_v3  ;;  %373 = vst.msk [vmem:[#allocation2 + $0x8] sm:$0xff] %vm371_vm5, %v4977_v0  ;;  %375 = vst.msk [vmem:[#allocation2 + $0x90] sm:$0xff] %vm371_vm5, %v4977_v0  ;;  %4696 = vmatprep.subr.msk.bf16.mxu1 %vm5086_vm4, %v4694_v16  ;;  %v5261_v53 = vld [vmem:[%s6283_s2 + $0x20] sm:$0xff]  ;;  %v4090_v54 = vld [vmem:[%s6283_s2 + $0x28] sm:$0xf]  ;;  %vm1031_vm12 = vcmask 97345   ;;  %s6028_s26 = scalar_lea.vmem %s6289_s8, %s5084_s15 }
  0x10   : > { %v5099_v5 = vld [vmem:[%s5094_s18] sm:$0xff]  ;;  %4681 = vmatpush3.bf16.msk.msra.mxu0 %vm5086_vm4, %v4676_v3  ;;  %v378_v7 = vld [vmem:[%s5094_s18 + $0x8] sm:$0xff]  ;;  %376 = vst.msk [vmem:[#allocation2 + $0x98] sm:$0xff] %vm371_vm5, %v4977_v0  ;;  %625 = vst.msk [vmem:[#allocation3] sm:$0xff] %vm371_vm5, %v4977_v0  ;;  %4699 = vmatpush3.bf16.msk.msra.mxu1 %vm5086_vm4, %v4694_v16  ;;  %v4688_v59 = vpack.c.bf16 %v4090_v54, %v5261_v53  ;;  %s4981_s16 = smov 124   ;;  %s6050_s29 = scalar_lea.vmem %s6282_s1, %s5084_s15  ;;  %vm3972_vm13 = vcmask 0  }
  0x11   : > { %v518_v6 = vld [vmem:[%s5094_s18 + $0x1] sm:$0xff]  ;;  %409 = vrot.lane.b32.xlu0 %v5099_v5, %s4979_s19  ;;  %v519_v8 = vld [vmem:[%s5094_s18 + $0x9] sm:$0x7f]  ;;  %626 = vst.msk [vmem:[#allocation3 + $0x8] sm:$0xff] %vm371_vm5, %v4977_v0  ;;  %628 = vst.msk [vmem:[#allocation3 + $0x90] sm:$0xff] %vm371_vm5, %v4977_v0  ;;  %4684 = vmatprep.subr.msk.bf16.mxu0 %vm5086_vm4, %v5156_v19  ;;  %vm2633_vm14 = vcmask 59392  }
  0x12   : > { %550 = vrot.lane.b32.xlu1 %v518_v6, %s4980_s20  ;;  %629 = vst.msk [vmem:[#allocation3 + $0x98] sm:$0xff] %vm371_vm5, %v4977_v0  ;;  %v5128_v9 = vld [vmem:[%s5094_s18 + $0x10] sm:$0xff]  ;;  %v380_v10 = vld [vmem:[%s5094_s18 + $0x18] sm:$0xff]  ;;  %v5135_v11 = vld [vmem:[%s5094_s18 + $0x20] sm:$0xff]  ;;  %4702 = vmatprep.subr.msk.bf16.mxu1 %vm5086_vm4, %v5179_v25 }
  0x13   : > { %v382_v12 = vld [vmem:[%s5094_s18 + $0x28] sm:$0xff]  ;;  %v520_v17 = vld [vmem:[%s5094_s18 + $0x11] sm:$0xff]  ;;  %v521_v20 = vld [vmem:[%s5094_s18 + $0x19] sm:$0x7f] }
  0x14   : > { %v522_v18 = vld [vmem:[%s5094_s18 + $0x21] sm:$0xff]  ;;  %v523_v21 = vld [vmem:[%s5094_s18 + $0x29] sm:$0x7f]  ;;  %v5175_v23 = vld [vmem:[%s5094_s18 + $0x30] sm:$0xff] }
  0x15   : > { %411 = vrot.lane.b32.xlu0 %v378_v7, %s4979_s19  ;;  %v384_v24 = vld [vmem:[%s5094_s18 + $0x38] sm:$0xff]  ;;  %v5192_v28 = vld [vmem:[%s5094_s18 + $0x40] sm:$0xff]  ;;  %v386_v29 = vld [vmem:[%s5094_s18 + $0x48] sm:$0xff] }
  0x16   : > { %552 = vrot.lane.b32.xlu1 %v519_v8, %s4980_s20  ;;  %v524_v26 = vld [vmem:[%s5094_s18 + $0x31] sm:$0xff]  ;;  %v525_v27 = vld [vmem:[%s5094_s18 + $0x39] sm:$0x7f]  ;;  %v526_v30 = vld [vmem:[%s5094_s18 + $0x41] sm:$0xff] }
  0x17   : > { %v527_v31 = vld [vmem:[%s5094_s18 + $0x49] sm:$0x7f]  ;;  %v5203_v32 = vld [vmem:[%s5094_s18 + $0x50] sm:$0xff]  ;;  %v388_v33 = vld [vmem:[%s5094_s18 + $0x58] sm:$0xff] }
  0x18   : > { %v5210_v34 = vld [vmem:[%s5094_s18 + $0x60] sm:$0xff]  ;;  %v390_v35 = vld [vmem:[%s5094_s18 + $0x68] sm:$0xff]  ;;  %v528_v36 = vld [vmem:[%s5094_s18 + $0x51] sm:$0xff] }
  0x19   : > { %413 = vrot.lane.b32.xlu0 %v5128_v9, %s4979_s19  ;;  %v530_v37 = vld [vmem:[%s5094_s18 + $0x61] sm:$0xff]  ;;  %v529_v38 = vld [vmem:[%s5094_s18 + $0x59] sm:$0x7f]  ;;  %v531_v39 = vld [vmem:[%s5094_s18 + $0x69] sm:$0x7f] }
  0x1a   : > { %415 = vrot.lane.b32.xlu1 %v380_v10, %s4979_s19  ;;  %v5225_v40 = vld [vmem:[%s5094_s18 + $0x70] sm:$0xff]  ;;  %v392_v41 = vld [vmem:[%s5094_s18 + $0x78] sm:$0xff]  ;;  %v485_v46 = vld [vmem:[%s5094_s18 + $0x8] sm:$0x7f] }
  0x1b   : > { %v532_v42 = vld [vmem:[%s5094_s18 + $0x71] sm:$0xff]  ;;  %v533_v43 = vld [vmem:[%s5094_s18 + $0x79] sm:$0x7f]  ;;  %v489_v52 = vld [vmem:[%s5094_s18 + $0x28] sm:$0x7f] }
  0x1c   : > { %v487_v49 = vld [vmem:[%s5094_s18 + $0x18] sm:$0x7f]  ;;  %v4110_v8 = vld [vmem:[%s6283_s2 + $0x28] sm:$0xf]  ;;  %v5879_v4 = vld [vmem:[%s6286_s5] ss:$0 sm:$0xff] }
  0x1d   : > { %417 = vrot.lane.b32.xlu0 %v5135_v11, %s4979_s19  ;;  %v491_v2 = vld [vmem:[%s5094_s18 + $0x38] sm:$0x7f]  ;;  %v4706_v10 = vpack.c.bf16 %v4110_v8, %v5261_v53 }
  0x1e   : > { %419 = vrot.lane.b32.xlu1 %v382_v12, %s4979_s19  ;;  %v4117_v16 = vld [vmem:[%s6283_s2 + $0x18] sm:$0xf] }
  0x21   : > { %554 = vrot.lane.b32.xlu0 %v520_v17, %s4980_s20  ;;  %v648_v17 = vld [vmem:[#allocation2 + $0x8] sm:$0xff] }
  0x22   : > { %558 = vrot.lane.b32.xlu1 %v522_v18, %s4980_s20  ;;  %v493_v18 = vld [vmem:[%s5094_s18 + $0x48] sm:$0x7f] }
  0x25   : > { %556 = vrot.lane.b32.xlu0 %v521_v20, %s4980_s20 }
  0x26   : > { %560 = vrot.lane.b32.xlu1 %v523_v21, %s4980_s20 }
  0x29   : > { %421 = vrot.lane.b32.xlu0 %v5175_v23, %s4979_s19 }
  0x2a   : > { %423 = vrot.lane.b32.xlu1 %v384_v24, %s4979_s19 }
  0x2d   : > { %562 = vrot.lane.b32.xlu0 %v524_v26, %s4980_s20  ;;  %v4136_v26 = vld [vmem:[%s6283_s2 + $0x18] sm:$0xf] }
  0x2e   : > { %564 = vrot.lane.b32.xlu1 %v525_v27, %s4980_s20  ;;  %v1418_v27 = vld [vmem:[%s6283_s2 + $0x8] sm:$0xf] }
  0x31   : > { %425 = vrot.lane.b32.xlu0 %v5192_v28, %s4979_s19 }
  0x32   : > { %427 = vrot.lane.b32.xlu1 %v386_v29, %s4979_s19 }
  0x35   : > { %566 = vrot.lane.b32.xlu0 %v526_v30, %s4980_s20 }
  0x36   : > { %568 = vrot.lane.b32.xlu1 %v527_v31, %s4980_s20  ;;  %v4730_v31 = vpack.c.bf16 %v4136_v26, %v5077_v1 }
  0x39   : > { %429 = vrot.lane.b32.xlu0 %v5203_v32, %s4979_s19 }
  0x3a   : > { %431 = vrot.lane.b32.xlu1 %v388_v33, %s4979_s19  ;;  %v4718_v33 = vpack.c.bf16 %v1418_v27, %v5147_v14 }
  0x3d   : > { %433 = vrot.lane.b32.xlu0 %v5210_v34, %s4979_s19 }
  0x3e   : > { %435 = vrot.lane.b32.xlu1 %v390_v35, %s4979_s19 }
  0x41   : > { %570 = vrot.lane.b32.xlu0 %v528_v36, %s4980_s20 }
  0x42   : > { %574 = vrot.lane.b32.xlu1 %v530_v37, %s4980_s20  ;;  %v4129_v37 = vld [vmem:[%s6283_s2 + $0x28] sm:$0xf] }
  0x45   : > { %572 = vrot.lane.b32.xlu0 %v529_v38, %s4980_s20  ;;  %v1795_v38 = vld [vmem:[%s6283_s2 + $0x8] sm:$0xf] }
  0x46   : > { %576 = vrot.lane.b32.xlu1 %v531_v39, %s4980_s20 }
  0x49   : > { %437 = vrot.lane.b32.xlu0 %v5225_v40, %s4979_s19 }
  0x4a   : > { %439 = vrot.lane.b32.xlu1 %v392_v41, %s4979_s19 }
  0x4d   : > { %578 = vrot.lane.b32.xlu0 %v532_v42, %s4980_s20 }
  0x4e   : > { %580 = vrot.lane.b32.xlu1 %v533_v43, %s4980_s20  ;;  %v4724_v43 = vpack.c.bf16 %v4129_v37, %v5261_v53  ;;  %v2641_v37 = vld [vmem:[%s6285_s4 + $0x8] sm:$0xf] }
  0x83   : > { %v410_v44 = vpop.permute.xlu0 %409 }
  0x84   : > { %v551_v45 = vpop.permute.xlu1 %550  ;;  %459 = vst.msk [vmem:[#allocation2 + $0x10] sm:$0xff] %vm458_vm6, %v410_v44 }
  0x85   : > { %476 = vst.msk [vmem:[#allocation2 + $0x10] sm:$0x1] %vm475_vm0, %v4977_v0 }
  0x87   : > { %v412_v47 = vpop.permute.xlu0 %411 }
  0x88   : > { %v553_v48 = vpop.permute.xlu1 %552  ;;  %460 = vst.msk [vmem:[#allocation2 + $0x18] sm:$0xff] %vm458_vm6, %v412_v47 }
  0x89   : > { %501 = vst.msk [vmem:[#allocation2 + $0x11] sm:$0xff] %vm500_vm7, %v5099_v5 }
  0x8a   : > { %503 = vst.msk [vmem:[#allocation2 + $0x19] sm:$0x7f] %vm502_vm8, %v485_v46 }
  0x8b   : > { %599 = vst.msk [vmem:[#allocation2 + $0x10] sm:$0xff] %vm598_vm9, %v551_v45  ;;  %v414_v50 = vpop.permute.xlu0 %413 }
  0x8c   : > { %617 = vst.msk [vmem:[#allocation2 + $0x1f] sm:$0x1] %vm616_vm1, %v4977_v0  ;;  %v416_v51 = vpop.permute.xlu1 %415 }
  0x8d   : > { %601 = vst.msk [vmem:[#allocation2 + $0x18] sm:$0x7f] %vm600_vm10, %v553_v48 }
  0x8e   : > { %461 = vst.msk [vmem:[#allocation2 + $0x20] sm:$0xff] %vm458_vm6, %v414_v50  ;;  %462 = vst.msk [vmem:[#allocation2 + $0x28] sm:$0xff] %vm458_vm6, %v416_v51  ;;  %v4148_v50 = vld [vmem:[%s6283_s2 + $0x28] sm:$0xf] }
  0x8f   : > { %477 = vst.msk [vmem:[#allocation2 + $0x20] sm:$0x1] %vm475_vm0, %v4977_v0  ;;  %v418_v55 = vpop.permute.xlu0 %417  ;;  %v4742_v51 = vpack.c.bf16 %v4148_v50, %v5261_v53 }
  0x90   : > { %504 = vst.msk [vmem:[#allocation2 + $0x21] sm:$0xff] %vm500_vm7, %v5128_v9  ;;  %v420_v56 = vpop.permute.xlu1 %419  ;;  %v647_v9 = vld [vmem:[#allocation2] sm:$0xff] }
  0x91   : > { %505 = vst.msk [vmem:[#allocation2 + $0x29] sm:$0x7f] %vm502_vm8, %v487_v49 }
  0x92   : > { %618 = vst.msk [vmem:[#allocation2 + $0x2f] sm:$0x1] %vm616_vm1, %v4977_v0  ;;  %v653_v57 = vld [vmem:[#allocation2 + $0x10] sm:$0xff] }
  0x93   : > { %463 = vst.msk [vmem:[#allocation2 + $0x30] sm:$0xff] %vm458_vm6, %v418_v55  ;;  %464 = vst.msk [vmem:[#allocation2 + $0x38] sm:$0xff] %vm458_vm6, %v420_v56  ;;  %4440 = vmatprep.mubr.msk.f32.mxu0 %vm371_vm5, %v653_v57  ;;  %v555_v60 = vpop.permute.xlu0 %554 }
  0x94   : > { %478 = vst.msk [vmem:[#allocation2 + $0x30] sm:$0x1] %vm475_vm0, %v4977_v0  ;;  %v5273_v58 = vld [vmem:[#allocation2 + $0x18] sm:$0xff]  ;;  %v559_v61 = vpop.permute.xlu1 %558 }
  0x95   : > { %506 = vst.msk [vmem:[#allocation2 + $0x31] sm:$0xff] %vm500_vm7, %v5135_v11  ;;  %4441 = vmatmul.mubr.msk.f32.vlgmr.msra.gmra.mrb[0].mxu0 %vm371_vm5, %v5273_v58 }
  0x96   : > { %507 = vst.msk [vmem:[#allocation2 + $0x39] sm:$0x7f] %vm502_vm8, %v489_v52  ;;  %4687 = vmatpush3.bf16.msk.msra.mxu0 %vm5086_vm4, %v5156_v19  ;;  %v4712_v19 = vpack.c.bf16 %v4117_v16, %v5077_v1  ;;  %v497_v1 = vld [vmem:[%s5094_s18 + $0x68] sm:$0x7f] }
  0x97   : > { %619 = vst.msk [vmem:[#allocation2 + $0x3f] sm:$0x1] %vm616_vm1, %v4977_v0  ;;  %4690 = vmatprep.subr.msk.bf16.mxu0 %vm5086_vm4, %v4688_v59  ;;  %v557_v62 = vpop.permute.xlu0 %556 }
  0x98   : > { %602 = vst.msk [vmem:[#allocation2 + $0x20] sm:$0xff] %vm598_vm9, %v555_v60  ;;  %604 = vst.msk [vmem:[#allocation2 + $0x30] sm:$0xff] %vm598_vm9, %v559_v61  ;;  %v561_v63 = vpop.permute.xlu1 %560  ;;  %v5481_v61 = vld [vmem:[%s6284_s3] ss:$0 sm:$0xff] }
  0x99   : > { %603 = vst.msk [vmem:[#allocation2 + $0x28] sm:$0x7f] %vm600_vm10, %v557_v62  ;;  %605 = vst.msk [vmem:[#allocation2 + $0x38] sm:$0x7f] %vm600_vm10, %v561_v63  ;;  %v5488_v63 = vld [vmem:[%s6285_s4 + $0x10] sm:$0xff] }
  0x9b   : > { %v422_v3 = vpop.permute.xlu0 %421 }
  0x9c   : > { %v424_v5 = vpop.permute.xlu1 %423  ;;  %465 = vst.msk [vmem:[#allocation2 + $0x40] sm:$0xff] %vm458_vm6, %v422_v3 }
  0x9d   : > { %466 = vst.msk [vmem:[#allocation2 + $0x48] sm:$0xff] %vm458_vm6, %v424_v5 }
  0x9e   : > { %479 = vst.msk [vmem:[#allocation2 + $0x40] sm:$0x1] %vm475_vm0, %v4977_v0 }
  0x9f   : > { %v655_v6 = vld [vmem:[#allocation2 + $0x20] sm:$0xff]  ;;  %v5291_v7 = vld [vmem:[#allocation2 + $0x30] sm:$0xff]  ;;  %508 = vst.msk [vmem:[#allocation2 + $0x41] sm:$0xff] %vm500_vm7, %v5175_v23  ;;  %v563_v11 = vpop.permute.xlu0 %562 }
  0xa0   : > { %4443 = vmatprep.mubr.msk.f32.mxu0 %vm371_vm5, %v655_v6  ;;  %4470 = vmatprep.mubr.msk.f32.mxu1 %vm371_vm5, %v5291_v7  ;;  %509 = vst.msk [vmem:[#allocation2 + $0x49] sm:$0x7f] %vm502_vm8, %v491_v2  ;;  %v565_v12 = vpop.permute.xlu1 %564  ;;  %v656_v13 = vld [vmem:[#allocation2 + $0x28] sm:$0xff]  ;;  %v5309_v15 = vld [vmem:[#allocation2 + $0x38] sm:$0xff] }
  0xa1   : > { %620 = vst.msk [vmem:[#allocation2 + $0x4f] sm:$0x1] %vm616_vm1, %v4977_v0  ;;  %4444 = vmatmul.mubr.msk.f32.gmra.mrb[2].mxu0 %vm371_vm5, %v656_v13  ;;  %4471 = vmatmul.mubr.msk.f32.vlgmr.msra.gmra.mrb[0].mxu1 %vm371_vm5, %v5309_v15  ;;  %v4155_v2 = vld [vmem:[%s6285_s4 + $0x18] sm:$0xf] }
  0xa2   : > { %606 = vst.msk [vmem:[#allocation2 + $0x40] sm:$0xff] %vm598_vm9, %v563_v11  ;;  %4450 = vmatprep.mubr.msk.f32.mxu0 %vm371_vm5, %v647_v9  ;;  %4705 = vmatpush3.bf16.msk.msra.mxu1 %vm5086_vm4, %v5179_v25  ;;  %v4748_v5 = vpack.c.bf16 %v4155_v2, %v5488_v63 }
  0xa3   : > { %607 = vst.msk [vmem:[#allocation2 + $0x48] sm:$0x7f] %vm600_vm10, %v565_v12  ;;  %4708 = vmatprep.subr.msk.bf16.mxu1 %vm5086_vm4, %v4706_v10  ;;  %v426_v20 = vpop.permute.xlu0 %425 }
  0xa4   : > { %v428_v21 = vpop.permute.xlu1 %427  ;;  %467 = vst.msk [vmem:[#allocation2 + $0x50] sm:$0xff] %vm458_vm6, %v426_v20 }
  0xa5   : > { %468 = vst.msk [vmem:[#allocation2 + $0x58] sm:$0xff] %vm458_vm6, %v428_v21  ;;  %4451 = vmatmul.mubr.msk.f32.vlgmr.msra.gmra.mrb[0].mxu0 %vm371_vm5, %v648_v17 }
  0xa6   : > { %480 = vst.msk [vmem:[#allocation2 + $0x50] sm:$0x1] %vm475_vm0, %v4977_v0  ;;  %4453 = vmatprep.mubr.msk.f32.mxu0 %vm371_vm5, %v653_v57  ;;  %4693 = vmatpush3.bf16.msk.msra.mxu0 %vm5086_vm4, %v4688_v59  ;;  %v2006_v57 = vld [vmem:[#allocation2 + $0x90] sm:$0xff]  ;;  %v366_v59 = vlaneseq }
  0xa7   : > { %510 = vst.msk [vmem:[#allocation2 + $0x51] sm:$0xff] %vm500_vm7, %v5192_v28  ;;  %4714 = vmatprep.subr.msk.bf16.mxu0 %vm5086_vm4, %v4712_v19  ;;  %v567_v22 = vpop.permute.xlu0 %566  ;;  %v495_v28 = vld [vmem:[%s5094_s18 + $0x58] sm:$0x7f] }
  0xa8   : > { %511 = vst.msk [vmem:[#allocation2 + $0x59] sm:$0x7f] %vm502_vm8, %v493_v18  ;;  %v569_v23 = vpop.permute.xlu1 %568  ;;  %v367_v60 = vshrl.u32 %v366_v59, 7 }
  0xa9   : > { %621 = vst.msk [vmem:[#allocation2 + $0x5f] sm:$0x1] %vm616_vm1, %v4977_v0  ;;  %v5342_v24 = vld [vmem:[#allocation2 + $0x40] sm:$0xff]  ;;  %4454 = vmatmul.mubr.msk.f32.gmra.mrb[2].mxu0 %vm371_vm5, %v5273_v58  ;;  %v2007_v58 = vld [vmem:[#allocation2 + $0x98] sm:$0xff] }
  0xaa   : > { %v5344_v25 = vld [vmem:[#allocation2 + $0x48] sm:$0xff]  ;;  %608 = vst.msk [vmem:[#allocation2 + $0x50] sm:$0xff] %vm598_vm9, %v567_v22  ;;  %4473 = vmatprep.mubr.msk.f32.mxu1 %vm371_vm5, %v5342_v24  ;;  %4460 = vmatprep.mubr.msk.f32.mxu0 %vm371_vm5, %v655_v6  ;;  %v5483_v62 = vadd.s32 8, %v367_v60 }
  0xab   : > { %609 = vst.msk [vmem:[#allocation2 + $0x58] sm:$0x7f] %vm600_vm10, %v569_v23  ;;  %4474 = vmatmul.mubr.msk.f32.gmra.mrb[2].mxu1 %vm371_vm5, %v5344_v25  ;;  %v430_v29 = vpop.permute.xlu0 %429 }
  0xac   : > { %4480 = vmatprep.mubr.msk.f32.mxu1 %vm371_vm5, %v655_v6  ;;  %v432_v30 = vpop.permute.xlu1 %431  ;;  %469 = vst.msk [vmem:[#allocation2 + $0x60] sm:$0xff] %vm458_vm6, %v430_v29  ;;  %vm370_vm11 = vcmp.lt.s32.totalorder %v5483_v62, 13  ;;  %v5544_v29 = vld [vmem:[%s6285_s4] sm:$0xff] }
  0xad   : > { %470 = vst.msk [vmem:[#allocation2 + $0x68] sm:$0xff] %vm458_vm6, %v432_v30  ;;  %4461 = vmatmul.mubr.msk.f32.vlgmr.msra.gmra.mrb[0].mxu0 %vm371_vm5, %v656_v13  ;;  %v2172_v30 = vld [vmem:[%s6285_s4 + $0x8] sm:$0xf]  ;;  %v6001_v62 = vld [vmem:[%s6288_s7] ss:$0 sm:$0xff] }
  0xae   : > { %481 = vst.msk [vmem:[#allocation2 + $0x60] sm:$0x1] %vm475_vm0, %v4977_v0  ;;  %4463 = vmatprep.mubr.msk.f32.mxu0 %vm371_vm5, %v5291_v7  ;;  %4717 = vmatpush3.bf16.msk.msra.mxu0 %vm5086_vm4, %v4712_v19 }
  0xaf   : > { %512 = vst.msk [vmem:[#allocation2 + $0x61] sm:$0xff] %vm500_vm7, %v5203_v32  ;;  %4481 = vmatmul.mubr.msk.f32.vlgmr.msra.gmra.mrb[0].mxu1 %vm371_vm5, %v656_v13  ;;  %v434_v35 = vpop.permute.xlu0 %433  ;;  %4720 = vmatprep.subr.msk.bf16.mxu0 %vm5086_vm4, %v4718_v33 }
  0xb0   : > { %513 = vst.msk [vmem:[#allocation2 + $0x69] sm:$0x7f] %vm502_vm8, %v495_v28  ;;  %4711 = vmatpush3.bf16.msk.msra.mxu1 %vm5086_vm4, %v4706_v10  ;;  %4483 = vmatprep.mubr.msk.f32.mxu1 %vm371_vm5, %v5291_v7  ;;  %v436_v36 = vpop.permute.xlu1 %435 }
  0xb1   : > { %622 = vst.msk [vmem:[#allocation2 + $0x6f] sm:$0x1] %vm616_vm1, %v4977_v0  ;;  %4732 = vmatprep.subr.msk.bf16.mxu1 %vm5086_vm4, %v4730_v31  ;;  %4464 = vmatmul.mubr.msk.f32.gmra.mrb[2].mxu0 %vm371_vm5, %v5309_v15  ;;  %v1252_v32 = vld [vmem:[#allocation2 + $0x50] sm:$0xff] }
  0xb2   : > { %471 = vst.msk [vmem:[#allocation2 + $0x70] sm:$0xff] %vm458_vm6, %v434_v35  ;;  %472 = vst.msk [vmem:[#allocation2 + $0x78] sm:$0xff] %vm458_vm6, %v436_v36  ;;  %4500 = vmatprep.mubr.msk.f32.mxu0 %vm371_vm5, %v1252_v32  ;;  %v1253_v42 = vld [vmem:[#allocation2 + $0x58] sm:$0xff] }
  0xb3   : > { %482 = vst.msk [vmem:[#allocation2 + $0x70] sm:$0x1] %vm475_vm0, %v4977_v0  ;;  %4484 = vmatmul.mubr.msk.f32.gmra.mrb[2].mxu1 %vm371_vm5, %v5309_v15  ;;  %v571_v39 = vpop.permute.xlu0 %570  ;;  %v4177_v15 = vld [vmem:[%s6285_s4 + $0x18] sm:$0xf] }
  0xb4   : > { %514 = vst.msk [vmem:[#allocation2 + $0x71] sm:$0xff] %vm500_vm7, %v5210_v34  ;;  %4490 = vmatprep.mubr.msk.f32.mxu1 %vm371_vm5, %v5342_v24  ;;  %v575_v41 = vpop.permute.xlu1 %574  ;;  %v4736_v34 = vpack.c.bf16 %v1795_v38, %v5147_v14  ;;  %v499_v14 = vld [vmem:[%s5094_s18 + $0x78] sm:$0x7f]  ;;  %v4766_v17 = vpack.c.bf16 %v4177_v15, %v5488_v63  ;;  %v5575_v38 = vpack.c.bf16 %v2641_v37, %v5544_v29  ;;  %v2167_v37 = vld [vmem:[#allocation3] sm:$0xff] }
  0xb5   : > { %515 = vst.msk [vmem:[#allocation2 + $0x79] sm:$0x7f] %vm502_vm8, %v497_v1  ;;  %4501 = vmatmul.mubr.msk.f32.vlgmr.msra.gmra.mrb[4].mxu0 %vm371_vm5, %v1253_v42 }
  0xb6   : > { %623 = vst.msk [vmem:[#allocation2 + $0x7f] sm:$0x1] %vm616_vm1, %v4977_v0  ;;  %4723 = vmatpush3.bf16.msk.msra.mxu0 %vm5086_vm4, %v4718_v33  ;;  %v5552_v33 = vpack.c.bf16 %v2172_v30, %v5544_v29 }
  0xb7   : > { %610 = vst.msk [vmem:[#allocation2 + $0x60] sm:$0xff] %vm598_vm9, %v571_v39  ;;  %612 = vst.msk [vmem:[#allocation2 + $0x70] sm:$0xff] %vm598_vm9, %v575_v41  ;;  %4491 = vmatmul.mubr.msk.f32.vlgmr.msra.gmra.mrb[0].mxu1 %vm371_vm5, %v5344_v25  ;;  %v573_v44 = vpop.permute.xlu0 %572  ;;  %4726 = vmatprep.subr.msk.bf16.mxu0 %vm5086_vm4, %v4724_v43 }
  0xb8   : > { %4493 = vmatprep.mubr.msk.f32.mxu1 %vm371_vm5, %v1252_v32  ;;  %4735 = vmatpush3.bf16.msk.msra.mxu1 %vm5086_vm4, %v4730_v31  ;;  %v577_v45 = vpop.permute.xlu1 %576  ;;  %611 = vst.msk [vmem:[#allocation2 + $0x68] sm:$0x7f] %vm600_vm10, %v573_v44 }
  0xb9   : > { %4738 = vmatprep.subr.msk.bf16.mxu1 %vm5086_vm4, %v4736_v34  ;;  %613 = vst.msk [vmem:[#allocation2 + $0x78] sm:$0x7f] %vm600_vm10, %v577_v45 }
  0xbb   : > { %4494 = vmatmul.mubr.msk.f32.gmra.mrb[2].mxu1 %vm371_vm5, %v1253_v42  ;;  %v438_v46 = vpop.permute.xlu0 %437 }
  0xbc   : > { %v440_v47 = vpop.permute.xlu1 %439  ;;  %473 = vst.msk [vmem:[#allocation2 + $0x80] sm:$0xff] %vm458_vm6, %v438_v46 }
  0xbd   : > { %474 = vst.msk [vmem:[#allocation2 + $0x88] sm:$0xff] %vm458_vm6, %v440_v47 }
  0xbe   : > { %v1422_v48 = vld [vmem:[#allocation2 + $0x60] sm:$0xff]  ;;  %v1797_v49 = vld [vmem:[#allocation2 + $0x70] sm:$0xff]  ;;  %483 = vst.msk [vmem:[#allocation2 + $0x80] sm:$0x1] %vm475_vm0, %v4977_v0 }
  0xbf   : > { %4503 = vmatprep.mubr.msk.f32.mxu0 %vm371_vm5, %v1422_v48  ;;  %4530 = vmatprep.mubr.msk.f32.mxu1 %vm371_vm5, %v1797_v49  ;;  %516 = vst.msk [vmem:[#allocation2 + $0x81] sm:$0xff] %vm500_vm7, %v5225_v40  ;;  %v579_v52 = vpop.permute.xlu0 %578  ;;  %v1423_v55 = vld [vmem:[#allocation2 + $0x68] sm:$0xff] }
  0xc0   : > { %517 = vst.msk [vmem:[#allocation2 + $0x89] sm:$0x7f] %vm502_vm8, %v499_v14  ;;  %v581_v54 = vpop.permute.xlu1 %580  ;;  %v1798_v56 = vld [vmem:[#allocation2 + $0x78] sm:$0xff]  ;;  %4504 = vmatmul.mubr.msk.f32.gmra.mrb[6].mxu0 %vm371_vm5, %v1423_v55 }
  0xc1   : > { %624 = vst.msk [vmem:[#allocation2 + $0x8f] sm:$0x1] %vm616_vm1, %v4977_v0  ;;  %4531 = vmatmul.mubr.msk.f32.vlgmr.msra.gmra.mrb[4].mxu1 %vm371_vm5, %v1798_v56  ;;  %4510 = vmatprep.mubr.msk.f32.mxu0 %vm371_vm5, %v5342_v24 }
  0xc2   : > { %614 = vst.msk [vmem:[#allocation2 + $0x80] sm:$0xff] %vm598_vm9, %v579_v52  ;;  %4741 = vmatpush3.bf16.msk.msra.mxu1 %vm5086_vm4, %v4736_v34 }
  0xc3   : > { %615 = vst.msk [vmem:[#allocation2 + $0x88] sm:$0x7f] %vm600_vm10, %v581_v54  ;;  %4744 = vmatprep.subr.msk.bf16.mxu1 %vm5086_vm4, %v4742_v51 }
  0xc4   : > { %4511 = vmatmul.mubr.msk.f32.vlgmr.msra.gmra.mrb[4].mxu0 %vm371_vm5, %v5344_v25 }
  0xc5   : > { %4513 = vmatprep.mubr.msk.f32.mxu0 %vm371_vm5, %v1252_v32  ;;  %4729 = vmatpush3.bf16.msk.msra.mxu0 %vm5086_vm4, %v4724_v43 }
  0xc6   : > { %4750 = vmatprep.subr.msk.bf16.mxu0 %vm5086_vm4, %v4748_v5 }
  0xc8   : > { %4514 = vmatmul.mubr.msk.f32.gmra.mrb[6].mxu0 %vm371_vm5, %v1253_v42 }
  0xc9   : > { %v1799_v40 = vld [vmem:[#allocation2 + $0x80] sm:$0xff]  ;;  %4520 = vmatprep.mubr.msk.f32.mxu0 %vm371_vm5, %v1422_v48 }
  0xca   : > { %v1800_v53 = vld [vmem:[#allocation2 + $0x88] sm:$0xff]  ;;  %4533 = vmatprep.mubr.msk.f32.mxu1 %vm371_vm5, %v1799_v40 }
  0xcb   : > { %4534 = vmatmul.mubr.msk.f32.gmra.mrb[6].mxu1 %vm371_vm5, %v1800_v53 }
  0xcc   : > { %4540 = vmatprep.mubr.msk.f32.mxu1 %vm371_vm5, %v1422_v48  ;;  %4521 = vmatmul.mubr.msk.f32.vlgmr.msra.gmra.mrb[4].mxu0 %vm371_vm5, %v1423_v55 }
  0xcd   : > { %4523 = vmatprep.mubr.msk.f32.mxu0 %vm371_vm5, %v1797_v49  ;;  %4753 = vmatpush3.bf16.msk.msra.mxu0 %vm5086_vm4, %v4748_v5 }
  0xce   : > { %4756 = vmatprep.subr.msk.bf16.mxu0 %vm5086_vm4, %v5552_v33 }
  0xcf   : > { %4541 = vmatmul.mubr.msk.f32.vlgmr.msra.gmra.mrb[4].mxu1 %vm371_vm5, %v1423_v55 }
  0xd0   : > { %4543 = vmatprep.mubr.msk.f32.mxu1 %vm371_vm5, %v1797_v49  ;;  %4747 = vmatpush3.bf16.msk.msra.mxu1 %vm5086_vm4, %v4742_v51 }
  0xd1   : > { %4524 = vmatmul.mubr.msk.f32.gmra.mrb[6].mxu0 %vm371_vm5, %v1798_v56  ;;  %4768 = vmatprep.subr.msk.bf16.mxu1 %vm5086_vm4, %v4766_v17 }
  0xd3   : > { %4544 = vmatmul.mubr.msk.f32.gmra.mrb[6].mxu1 %vm371_vm5, %v1798_v56 }
  0xd4   : > { %4550 = vmatprep.mubr.msk.f32.mxu1 %vm371_vm5, %v1799_v40 }
  0xd7   : > { %4551 = vmatmul.mubr.msk.f32.vlgmr.msra.gmra.mrb[4].mxu1 %vm371_vm5, %v1800_v53 }
  0xd8   : > { %4553 = vmatprep.mubr.msk.f32.mxu1 %vm371_vm5, %v2006_v57  ;;  %4771 = vmatpush3.bf16.msk.msra.mxu1 %vm5086_vm4, %v4766_v17  ;;  %v5669_v17 = vld [vmem:[%s6285_s4 + $0x20] sm:$0xff] }
  0xd9   : > { %4774 = vmatprep.subr.msk.bf16.mxu1 %vm5086_vm4, %v5575_v38 }
  0xdb   : > { %4554 = vmatmul.mubr.msk.f32.gmra.mrb[6].mxu1 %vm371_vm5, %v2007_v58 }
 0x180   : > { %v4462_v3 = vpop.f32.mrb[0].mxu0 }
 0x181   : > { %v980_v6 = vadd.f32 %v4462_v3, %v5481_v61  ;;  %v950_v7 = vpop.f32.mrb[1].mxu0 }
 0x182   : > { %v979_v8 = vadd.f32 %v5481_v61, %v950_v7 }
 0x183   : > { %v984_v9 = vmax.f32 %v980_v6, 0.0 }
 0x184   : > { %v5501_v10 = vmax.f32 %v979_v8, 0.0  ;;  %v4465_v11 = vpop.f32.mrb[2].mxu0 }
 0x185   : > { %v960_v12 = vpop.f32.mrb[3].mxu0  ;;  %v5505_v13 = vsel %vm370_vm11, %v984_v9, 0.0  ;;  %v982_v24 = vadd.f32 %v4465_v11, %v5481_v61 }
 0x186   : > { %1001 = vrot.lane.b32.xlu1 %v5505_v13, %s4979_s19  ;;  %999 = vrot.lane.b32.xlu0 %v5501_v10, %s4979_s19  ;;  %v981_v27 = vadd.f32 %v5481_v61, %v960_v12 }
 0x187   : > { %v986_v28 = vmax.f32 %v982_v24, 0.0  ;;  %v4189_v24 = vld [vmem:[%s6285_s4 + $0x28] sm:$0xf] }
 0x188   : > { %v5549_v31 = vmax.f32 %v981_v27, 0.0  ;;  %v4778_v30 = vpack.c.bf16 %v4189_v24, %v5669_v17 }
 0x189   : > { %v5557_v35 = vsel %vm370_vm11, %v986_v28, 0.0 }
 0x18a   : > { %v4492_v16 = vpop.f32.mrb[0].mxu1  ;;  %1021 = vrot.lane.b32.xlu1 %v5505_v13, %s4980_s20  ;;  %1019 = vrot.lane.b32.xlu0 %v5501_v10, %s4980_s20 }
 0x18b   : > { %v1361_v18 = vadd.f32 %v4492_v16, %v5481_v61  ;;  %v1337_v19 = vpop.f32.mrb[1].mxu1 }
 0x18c   : > { %v1360_v20 = vadd.f32 %v5481_v61, %v1337_v19 }
 0x18d   : > { %v1365_v21 = vmax.f32 %v1361_v18, 0.0 }
 0x18e   : > { %v5525_v22 = vmax.f32 %v1360_v20, 0.0  ;;  %v4495_v23 = vpop.f32.mrb[2].mxu1 }
 0x18f   : > { %v1347_v25 = vpop.f32.mrb[3].mxu1  ;;  %v5530_v26 = vsel %vm370_vm11, %v1365_v21, 0.0  ;;  %v1363_v1 = vadd.f32 %v4495_v23, %v5481_v61 }
 0x190   : > { %1378 = vrot.lane.b32.xlu1 %v5530_v26, %s4979_s19  ;;  %1376 = vrot.lane.b32.xlu0 %v5525_v22, %s4979_s19  ;;  %v1362_v36 = vadd.f32 %v5481_v61, %v1347_v25 }
 0x191   : > { %v1367_v32 = vmax.f32 %v1363_v1, 0.0 }
 0x192   : > { %v5577_v39 = vmax.f32 %v1362_v36, 0.0 }
 0x193   : > { %v5581_v41 = vsel %vm370_vm11, %v1367_v32, 0.0 }
 0x194   : > { %1399 = vrot.lane.b32.xlu1 %v5530_v26, %s4980_s20  ;;  %1397 = vrot.lane.b32.xlu0 %v5525_v22, %s4980_s20 }
 0x198   : > { %1005 = vrot.lane.b32.xlu1 %v5557_v35, %s4979_s19  ;;  %1003 = vrot.lane.b32.xlu0 %v5549_v31, %s4979_s19 }
 0x19c   : > { %1025 = vrot.lane.b32.xlu1 %v5557_v35, %s4980_s20  ;;  %1023 = vrot.lane.b32.xlu0 %v5549_v31, %s4980_s20 }
 0x19f   : > { %v4522_v42 = vpop.f32.mrb[4].mxu0 }
 0x1a0   : > { %1382 = vrot.lane.b32.xlu1 %v5581_v41, %s4979_s19  ;;  %1380 = vrot.lane.b32.xlu0 %v5577_v39, %s4979_s19  ;;  %v1738_v43 = vadd.f32 %v4522_v42, %v5481_v61  ;;  %v1714_v34 = vpop.f32.mrb[5].mxu0 }
 0x1a1   : > { %v1737_v44 = vadd.f32 %v5481_v61, %v1714_v34 }
 0x1a2   : > { %v1742_v45 = vmax.f32 %v1738_v43, 0.0 }
 0x1a3   : > { %v5596_v14 = vmax.f32 %v1737_v44, 0.0 }
 0x1a4   : > { %1403 = vrot.lane.b32.xlu1 %v5581_v41, %s4980_s20  ;;  %1401 = vrot.lane.b32.xlu0 %v5577_v39, %s4980_s20  ;;  %v4525_v46 = vpop.f32.mrb[6].mxu0  ;;  %v5600_v48 = vsel %vm370_vm11, %v1742_v45, 0.0 }
 0x1a5   : > { %v1724_v47 = vpop.f32.mrb[7].mxu0  ;;  %v1740_v40 = vadd.f32 %v4525_v46, %v5481_v61 }
 0x1a6   : > { %v1739_v58 = vadd.f32 %v5481_v61, %v1724_v47  ;;  %v3086_v47 = vld [vmem:[%s6285_s4 + $0x8] sm:$0xf] }
 0x1a7   : > { %v1744_v59 = vmax.f32 %v1740_v40, 0.0 }
 0x1a8   : > { %1755 = vrot.lane.b32.xlu1 %v5600_v48, %s4979_s19  ;;  %1753 = vrot.lane.b32.xlu0 %v5596_v14, %s4979_s19  ;;  %v5628_v60 = vmax.f32 %v1739_v58, 0.0 }
 0x1a9   : > { %v5633_v3 = vsel %vm370_vm11, %v1744_v59, 0.0 }
 0x1aa   : > { %v4552_v49 = vpop.f32.mrb[4].mxu1 }
 0x1ab   : > { %v2115_v50 = vadd.f32 %v4552_v49, %v5481_v61  ;;  %v2091_v51 = vpop.f32.mrb[5].mxu1 }
 0x1ac   : > { %v2114_v52 = vadd.f32 %v5481_v61, %v2091_v51  ;;  %1776 = vrot.lane.b32.xlu1 %v5600_v48, %s4980_s20  ;;  %1774 = vrot.lane.b32.xlu0 %v5596_v14, %s4980_s20  ;;  %v4790_v51 = vpack.c.bf16 %v3086_v47, %v5544_v29 }
 0x1ad   : > { %v2119_v54 = vmax.f32 %v2115_v50, 0.0 }
 0x1ae   : > { %v5612_v55 = vmax.f32 %v2114_v52, 0.0  ;;  %v4555_v56 = vpop.f32.mrb[6].mxu1 }
 0x1af   : > { %v2101_v53 = vpop.f32.mrb[7].mxu1  ;;  %v5617_v57 = vsel %vm370_vm11, %v2119_v54, 0.0  ;;  %v2117_v2 = vadd.f32 %v4555_v56, %v5481_v61  ;;  %v3531_v54 = vld [vmem:[%s6285_s4 + $0x8] sm:$0xf] }
 0x1b0   : > { %2132 = vrot.lane.b32.xlu1 %v5617_v57, %s4979_s19  ;;  %2130 = vrot.lane.b32.xlu0 %v5612_v55, %s4979_s19  ;;  %v2116_v5 = vadd.f32 %v5481_v61, %v2101_v53  ;;  %v4226_v56 = vld [vmem:[%s6285_s4 + $0x28] sm:$0xf] }
 0x1b1   : > { %v2121_v6 = vmax.f32 %v2117_v2, 0.0  ;;  %v4796_v59 = vpack.c.bf16 %v4226_v56, %v5669_v17 }
 0x1b2   : > { %v5644_v7 = vmax.f32 %v2116_v5, 0.0 }
 0x1b3   : > { %v5648_v8 = vsel %vm370_vm11, %v2121_v6, 0.0 }
 0x1b4   : > { %2153 = vrot.lane.b32.xlu1 %v5617_v57, %s4980_s20  ;;  %2151 = vrot.lane.b32.xlu0 %v5612_v55, %s4980_s20 }
 0x1b8   : > { %1759 = vrot.lane.b32.xlu1 %v5633_v3, %s4979_s19  ;;  %1757 = vrot.lane.b32.xlu0 %v5628_v60, %s4979_s19 }
 0x1bc   : > { %1780 = vrot.lane.b32.xlu1 %v5633_v3, %s4980_s20  ;;  %1778 = vrot.lane.b32.xlu0 %v5628_v60, %s4980_s20 }
 0x1c0   : > { %2136 = vrot.lane.b32.xlu1 %v5648_v8, %s4979_s19  ;;  %2134 = vrot.lane.b32.xlu0 %v5644_v7, %s4979_s19 }
 0x1c4   : > { %2157 = vrot.lane.b32.xlu1 %v5648_v8, %s4980_s20  ;;  %2155 = vrot.lane.b32.xlu0 %v5644_v7, %s4980_s20 }
 0x1f8   : > { %v1002_v61 = vpop.permute.xlu1 %1001  ;;  %v1000_v9 = vpop.permute.xlu0 %999 }
 0x1f9   : > { %1012 = vst.msk [vmem:[#allocation3 + $0x18] sm:$0xff] %vm458_vm6, %v1002_v61  ;;  %1011 = vst.msk [vmem:[#allocation3 + $0x10] sm:$0xff] %vm458_vm6, %v1000_v9 }
 0x1fa   : > { %1016 = vst.msk [vmem:[#allocation3 + $0x19] sm:$0x7f] %vm502_vm8, %v5505_v13  ;;  %v4167_v13 = vld [vmem:[%s6285_s4 + $0x28] sm:$0xf] }
 0x1fb   : > { %1015 = vst.msk [vmem:[#allocation3 + $0x11] sm:$0xff] %vm500_vm7, %v5501_v10  ;;  %v4760_v19 = vpack.c.bf16 %v4167_v13, %v5669_v17  ;;  %v3742_v13 = vld [vmem:[#allocation3 + $0x98] sm:$0xff] }
 0x1fc   : > { %v1022_v11 = vpop.permute.xlu1 %1021  ;;  %v1020_v12 = vpop.permute.xlu0 %1019 }
 0x1fd   : > { %1033 = vst.msk [vmem:[#allocation3 + $0x17] sm:$0xff] %vm598_vm9, %v1022_v11 }
 0x1fe   : > { %1032 = vst.msk [vmem:[#allocation3 + $0xf] sm:$0xfe] %vm1031_vm12, %v1020_v12 }
 0x202   : > { %v1379_v15 = vpop.permute.xlu1 %1378  ;;  %v1377_v16 = vpop.permute.xlu0 %1376 }
 0x203   : > { %1390 = vst.msk [vmem:[#allocation3 + $0x38] sm:$0xff] %vm458_vm6, %v1379_v15  ;;  %1389 = vst.msk [vmem:[#allocation3 + $0x30] sm:$0xff] %vm458_vm6, %v1377_v16 }
 0x204   : > { %1394 = vst.msk [vmem:[#allocation3 + $0x39] sm:$0x7f] %vm502_vm8, %v5530_v26  ;;  %v5680_v18 = vld [vmem:[#allocation3 + $0x18] sm:$0xff] }
 0x205   : > { %1393 = vst.msk [vmem:[#allocation3 + $0x31] sm:$0xff] %vm500_vm7, %v5525_v22  ;;  %v2173_v10 = vld [vmem:[#allocation3 + $0x10] sm:$0xff] }
 0x206   : > { %v1400_v20 = vpop.permute.xlu1 %1399  ;;  %4560 = vmatprep.mubr.msk.f32.mxu0 %vm371_vm5, %v2173_v10  ;;  %v1398_v21 = vpop.permute.xlu0 %1397 }
 0x207   : > { %1410 = vst.msk [vmem:[#allocation3 + $0x37] sm:$0xff] %vm598_vm9, %v1400_v20  ;;  %4561 = vmatmul.mubr.msk.f32.vlgmr.msra.gmra.mrb[8].mxu0 %vm371_vm5, %v5680_v18 }
 0x208   : > { %1409 = vst.msk [vmem:[#allocation3 + $0x2f] sm:$0xfe] %vm1031_vm12, %v1398_v21  ;;  %4759 = vmatpush3.bf16.msk.msra.mxu0 %vm5086_vm4, %v5552_v33 }
 0x209   : > { %4762 = vmatprep.subr.msk.bf16.mxu0 %vm5086_vm4, %v4760_v19 }
 0x20a   : > { %v1006_v22 = vpop.permute.xlu1 %1005  ;;  %v1004_v23 = vpop.permute.xlu0 %1003 }
 0x20b   : > { %1014 = vst.msk [vmem:[#allocation3 + $0x28] sm:$0xff] %vm458_vm6, %v1006_v22  ;;  %1013 = vst.msk [vmem:[#allocation3 + $0x20] sm:$0xff] %vm458_vm6, %v1004_v23 }
 0x20c   : > { %1018 = vst.msk [vmem:[#allocation3 + $0x29] sm:$0x7f] %vm502_vm8, %v5557_v35 }
 0x20d   : > { %1017 = vst.msk [vmem:[#allocation3 + $0x21] sm:$0xff] %vm500_vm7, %v5549_v31 }
 0x20e   : > { %v1026_v25 = vpop.permute.xlu1 %1025  ;;  %v1024_v26 = vpop.permute.xlu0 %1023  ;;  %v5704_v28 = vld [vmem:[#allocation3 + $0x38] sm:$0xff] }
 0x20f   : > { %v5702_v27 = vld [vmem:[#allocation3 + $0x30] sm:$0xff]  ;;  %1035 = vst.msk [vmem:[#allocation3 + $0x27] sm:$0xff] %vm598_vm9, %v1026_v25 }
 0x210   : > { %1034 = vst.msk [vmem:[#allocation3 + $0x1f] sm:$0xfe] %vm1031_vm12, %v1024_v26  ;;  %4590 = vmatprep.mubr.msk.f32.mxu1 %vm371_vm5, %v5702_v27 }
 0x211   : > { %4591 = vmatmul.mubr.msk.f32.vlgmr.msra.gmra.mrb[8].mxu1 %vm371_vm5, %v5704_v28 }
 0x212   : > { %4777 = vmatpush3.bf16.msk.msra.mxu1 %vm5086_vm4, %v5575_v38  ;;  %v1383_v31 = vpop.permute.xlu1 %1382  ;;  %v1381_v33 = vpop.permute.xlu0 %1380  ;;  %v4214_v38 = vld [vmem:[%s6285_s4 + $0x18] sm:$0xf] }
 0x213   : > { %4780 = vmatprep.subr.msk.bf16.mxu1 %vm5086_vm4, %v4778_v30  ;;  %1392 = vst.msk [vmem:[#allocation3 + $0x48] sm:$0xff] %vm458_vm6, %v1383_v31  ;;  %1391 = vst.msk [vmem:[#allocation3 + $0x40] sm:$0xff] %vm458_vm6, %v1381_v33  ;;  %v4784_v43 = vpack.c.bf16 %v4214_v38, %v5488_v63 }
 0x214   : > { %1396 = vst.msk [vmem:[#allocation3 + $0x49] sm:$0x7f] %vm502_vm8, %v5581_v41 }
 0x215   : > { %1395 = vst.msk [vmem:[#allocation3 + $0x41] sm:$0xff] %vm500_vm7, %v5577_v39  ;;  %v2168_v39 = vld [vmem:[#allocation3 + $0x8] sm:$0xff] }
 0x216   : > { %v1404_v1 = vpop.permute.xlu1 %1403  ;;  %v1402_v35 = vpop.permute.xlu0 %1401  ;;  %v2176_v32 = vld [vmem:[#allocation3 + $0x28] sm:$0xff] }
 0x217   : > { %v2175_v36 = vld [vmem:[#allocation3 + $0x20] sm:$0xff]  ;;  %1412 = vst.msk [vmem:[#allocation3 + $0x47] sm:$0xff] %vm598_vm9, %v1404_v1 }
 0x218   : > { %1411 = vst.msk [vmem:[#allocation3 + $0x3f] sm:$0xfe] %vm1031_vm12, %v1402_v35  ;;  %4563 = vmatprep.mubr.msk.f32.mxu0 %vm371_vm5, %v2175_v36 }
 0x219   : > { %4564 = vmatmul.mubr.msk.f32.gmra.mrb[10].mxu0 %vm371_vm5, %v2176_v32 }
 0x21a   : > { %4570 = vmatprep.mubr.msk.f32.mxu0 %vm371_vm5, %v2167_v37  ;;  %v1756_v41 = vpop.permute.xlu1 %1755  ;;  %v1754_v42 = vpop.permute.xlu0 %1753 }
 0x21b   : > { %1767 = vst.msk [vmem:[#allocation3 + $0x58] sm:$0xff] %vm458_vm6, %v1756_v41  ;;  %1766 = vst.msk [vmem:[#allocation3 + $0x50] sm:$0xff] %vm458_vm6, %v1754_v42 }
 0x21c   : > { %1771 = vst.msk [vmem:[#allocation3 + $0x59] sm:$0x7f] %vm502_vm8, %v5600_v48 }
 0x21d   : > { %1770 = vst.msk [vmem:[#allocation3 + $0x51] sm:$0xff] %vm500_vm7, %v5596_v14  ;;  %4571 = vmatmul.mubr.msk.f32.vlgmr.msra.gmra.mrb[8].mxu0 %vm371_vm5, %v2168_v39  ;;  %v4251_v14 = vld [vmem:[%s6285_s4 + $0x18] sm:$0xf] }
 0x21e   : > { %4573 = vmatprep.mubr.msk.f32.mxu0 %vm371_vm5, %v2173_v10  ;;  %4765 = vmatpush3.bf16.msk.msra.mxu0 %vm5086_vm4, %v4760_v19  ;;  %v1777_v34 = vpop.permute.xlu1 %1776  ;;  %v1775_v44 = vpop.permute.xlu0 %1774  ;;  %v5745_v46 = vld [vmem:[#allocation3 + $0x48] sm:$0xff]  ;;  %v4802_v50 = vpack.c.bf16 %v4251_v14, %v5488_v63  ;;  %v5872_v10 = vld [vmem:[%s6287_s6] ss:$0 sm:$0xff] }
 0x21f   : > { %v5743_v45 = vld [vmem:[#allocation3 + $0x40] sm:$0xff]  ;;  %4786 = vmatprep.subr.msk.bf16.mxu0 %vm5086_vm4, %v4784_v43  ;;  %1787 = vst.msk [vmem:[#allocation3 + $0x57] sm:$0xff] %vm598_vm9, %v1777_v34  ;;  %2599 = vrot.lane.b32.xlu1 %v5872_v10, %s4981_s16 }
 0x220   : > { %1786 = vst.msk [vmem:[#allocation3 + $0x4f] sm:$0xfe] %vm1031_vm12, %v1775_v44  ;;  %4593 = vmatprep.mubr.msk.f32.mxu1 %vm371_vm5, %v5743_v45 }
 0x221   : > { %4574 = vmatmul.mubr.msk.f32.gmra.mrb[10].mxu0 %vm371_vm5, %v5680_v18  ;;  %4594 = vmatmul.mubr.msk.f32.gmra.mrb[10].mxu1 %vm371_vm5, %v5745_v46 }
 0x222   : > { %4580 = vmatprep.mubr.msk.f32.mxu0 %vm371_vm5, %v2175_v36  ;;  %4600 = vmatprep.mubr.msk.f32.mxu1 %vm371_vm5, %v2175_v36  ;;  %v2133_v48 = vpop.permute.xlu1 %2132  ;;  %v2131_v49 = vpop.permute.xlu0 %2130 }
 0x223   : > { %2144 = vst.msk [vmem:[#allocation3 + $0x78] sm:$0xff] %vm458_vm6, %v2133_v48  ;;  %2143 = vst.msk [vmem:[#allocation3 + $0x70] sm:$0xff] %vm458_vm6, %v2131_v49 }
 0x224   : > { %2148 = vst.msk [vmem:[#allocation3 + $0x79] sm:$0x7f] %vm502_vm8, %v5617_v57  ;;  %v4808_v57 = vpack.c.bf16 %v3531_v54, %v5544_v29 }
 0x225   : > { %2147 = vst.msk [vmem:[#allocation3 + $0x71] sm:$0xff] %vm500_vm7, %v5612_v55  ;;  %4581 = vmatmul.mubr.msk.f32.vlgmr.msra.gmra.mrb[8].mxu0 %vm371_vm5, %v2176_v32  ;;  %4601 = vmatmul.mubr.msk.f32.vlgmr.msra.gmra.mrb[8].mxu1 %vm371_vm5, %v2176_v32 }
 0x226   : > { %4783 = vmatpush3.bf16.msk.msra.mxu1 %vm5086_vm4, %v4778_v30  ;;  %4583 = vmatprep.mubr.msk.f32.mxu0 %vm371_vm5, %v5702_v27  ;;  %v2154_v63 = vpop.permute.xlu1 %2153  ;;  %v2152_v52 = vpop.permute.xlu0 %2151  ;;  %v3088_v58 = vld [vmem:[#allocation3 + $0x58] sm:$0xff] }
 0x227   : > { %4603 = vmatprep.mubr.msk.f32.mxu1 %vm371_vm5, %v5702_v27  ;;  %4789 = vmatpush3.bf16.msk.msra.mxu0 %vm5086_vm4, %v4784_v43  ;;  %2164 = vst.msk [vmem:[#allocation3 + $0x77] sm:$0xff] %vm598_vm9, %v2154_v63  ;;  %v3087_v55 = vld [vmem:[#allocation3 + $0x50] sm:$0xff] }
 0x228   : > { %2163 = vst.msk [vmem:[#allocation3 + $0x6f] sm:$0xfe] %vm1031_vm12, %v2152_v52  ;;  %4804 = vmatprep.subr.msk.bf16.mxu1 %vm5086_vm4, %v4802_v50  ;;  %4792 = vmatprep.subr.msk.bf16.mxu0 %vm5086_vm4, %v4790_v51 }
 0x229   : > { %4584 = vmatmul.mubr.msk.f32.gmra.mrb[10].mxu0 %vm371_vm5, %v5704_v28  ;;  %4604 = vmatmul.mubr.msk.f32.gmra.mrb[10].mxu1 %vm371_vm5, %v5704_v28 }
 0x22a   : > { %4610 = vmatprep.mubr.msk.f32.mxu1 %vm371_vm5, %v5743_v45  ;;  %4620 = vmatprep.mubr.msk.f32.mxu0 %vm371_vm5, %v3087_v55  ;;  %v1760_v40 = vpop.permute.xlu1 %1759  ;;  %v1758_v53 = vpop.permute.xlu0 %1757 }
 0x22b   : > { %1769 = vst.msk [vmem:[#allocation3 + $0x68] sm:$0xff] %vm458_vm6, %v1760_v40  ;;  %1768 = vst.msk [vmem:[#allocation3 + $0x60] sm:$0xff] %vm458_vm6, %v1758_v53 }
 0x22c   : > { %1773 = vst.msk [vmem:[#allocation3 + $0x69] sm:$0x7f] %vm502_vm8, %v5633_v3 }
 0x22d   : > { %1772 = vst.msk [vmem:[#allocation3 + $0x61] sm:$0xff] %vm500_vm7, %v5628_v60  ;;  %4611 = vmatmul.mubr.msk.f32.vlgmr.msra.gmra.mrb[8].mxu1 %vm371_vm5, %v5745_v46  ;;  %4621 = vmatmul.mubr.msk.f32.vlgmr.msra.gmra.mrb[12].mxu0 %vm371_vm5, %v3088_v58  ;;  %v4263_v60 = vld [vmem:[%s6285_s4 + $0x28] sm:$0xf] }
 0x22e   : > { %4613 = vmatprep.mubr.msk.f32.mxu1 %vm371_vm5, %v3087_v55  ;;  %4807 = vmatpush3.bf16.msk.msra.mxu1 %vm5086_vm4, %v4802_v50  ;;  %v1781_v29 = vpop.permute.xlu1 %1780  ;;  %v1779_v2 = vpop.permute.xlu0 %1778  ;;  %v4814_v61 = vpack.c.bf16 %v4263_v60, %v5669_v17  ;;  %v3533_v9 = vld [vmem:[#allocation3 + $0x78] sm:$0xff]  ;;  %v3741_v17 = vld [vmem:[#allocation3 + $0x90] sm:$0xff] }
 0x22f   : > { %4795 = vmatpush3.bf16.msk.msra.mxu0 %vm5086_vm4, %v4790_v51  ;;  %4810 = vmatprep.subr.msk.bf16.mxu1 %vm5086_vm4, %v4808_v57  ;;  %1789 = vst.msk [vmem:[#allocation3 + $0x67] sm:$0xff] %vm598_vm9, %v1781_v29  ;;  %v3532_v3 = vld [vmem:[#allocation3 + $0x70] sm:$0xff] }
 0x230   : > { %1788 = vst.msk [vmem:[#allocation3 + $0x5f] sm:$0xfe] %vm1031_vm12, %v1779_v2  ;;  %4798 = vmatprep.subr.msk.bf16.mxu0 %vm5086_vm4, %v4796_v59 }
 0x231   : > { %4614 = vmatmul.mubr.msk.f32.gmra.mrb[10].mxu1 %vm371_vm5, %v3088_v58 }
 0x232   : > { %4650 = vmatprep.mubr.msk.f32.mxu1 %vm371_vm5, %v3532_v3  ;;  %v2137_v5 = vpop.permute.xlu1 %2136  ;;  %v2135_v6 = vpop.permute.xlu0 %2134 }
 0x233   : > { %2146 = vst.msk [vmem:[#allocation3 + $0x88] sm:$0xff] %vm458_vm6, %v2137_v5  ;;  %2145 = vst.msk [vmem:[#allocation3 + $0x80] sm:$0xff] %vm458_vm6, %v2135_v6 }
 0x234   : > { %2150 = vst.msk [vmem:[#allocation3 + $0x89] sm:$0x7f] %vm502_vm8, %v5648_v8 }
 0x235   : > { %2149 = vst.msk [vmem:[#allocation3 + $0x81] sm:$0xff] %vm500_vm7, %v5644_v7  ;;  %4651 = vmatmul.mubr.msk.f32.vlgmr.msra.gmra.mrb[12].mxu1 %vm371_vm5, %v3533_v9 }
 0x236   : > { %4813 = vmatpush3.bf16.msk.msra.mxu1 %vm5086_vm4, %v4808_v57  ;;  %v2158_v11 = vpop.permute.xlu1 %2157  ;;  %v2156_v12 = vpop.permute.xlu0 %2155  ;;  %v3090_v16 = vld [vmem:[#allocation3 + $0x68] sm:$0xff] }
 0x237   : > { %v3089_v15 = vld [vmem:[#allocation3 + $0x60] sm:$0xff]  ;;  %4816 = vmatprep.subr.msk.bf16.mxu1 %vm5086_vm4, %v4814_v61  ;;  %2166 = vst.msk [vmem:[#allocation3 + $0x87] sm:$0xff] %vm598_vm9, %v2158_v11 }
 0x238   : > { %2165 = vst.msk [vmem:[#allocation3 + $0x7f] sm:$0xfe] %vm1031_vm12, %v2156_v12  ;;  %4623 = vmatprep.mubr.msk.f32.mxu0 %vm371_vm5, %v3089_v15 }
 0x239   : > { %4624 = vmatmul.mubr.msk.f32.gmra.mrb[14].mxu0 %vm371_vm5, %v3090_v16 }
 0x23a   : > { %4630 = vmatprep.mubr.msk.f32.mxu0 %vm371_vm5, %v5743_v45 }
 0x23d   : > { %4631 = vmatmul.mubr.msk.f32.vlgmr.msra.gmra.mrb[12].mxu0 %vm371_vm5, %v5745_v46 }
 0x23e   : > { %4633 = vmatprep.mubr.msk.f32.mxu0 %vm371_vm5, %v3087_v55  ;;  %4801 = vmatpush3.bf16.msk.msra.mxu0 %vm5086_vm4, %v4796_v59  ;;  %v3535_v8 = vld [vmem:[#allocation3 + $0x88] sm:$0xff] }
 0x23f   : > { %v3534_v7 = vld [vmem:[#allocation3 + $0x80] sm:$0xff] }
 0x240   : > { %4653 = vmatprep.mubr.msk.f32.mxu1 %vm371_vm5, %v3534_v7 }
 0x241   : > { %4634 = vmatmul.mubr.msk.f32.gmra.mrb[14].mxu0 %vm371_vm5, %v3088_v58  ;;  %4654 = vmatmul.mubr.msk.f32.gmra.mrb[14].mxu1 %vm371_vm5, %v3535_v8 }
 0x242   : > { %4640 = vmatprep.mubr.msk.f32.mxu0 %vm371_vm5, %v3089_v15  ;;  %4660 = vmatprep.mubr.msk.f32.mxu1 %vm371_vm5, %v3089_v15 }
 0x245   : > { %4641 = vmatmul.mubr.msk.f32.vlgmr.msra.gmra.mrb[12].mxu0 %vm371_vm5, %v3090_v16  ;;  %4661 = vmatmul.mubr.msk.f32.vlgmr.msra.gmra.mrb[12].mxu1 %vm371_vm5, %v3090_v16 }
 0x246   : > { %4643 = vmatprep.mubr.msk.f32.mxu0 %vm371_vm5, %v3532_v3  ;;  %4663 = vmatprep.mubr.msk.f32.mxu1 %vm371_vm5, %v3532_v3 }
 0x247   : > { %4819 = vmatpush3.bf16.msk.msra.mxu1 %vm5086_vm4, %v4814_v61 }
 0x249   : > { %4644 = vmatmul.mubr.msk.f32.gmra.mrb[14].mxu0 %vm371_vm5, %v3533_v9  ;;  %4664 = vmatmul.mubr.msk.f32.gmra.mrb[14].mxu1 %vm371_vm5, %v3533_v9 }
 0x24a   : > { %4670 = vmatprep.mubr.msk.f32.mxu1 %vm371_vm5, %v3534_v7 }
 0x24d   : > { %4671 = vmatmul.mubr.msk.f32.vlgmr.msra.gmra.mrb[12].mxu1 %vm371_vm5, %v3535_v8 }
 0x24e   : > { %4673 = vmatprep.mubr.msk.f32.mxu1 %vm371_vm5, %v3741_v17 }
 0x251   : > { %4674 = vmatmul.mubr.msk.f32.gmra.mrb[14].mxu1 %vm371_vm5, %v3742_v13 }
 0x2f8   : > { %v4582_v18 = vpop.f32.mrb[8].mxu0 }
 0x2f9   : > { %v2499_v19 = vadd.f32 %v4582_v18, %v5879_v4  ;;  %v2469_v20 = vpop.f32.mrb[9].mxu0 }
 0x2fa   : > { %v2498_v21 = vadd.f32 %v5879_v4, %v2469_v20 }
 0x2fb   : > { %v2503_v22 = vmul.f32 0.1, %v2499_v19 }
 0x2fc   : > { %v2502_v23 = vmul.f32 0.1, %v2498_v21  ;;  %v4585_v24 = vpop.f32.mrb[10].mxu0 }
 0x2fd   : > { %4905 = vtanh.f32 %v2503_v22  ;;  %v2501_v25 = vadd.f32 %v4585_v24, %v5879_v4  ;;  %2536 = vrot.lane.b32.xlu1 %v2503_v22, %s4981_s16  ;;  %v2479_v26 = vpop.f32.mrb[11].mxu0 }
 0x2fe   : > { %4907 = vtanh.f32 %v2502_v23  ;;  %v2500_v27 = vadd.f32 %v5879_v4, %v2479_v26 }
 0x2ff   : > { %v2505_v28 = vmul.f32 0.1, %v2501_v25 }
 0x300   : > { %v2504_v30 = vmul.f32 0.1, %v2500_v27  ;;  %v4612_v31 = vpop.f32.mrb[8].mxu1 }
 0x301   : > { %4909 = vtanh.f32 %v2505_v28  ;;  %v2960_v33 = vadd.f32 %v4612_v31, %v5879_v4  ;;  %v2936_v1 = vpop.f32.mrb[9].mxu1 }
 0x302   : > { %4911 = vtanh.f32 %v2504_v30  ;;  %v2959_v35 = vadd.f32 %v5879_v4, %v2936_v1 }
 0x303   : > { %v2964_v36 = vmul.f32 0.1, %v2960_v33 }
 0x304   : > { %v2963_v32 = vmul.f32 0.1, %v2959_v35  ;;  %v4615_v37 = vpop.f32.mrb[10].mxu1 }
 0x305   : > { %4913 = vtanh.f32 %v2964_v36  ;;  %v2962_v38 = vadd.f32 %v4615_v37, %v5879_v4  ;;  %2998 = vrot.lane.b32.xlu0 %v2964_v36, %s4981_s16  ;;  %v2946_v39 = vpop.f32.mrb[11].mxu1 }
 0x306   : > { %4915 = vtanh.f32 %v2963_v32  ;;  %v2961_v41 = vadd.f32 %v5879_v4, %v2946_v39  ;;  %2996 = vrot.lane.b32.xlu1 %v2963_v32, %s4981_s16 }
 0x307   : > { %v4906_v42 = vpop.eup %4905  ;;  %v2966_v43 = vmul.f32 0.1, %v2962_v38 }
 0x308   : > { %v4908_v34 = vpop.eup %4907  ;;  %v5892_v44 = vmul.f32 2.0, %v4906_v42  ;;  %v2965_v45 = vmul.f32 0.1, %v2961_v41 }
 0x309   : > { %v5894_v46 = vmul.f32 2.0, %v4908_v34  ;;  %4917 = vtanh.f32 %v2966_v43  ;;  %2534 = vrot.lane.b32.xlu0 %v2502_v23, %s4981_s16 }
 0x30a   : > { %4919 = vtanh.f32 %v2965_v45  ;;  %2540 = vrot.lane.b32.xlu1 %v2505_v28, %s4981_s16  ;;  %v2551_v14 = vsel %vm370_vm11, %v5892_v44, 0.0 }
 0x30b   : > { %v4910_v47 = vpop.eup %4909  ;;  %v2554_v48 = vsel %vm500_vm7, %v5894_v46, 0.0  ;;  %v2555_v49 = vsel %vm500_vm7, %v2551_v14, 0.0 }
 0x30c   : > { %v4912_v50 = vpop.eup %4911  ;;  %v5904_v51 = vmul.f32 2.0, %v4910_v47  ;;  %v2556_v63 = vadd.f32 %v2555_v49, %v2554_v48 }
 0x30d   : > { %v5906_v52 = vmul.f32 2.0, %v4912_v50  ;;  %2538 = vrot.lane.b32.xlu0 %v2504_v30, %s4981_s16 }
 0x30e   : > { %3002 = vrot.lane.b32.xlu1 %v2966_v43, %s4981_s16  ;;  %v2553_v54 = vsel %vm370_vm11, %v5904_v51, 0.0 }
 0x30f   : > { %v4914_v55 = vpop.eup %4913  ;;  %v2557_v56 = vsel %vm500_vm7, %v5906_v52, 0.0  ;;  %v2559_v59 = vsel %vm500_vm7, %v2553_v54, 0.0 }
 0x310   : > { %v4916_v40 = vpop.eup %4915  ;;  %v5915_v53 = vmul.f32 2.0, %v4914_v55  ;;  %v2558_v57 = vadd.f32 %v2557_v56, %v2556_v63 }
 0x311   : > { %v5917_v58 = vmul.f32 2.0, %v4916_v40  ;;  %3000 = vrot.lane.b32.xlu0 %v2965_v45, %s4981_s16 }
 0x312   : > { %v5921_v29 = vadd.f32 %v2559_v59, %v2558_v57  ;;  %v3013_v2 = vsel %vm370_vm11, %v5915_v53, 0.0 }
 0x313   : > { %v4918_v60 = vpop.eup %4917  ;;  %v3016_v3 = vsel %vm500_vm7, %v5917_v58, 0.0  ;;  %v3017_v5 = vsel %vm500_vm7, %v3013_v2, 0.0 }
 0x314   : > { %v4920_v6 = vpop.eup %4919  ;;  %v5929_v61 = vmul.f32 2.0, %v4918_v60  ;;  %v3018_v9 = vadd.f32 %v3017_v5, %v3016_v3 }
 0x315   : > { %v5931_v11 = vmul.f32 2.0, %v4920_v6 }
 0x316   : > { %v3015_v12 = vsel %vm370_vm11, %v5929_v61, 0.0 }
 0x317   : > { %v3019_v15 = vsel %vm500_vm7, %v5931_v11, 0.0  ;;  %v3021_v13 = vsel %vm500_vm7, %v3015_v12, 0.0 }
 0x318   : > { %v4642_v16 = vpop.f32.mrb[12].mxu0  ;;  %v3020_v7 = vadd.f32 %v3019_v15, %v3018_v9 }
 0x319   : > { %v3405_v8 = vadd.f32 %v4642_v16, %v5879_v4  ;;  %v3381_v17 = vpop.f32.mrb[13].mxu0 }
 0x31a   : > { %v3404_v18 = vadd.f32 %v5879_v4, %v3381_v17  ;;  %v5941_v19 = vadd.f32 %v3021_v13, %v3020_v7 }
 0x31b   : > { %v3409_v20 = vmul.f32 0.1, %v3405_v8 }
 0x31c   : > { %v3408_v21 = vmul.f32 0.1, %v3404_v18  ;;  %v4645_v22 = vpop.f32.mrb[14].mxu0 }
 0x31d   : > { %4921 = vtanh.f32 %v3409_v20  ;;  %v3407_v23 = vadd.f32 %v4645_v22, %v5879_v4  ;;  %3443 = vrot.lane.b32.xlu1 %v3409_v20, %s4981_s16  ;;  %v3391_v24 = vpop.f32.mrb[15].mxu0 }
 0x31e   : > { %4923 = vtanh.f32 %v3408_v21  ;;  %v3406_v25 = vadd.f32 %v5879_v4, %v3391_v24 }
 0x31f   : > { %v3411_v26 = vmul.f32 0.1, %v3407_v23  ;;  %v6010_v23 = vpop.permute.xlu1 %2599 }
 0x320   : > { %v3410_v27 = vmul.f32 0.1, %v3406_v25  ;;  %v4672_v28 = vpop.f32.mrb[12].mxu1 }
 0x321   : > { %4925 = vtanh.f32 %v3411_v26  ;;  %v3850_v30 = vadd.f32 %v4672_v28, %v5879_v4  ;;  %3441 = vrot.lane.b32.xlu1 %v3408_v21, %s4981_s16  ;;  %v3826_v31 = vpop.f32.mrb[13].mxu1 }
 0x322   : > { %4927 = vtanh.f32 %v3410_v27  ;;  %v3849_v33 = vadd.f32 %v5879_v4, %v3826_v31 }
 0x323   : > { %v3854_v1 = vmul.f32 0.1, %v3850_v30 }
 0x324   : > { %v3853_v35 = vmul.f32 0.1, %v3849_v33  ;;  %v4675_v36 = vpop.f32.mrb[14].mxu1 }
 0x325   : > { %4929 = vtanh.f32 %v3854_v1  ;;  %v3852_v32 = vadd.f32 %v4675_v36, %v5879_v4  ;;  %v3836_v37 = vpop.f32.mrb[15].mxu1 }
 0x326   : > { %4931 = vtanh.f32 %v3853_v35  ;;  %v3851_v38 = vadd.f32 %v5879_v4, %v3836_v37  ;;  %v2520_v37 = vmul.f32 1.442695, %v5892_v44  ;;  %v2524_v44 = vmul.f32 1.442695, %v5904_v51 }
 0x327   : > { %v4922_v39 = vpop.eup %4921  ;;  %v3856_v41 = vmul.f32 0.1, %v3852_v32 }
 0x328   : > { %v4924_v42 = vpop.eup %4923  ;;  %v5951_v43 = vmul.f32 2.0, %v4922_v39  ;;  %v3855_v34 = vmul.f32 0.1, %v3851_v38 }
 0x329   : > { %v5953_v45 = vmul.f32 2.0, %v4924_v42  ;;  %4933 = vtanh.f32 %v3856_v41  ;;  %v2982_v42 = vmul.f32 1.442695, %v5915_v53  ;;  %v2986_v53 = vmul.f32 1.442695, %v5929_v61 }
 0x32a   : > { %4935 = vtanh.f32 %v3855_v34  ;;  %v3458_v14 = vsel %vm370_vm11, %v5951_v43, 0.0 }
 0x32b   : > { %v4926_v47 = vpop.eup %4925  ;;  %v3461_v48 = vsel %vm500_vm7, %v5953_v45, 0.0  ;;  %v3462_v4 = vsel %vm500_vm7, %v3458_v14, 0.0  ;;  %v2980_v14 = vmul.f32 1.442695, %v5917_v58  ;;  %4937 = vpow2.f32 %v2520_v37 }
 0x32c   : > { %v4928_v49 = vpop.eup %4927  ;;  %v5961_v50 = vmul.f32 2.0, %v4926_v47  ;;  %v3463_v63 = vadd.f32 %v3462_v4, %v3461_v48  ;;  %v2984_v58 = vmul.f32 1.442695, %v5931_v11 }
 0x32d   : > { %v5963_v54 = vmul.f32 2.0, %v4928_v49  ;;  %v2571_v49 = vld [vmem:[%s5094_s18] sm:$0xff] }
 0x32e   : > { %v3460_v55 = vsel %vm370_vm11, %v5961_v50, 0.0 }
 0x32f   : > { %v4930_v56 = vpop.eup %4929  ;;  %v3464_v40 = vsel %vm500_vm7, %v5963_v54, 0.0  ;;  %v3466_v3 = vsel %vm500_vm7, %v3460_v55, 0.0  ;;  %v2515_v55 = vld [vmem:[%s6050_s29 + $0x8] sm:$0xff] }
 0x330   : > { %v4932_v57 = vpop.eup %4931  ;;  %v5970_v59 = vmul.f32 2.0, %v4930_v56  ;;  %2561 = vadd.xlane.f32.xlu0 %v5921_v29  ;;  %v3465_v2 = vadd.f32 %v3464_v40, %v3463_v63  ;;  %v2581_v63 = vmul.f32 %v5872_v10, %v2571_v49 }
 0x331   : > { %v5973_v60 = vmul.f32 2.0, %v4932_v57  ;;  %v3427_v57 = vmul.f32 1.442695, %v5951_v43 }
 0x332   : > { %v3467_v5 = vadd.f32 %v3466_v3, %v3465_v2  ;;  %v3903_v6 = vsel %vm370_vm11, %v5970_v59, 0.0  ;;  %v4196_v2 = vld [vmem:[%s6050_s29 + $0x28] sm:$0xff]  ;;  %v2514_v3 = vld [vmem:[%s6050_s29] sm:$0xff]  ;;  %v2591_v11 = vadd.f32 %v6001_v62, %v2581_v63  ;;  %v4202_v63 = vld [vmem:[%s5094_s18 + $0x38] sm:$0xff] }
 0x333   : > { %v4934_v9 = vpop.eup %4933  ;;  %v3906_v12 = vsel %vm500_vm7, %v5973_v60, 0.0  ;;  %v3907_v15 = vsel %vm500_vm7, %v3903_v6, 0.0  ;;  %v3425_v6 = vmul.f32 1.442695, %v5953_v45 }
 0x334   : > { %v4936_v16 = vpop.eup %4935  ;;  %v5982_v7 = vmul.f32 2.0, %v4934_v9  ;;  %v3908_v29 = vadd.f32 %v3907_v15, %v3906_v12  ;;  %v4195_v9 = vld [vmem:[%s6050_s29 + $0x20] sm:$0xff]  ;;  %v4200_v15 = vld [vmem:[%s5094_s18 + $0x28] sm:$0xff]  ;;  %2595 = vst.msk [vmem:[%s6028_s26] sm:$0xff] %vm500_vm7, %v2591_v11 }
 0x335   : > { %v5984_v8 = vmul.f32 2.0, %v4936_v16  ;;  %v4938_v51 = vpop.eup %4937  ;;  %v4199_v16 = vld [vmem:[%s5094_s18 + $0x20] sm:$0xff]  ;;  %v3039_v43 = vmul.f32 %v4200_v15, %v5872_v10 }
 0x336   : > { %v3905_v17 = vsel %vm370_vm11, %v5982_v7, 0.0 }
 0x337   : > { %v3909_v13 = vsel %vm500_vm7, %v5984_v8, 0.0  ;;  %v3911_v20 = vsel %vm500_vm7, %v3905_v17, 0.0  ;;  %v2527_v17 = vmul.f32 %v4938_v51, %v2515_v55 }
 0x338   : > { %v3910_v18 = vadd.f32 %v3909_v13, %v3908_v29  ;;  %v3431_v29 = vmul.f32 1.442695, %v5961_v50 }
 0x33a   : > { %v3912_v21 = vadd.f32 %v3911_v20, %v3910_v18  ;;  %v3038_v18 = vmul.f32 %v4199_v16, %v5872_v10  ;;  %v3429_v20 = vmul.f32 1.442695, %v5963_v54  ;;  %v2574_v54 = vld [vmem:[%s5094_s18 + $0x18] sm:$0xff] }
 0x345   : > { %3023 = vadd.xlane.f32.xlu1 %v5941_v19 }
 0x346   : > { %3447 = vrot.lane.b32.xlu0 %v3411_v26, %s4981_s16 }
 0x34a   : > { %3445 = vrot.lane.b32.xlu0 %v3410_v27, %s4981_s16 }
 0x34e   : > { %3892 = vrot.lane.b32.xlu0 %v3856_v41, %s4981_s16  ;;  %v2518_v41 = vmul.f32 1.442695, %v5894_v46  ;;  %v2522_v46 = vmul.f32 1.442695, %v5906_v52 }
 0x350   : > { %4939 = vpow2.f32 %v2518_v41 }
 0x351   : > { %4941 = vpow2.f32 %v2982_v42  ;;  %v2584_v42 = vmul.f32 %v5872_v10, %v2574_v54  ;;  %v4233_v54 = vld [vmem:[%s6050_s29 + $0x48] sm:$0xff] }
 0x352   : > { %4943 = vpow2.f32 %v2980_v14  ;;  %v2516_v14 = vld [vmem:[%s6050_s29 + $0x10] sm:$0xff] }
 0x353   : > { %4945 = vpow2.f32 %v2524_v44 }
 0x354   : > { %4947 = vpow2.f32 %v2522_v46  ;;  %v2594_v46 = vadd.f32 %v6001_v62, %v2584_v42 }
 0x355   : > { %4949 = vpow2.f32 %v2986_v53 }
 0x356   : > { %3888 = vrot.lane.b32.xlu1 %v3854_v1, %s4981_s16  ;;  %v2572_v1 = vld [vmem:[%s5094_s18 + $0x8] sm:$0xff]  ;;  %4951 = vpow2.f32 %v2984_v58  ;;  %v3870_v58 = vmul.f32 1.442695, %v5973_v60  ;;  %2598 = vst.msk [vmem:[%s6028_s26 + $0x18] sm:$0xff] %vm500_vm7, %v2594_v46 }
 0x357   : > { %4953 = vpow2.f32 %v3427_v57 }
 0x358   : > { %4955 = vpow2.f32 %v3425_v6 }
 0x359   : > { %4957 = vpow2.f32 %v3431_v29  ;;  %v4237_v29 = vld [vmem:[%s5094_s18 + $0x48] sm:$0xff] }
 0x35a   : > { %3886 = vrot.lane.b32.xlu1 %v3853_v35, %s4981_s16  ;;  %v2582_v35 = vmul.f32 %v5872_v10, %v2572_v1  ;;  %v4940_v61 = vpop.eup %4939  ;;  %4959 = vpow2.f32 %v3429_v20 }
 0x35b   : > { %v4942_v40 = vpop.eup %4941 }
 0x35c   : > { %v2592_v32 = vadd.f32 %v6001_v62, %v2582_v35  ;;  %v2989_v45 = vmul.f32 %v4942_v40, %v4196_v2  ;;  %v4198_v40 = vld [vmem:[%s6050_s29 + $0x38] sm:$0xff]  ;;  %v4197_v2 = vld [vmem:[%s6050_s29 + $0x30] sm:$0xff] }
 0x35e   : > { %2606 = vrot.lane.b32.xlu1 %v6001_v62, %s4981_s16  ;;  %2596 = vst.msk [vmem:[%s6028_s26 + $0x8] sm:$0xff] %vm500_vm7, %v2592_v32  ;;  %v2573_v32 = vld [vmem:[%s5094_s18 + $0x10] sm:$0xff] }
 0x36d   : > { %3468 = vadd.xlane.f32.xlu0 %v3467_v5  ;;  %v4944_v5 = vpop.eup %4943 }
 0x36e   : > { %v2988_v50 = vmul.f32 %v4944_v5, %v4195_v9  ;;  %v4946_v37 = vpop.eup %4945 }
 0x36f   : > { %v6014_v25 = vpop.permute.xlu1 %2536 }
 0x370   : > { %v2547_v1 = vadd.f32 %v6014_v25, %v2527_v17  ;;  %v2583_v25 = vmul.f32 %v5872_v10, %v2573_v32  ;;  %v4236_v17 = vld [vmem:[%s5094_s18 + $0x40] sm:$0xff] }
 0x371   : > { %3913 = vadd.xlane.f32.xlu0 %v3912_v21  ;;  %v2526_v21 = vmul.f32 %v4940_v61, %v2514_v3  ;;  %v4201_v61 = vld [vmem:[%s5094_s18 + $0x30] sm:$0xff]  ;;  %v4232_v32 = vld [vmem:[%s6050_s29 + $0x40] sm:$0xff] }
 0x372   : > { %v2593_v53 = vadd.f32 %v6001_v62, %v2583_v25  ;;  %v2603_v49 = vmul.f32 %v6010_v23, %v2547_v1  ;;  %v3040_v5 = vmul.f32 %v4201_v61, %v5872_v10  ;;  %v4274_v25 = vld [vmem:[%s5094_s18 + $0x68] sm:$0xff] }
 0x374   : > { %2597 = vst.msk [vmem:[%s6028_s26 + $0x10] sm:$0xff] %vm500_vm7, %v2593_v53 }
 0x377   : > { %v6006_v19 = vpop.permute.xlu0 %2998 }
 0x378   : > { %v6016_v26 = vpop.permute.xlu1 %2996 }
 0x379   : > { %v3008_v44 = vadd.f32 %v6016_v26, %v2988_v50  ;;  %v3484_v50 = vmul.f32 %v4237_v29, %v5872_v10 }
 0x37b   : > { %v6008_v22 = vpop.permute.xlu0 %2534  ;;  %v3051_v9 = vmul.f32 %v3008_v44, %v6010_v23  ;;  %v3488_v42 = vadd.f32 %v6001_v62, %v3484_v50 }
 0x37c   : > { %v6020_v30 = vpop.permute.xlu1 %2540  ;;  %v2546_v35 = vadd.f32 %v6008_v22, %v2526_v21  ;;  %v4948_v22 = vpop.eup %4947 }
 0x37d   : > { %v4950_v55 = vpop.eup %4949  ;;  %4241 = vst.msk [vmem:[%s6028_s26 + $0x48] sm:$0xff] %vm500_vm7, %v3488_v42 }
 0x37e   : > { %v2602_v51 = vmul.f32 %v6010_v23, %v2546_v35  ;;  %v4952_v60 = vpop.eup %4951  ;;  %v2991_v16 = vmul.f32 %v4950_v55, %v4198_v40 }
 0x37f   : > { %v6012_v24 = vpop.permute.xlu0 %2538 }
 0x380   : > { %v6032_v38 = vpop.permute.xlu1 %3002 }
 0x383   : > { %v6018_v27 = vpop.permute.xlu0 %3000 }
 0x387   : > { %3890 = vrot.lane.b32.xlu0 %v3855_v34, %s4981_s16 }
 0x38f   : > { %v6039_v47 = vpop.permute.xlu1 %3443 }
 0x393   : > { %v6043_v4 = vpop.permute.xlu1 %3441 }
 0x3bd   : > { %v2562_v28 = vpop.xlane.xlu0 %2561 }
 0x3be   : > { %v2563_v31 = vrot.slane %v2562_v28, 4 }
 0x3c0   : > { %v2564_v33 = vadd.f32 %v2563_v31, %v2562_v28  ;;  %v3043_v31 = vadd.f32 %v6001_v62, %v3039_v43  ;;  %v4954_v43 = vpop.eup %4953 }
 0x3c1   : > { %v3448_v20 = vpop.permute.xlu0 %3447 }
 0x3c2   : > { %v2565_v36 = vrot.slane %v2564_v33, 2  ;;  %4204 = vst.msk [vmem:[%s6028_s26 + $0x28] sm:$0xff] %vm500_vm7, %v3043_v31  ;;  %v3483_v31 = vmul.f32 %v4236_v17, %v5872_v10 }
 0x3c4   : > { %v2566_v39 = vadd.f32 %v2565_v36, %v2564_v33  ;;  %v3042_v33 = vadd.f32 %v6001_v62, %v3038_v18  ;;  %v2990_v18 = vmul.f32 %v4952_v60, %v4197_v2 }
 0x3c6   : > { %v2567_v34 = vrot.slane %v2566_v39, 1  ;;  %4203 = vst.msk [vmem:[%s6028_s26 + $0x20] sm:$0xff] %vm500_vm7, %v3042_v33 }
 0x3c8   : > { %v2568_v48 = vadd.f32 %v2567_v34, %v2566_v39  ;;  %v3872_v39 = vmul.f32 1.442695, %v5970_v59  ;;  %v2517_v34 = vld [vmem:[%s6050_s29 + $0x18] sm:$0xff]  ;;  %v3009_v59 = vadd.f32 %v6006_v19, %v2989_v45  ;;  %v3876_v19 = vmul.f32 1.442695, %v5982_v7 }
 0x3c9   : > { %v2529_v26 = vmul.f32 %v4946_v37, %v2517_v34  ;;  %v3041_v7 = vmul.f32 %v4202_v63, %v5872_v10  ;;  %v3929_v34 = vmul.f32 %v4274_v25, %v5872_v10 }
 0x3ca   : > { %4884 = vpush %v2568_v48  ;;  %4961 = vpow2.f32 %v3872_v39  ;;  %v3052_v6 = vmul.f32 %v3009_v59, %v6010_v23  ;;  %v3010_v39 = vadd.f32 %v6018_v27, %v2990_v18  ;;  %v4235_v59 = vld [vmem:[%s6050_s29 + $0x58] sm:$0xff]  ;;  %v4273_v18 = vld [vmem:[%s5094_s18 + $0x60] sm:$0xff] }
 0x3cb   : > { %4963 = vpow2.f32 %v3870_v58  ;;  %v3045_v21 = vadd.f32 %v6001_v62, %v3041_v7 }
 0x3cc   : > { %4965 = vpow2.f32 %v3876_v19  ;;  %v3053_v61 = vmul.f32 %v3010_v39, %v6010_v23 }
 0x3cd   : > { %4206 = vst.msk [vmem:[%s6028_s26 + $0x38] sm:$0xff] %vm500_vm7, %v3045_v21 }
 0x3d2   : > { %v3024_v52 = vpop.xlane.xlu1 %3023 }
 0x3d3   : > { %v3025_v56 = vrot.slane %v3024_v52, 4 }
 0x3d5   : > { %v3026_v12 = vadd.f32 %v3025_v56, %v3024_v52  ;;  %v2528_v56 = vmul.f32 %v4948_v22, %v2516_v14  ;;  %v4239_v22 = vld [vmem:[%s5094_s18 + $0x58] sm:$0xff]  ;;  %v3434_v14 = vmul.f32 %v4954_v43, %v4233_v54  ;;  %v4269_v43 = vld [vmem:[%s6050_s29 + $0x60] sm:$0xff] }
 0x3d6   : > { %v6065_v13 = vpop.permute.xlu1 %3888  ;;  %v3486_v27 = vmul.f32 %v4239_v22, %v5872_v10 }
 0x3d7   : > { %v3027_v28 = vrot.slane %v3026_v12, 2  ;;  %v2548_v15 = vadd.f32 %v6012_v24, %v2528_v56  ;;  %v4956_v24 = vpop.eup %4955  ;;  %v3454_v55 = vadd.f32 %v6039_v47, %v3434_v14  ;;  %v4276_v56 = vld [vmem:[%s5094_s18 + $0x78] sm:$0xff] }
 0x3d8   : > { %v4958_v33 = vpop.eup %4957  ;;  %v3490_v63 = vadd.f32 %v6001_v62, %v3486_v27  ;;  %v3931_v2 = vmul.f32 %v4276_v56, %v5872_v10 }
 0x3d9   : > { %v3028_v36 = vadd.f32 %v3027_v28, %v3026_v12  ;;  %v2549_v12 = vadd.f32 %v6020_v30, %v2529_v26  ;;  %v3044_v28 = vadd.f32 %v6001_v62, %v3040_v5  ;;  %v2604_v35 = vmul.f32 %v6010_v23, %v2548_v15  ;;  %v4960_v37 = vpop.eup %4959  ;;  %v4238_v26 = vld [vmem:[%s5094_s18 + $0x50] sm:$0xff] }
 0x3da   : > { %v6079_v41 = vpop.permute.xlu1 %3886  ;;  %v4962_v53 = vpop.eup %4961  ;;  %v3436_v40 = vmul.f32 %v4958_v33, %v4235_v59  ;;  %4243 = vst.msk [vmem:[%s6028_s26 + $0x58] sm:$0xff] %vm500_vm7, %v3490_v63  ;;  %v3485_v60 = vmul.f32 %v4238_v26, %v5872_v10  ;;  %v3935_v15 = vadd.f32 %v6001_v62, %v3931_v2 }
 0x3db   : > { %v3029_v48 = vrot.slane %v3028_v36, 1  ;;  %v2605_v1 = vmul.f32 %v6010_v23, %v2549_v12  ;;  %4205 = vst.msk [vmem:[%s6028_s26 + $0x30] sm:$0xff] %vm500_vm7, %v3044_v28  ;;  %v4964_v47 = vpop.eup %4963 }
 0x3dc   : > { %v4966_v5 = vpop.eup %4965  ;;  %v3489_v12 = vadd.f32 %v6001_v62, %v3485_v60  ;;  %4280 = vst.msk [vmem:[%s6028_s26 + $0x78] sm:$0xff] %vm500_vm7, %v3935_v15  ;;  %v3878_v33 = vmul.f32 %v4964_v47, %v4269_v43 }
 0x3dd   : > { %v3030_v52 = vadd.f32 %v3029_v48, %v3028_v36  ;;  %v3011_v36 = vadd.f32 %v6032_v38, %v2991_v16  ;;  %v3487_v38 = vadd.f32 %v6001_v62, %v3483_v31  ;;  %v3433_v48 = vmul.f32 %v4956_v24, %v4232_v32 }
 0x3de   : > { %v6100_v57 = vpop.permute.xlu1 %2606  ;;  %v3497_v16 = vmul.f32 %v3454_v55, %v6010_v23  ;;  %4242 = vst.msk [vmem:[%s6028_s26 + $0x50] sm:$0xff] %vm500_vm7, %v3489_v12  ;;  %v3874_v24 = vmul.f32 1.442695, %v5984_v8  ;;  %v3898_v32 = vadd.f32 %v6079_v41, %v3878_v33 }
 0x3df   : > { %4886 = vpush %v3030_v52  ;;  %v2610_v3 = vadd.f32 %v6100_v57, %v2603_v49  ;;  %v2609_v11 = vadd.f32 %v6100_v57, %v2602_v51  ;;  %v3056_v45 = vadd.f32 %v3052_v6, %v6100_v57  ;;  %v3055_v30 = vadd.f32 %v3051_v9, %v6100_v57  ;;  %v3446_v49 = vpop.permute.xlu0 %3445  ;;  %v4270_v51 = vld [vmem:[%s6050_s29 + $0x68] sm:$0xff]  ;;  %v4272_v9 = vld [vmem:[%s6050_s29 + $0x78] sm:$0xff] }
 0x3e0   : > { %v2612_v44 = vadd.f32 %v6100_v57, %v2605_v1  ;;  %v2611_v46 = vadd.f32 %v6100_v57, %v2604_v35  ;;  %4240 = vst.msk [vmem:[%s6028_s26 + $0x40] sm:$0xff] %vm500_vm7, %v3487_v38  ;;  %v3054_v58 = vmul.f32 %v3011_v36, %v6010_v23  ;;  %v3933_v52 = vadd.f32 %v6001_v62, %v3929_v34  ;;  %v4275_v35 = vld [vmem:[%s5094_s18 + $0x70] sm:$0xff] }
 0x3e1   : > { %2619 = vrot.lane.b32.xlu1 %v2610_v3, %s4979_s19  ;;  %2617 = vrot.lane.b32.xlu0 %v2609_v11, %s4979_s19  ;;  %v3453_v19 = vadd.f32 %v6043_v4, %v3433_v48  ;;  %v4234_v4 = vld [vmem:[%s6050_s29 + $0x50] sm:$0xff]  ;;  %v3879_v3 = vmul.f32 %v4962_v53, %v4270_v51  ;;  %v3057_v7 = vadd.f32 %v3053_v61, %v6100_v57  ;;  %4967 = vpow2.f32 %v3874_v24 }
 0x3e2   : > { %4278 = vst.msk [vmem:[%s6028_s26 + $0x68] sm:$0xff] %vm500_vm7, %v3933_v52  ;;  %v3058_v11 = vadd.f32 %v3054_v58, %v6100_v57  ;;  %v3456_v6 = vadd.f32 %v3448_v20, %v3436_v40  ;;  %v3881_v21 = vmul.f32 %v4966_v5, %v4272_v9  ;;  %v3930_v8 = vmul.f32 %v4275_v35, %v5872_v10 }
 0x3e3   : > { %v3496_v29 = vmul.f32 %v3453_v19, %v6010_v23  ;;  %v3899_v17 = vadd.f32 %v6065_v13, %v3879_v3  ;;  %v3893_v20 = vpop.permute.xlu0 %3892  ;;  %v3501_v13 = vadd.f32 %v3497_v16, %v6100_v57 }
 0x3e4   : > { %v3499_v50 = vmul.f32 %v3456_v6, %v6010_v23  ;;  %v3901_v36 = vadd.f32 %v3893_v20, %v3881_v21  ;;  %v3934_v42 = vadd.f32 %v6001_v62, %v3930_v8 }
 0x3e5   : > { %3065 = vrot.lane.b32.xlu1 %v3056_v45, %s4979_s19  ;;  %3063 = vrot.lane.b32.xlu0 %v3055_v30, %s4979_s19  ;;  %v3435_v45 = vmul.f32 %v4960_v37, %v4234_v4  ;;  %v3928_v30 = vmul.f32 %v4273_v18, %v5872_v10  ;;  %v3500_v28 = vadd.f32 %v3496_v29, %v6100_v57 }
 0x3e6   : > { %v3942_v54 = vmul.f32 %v3899_v17, %v6010_v23  ;;  %v3503_v39 = vadd.f32 %v3499_v50, %v6100_v57  ;;  %v3944_v25 = vmul.f32 %v3901_v36, %v6010_v23  ;;  %4279 = vst.msk [vmem:[%s6028_s26 + $0x70] sm:$0xff] %vm500_vm7, %v3934_v42  ;;  %v3941_v10 = vmul.f32 %v3898_v32, %v6010_v23 }
 0x3e7   : > { %v3455_v31 = vadd.f32 %v3446_v49, %v3435_v45  ;;  %v3932_v1 = vadd.f32 %v6001_v62, %v3928_v30 }
 0x3e8   : > { %v3946_v37 = vadd.f32 %v3942_v54, %v6100_v57  ;;  %v3948_v22 = vadd.f32 %v3944_v25, %v6100_v57  ;;  %v3945_v27 = vadd.f32 %v3941_v10, %v6100_v57 }
 0x3e9   : > { %2623 = vrot.lane.b32.xlu1 %v2612_v44, %s4979_s19  ;;  %2621 = vrot.lane.b32.xlu0 %v2611_v46, %s4979_s19  ;;  %4277 = vst.msk [vmem:[%s6028_s26 + $0x60] sm:$0xff] %vm500_vm7, %v3932_v1  ;;  %v3498_v38 = vmul.f32 %v3455_v31, %v6010_v23  ;;  %v4271_v44 = vld [vmem:[%s6050_s29 + $0x70] sm:$0xff] }
 0x3eb   : > { %v3502_v41 = vadd.f32 %v3498_v38, %v6100_v57  ;;  %v4968_v48 = vpop.eup %4967 }
 0x3ec   : > { %v3880_v49 = vmul.f32 %v4968_v48, %v4271_v44 }
 0x3ed   : > { %3069 = vrot.lane.b32.xlu1 %v3058_v11, %s4979_s19  ;;  %3067 = vrot.lane.b32.xlu0 %v3057_v7, %s4979_s19 }
 0x3f1   : > { %3510 = vrot.lane.b32.xlu1 %v3501_v13, %s4979_s19  ;;  %3508 = vrot.lane.b32.xlu0 %v3500_v28, %s4979_s19 }
 0x3f5   : > { %3955 = vrot.lane.b32.xlu1 %v3946_v37, %s4979_s19  ;;  %3514 = vrot.lane.b32.xlu0 %v3503_v39, %s4979_s19 }
 0x3f9   : > { %3512 = vrot.lane.b32.xlu1 %v3502_v41, %s4979_s19  ;;  %3959 = vrot.lane.b32.xlu0 %v3948_v22, %s4979_s19 }
 0x3fa   : > { %v3469_v62 = vpop.xlane.xlu0 %3468 }
 0x3fb   : > { %v3470_v34 = vrot.slane %v3469_v62, 4  ;;  %s4885_s15 = spop %4884 }
 0x3fd   : > { %v3471_v14 = vadd.f32 %v3470_v34, %v3469_v62  ;;  %3953 = vrot.lane.b32.xlu0 %v3945_v27, %s4979_s19 }
 0x3fe   : > { %v3914_v59 = vpop.xlane.xlu0 %3913 }
 0x3ff   : > { %v3472_v46 = vrot.slane %v3471_v14, 2  ;;  %v3915_v53 = vrot.slane %v3914_v59, 4 }
 0x401   : > { %v3916_v58 = vadd.f32 %v3915_v53, %v3914_v59  ;;  %v3473_v51 = vadd.f32 %v3472_v46, %v3471_v14 }
 0x402   : > { %v3891_v52 = vpop.permute.xlu0 %3890 }
 0x403   : > { %v3917_v63 = vrot.slane %v3916_v58, 2  ;;  %v3900_v61 = vadd.f32 %v3891_v52, %v3880_v49  ;;  %v3474_v55 = vrot.slane %v3473_v51, 1 }
 0x405   : > { %v3943_v19 = vmul.f32 %v3900_v61, %v6010_v23  ;;  %v3475_v26 = vadd.f32 %v3474_v55, %v3473_v51  ;;  %v3918_v56 = vadd.f32 %v3917_v63, %v3916_v58 }
 0x407   : > { %v3947_v40 = vadd.f32 %v3943_v19, %v6100_v57  ;;  %4888 = vpush %v3475_v26  ;;  %v3919_v60 = vrot.slane %v3918_v56, 1 }
 0x409   : > { %3957 = vrot.lane.b32.xlu1 %v3947_v40, %s4979_s19  ;;  %v3920_v2 = vadd.f32 %v3919_v60, %v3918_v56 }
 0x40b   : > { %4890 = vpush %v3920_v2 }
 0x410   : > { %s4887_s18 = spop %4886 }
 0x411   : > { %s3032_s20 = sadd.f32 %s4887_s18, %s4885_s15 }
 0x438   : > { %s4889_s11 = spop %4888 }
 0x439   : > { %s3477_s12 = sadd.f32 %s4889_s11, %s3032_s20 }
 0x43c   : > { %s4891_s13 = spop %4890 }
 0x43d   : > { %s3922_s21 = sadd.f32 %s4891_s13, %s3477_s12 }
 0x43f   : > { %v3971_v23 = vstv %s3922_s21 }
 0x440   : > { %3973 = vst.msk [vmem:[%s361_s17] sm:$0x1] %vm3972_vm13, %v3971_v23 }
 0x453   : > { %v2620_v57 = vpop.permute.xlu1 %2619  ;;  %v2618_v47 = vpop.permute.xlu0 %2617 }
 0x454   : > { %2630 = vst.msk [vmem:[%s6028_s26 + $0x8] sm:$0xff] %vm458_vm6, %v2620_v57  ;;  %2629 = vst.msk [vmem:[%s6028_s26] sm:$0xff] %vm458_vm6, %v2618_v47 }
 0x455   : > { %2634 = vst.msk [vmem:[%s6028_s26 + $0xd] sm:$0x7] %vm2633_vm14, %v4977_v0 }
 0x457   : > { %v3066_v4 = vpop.permute.xlu1 %3065  ;;  %v3064_v3 = vpop.permute.xlu0 %3063 }
 0x458   : > { %4208 = vst.msk [vmem:[%s6028_s26 + $0x28] sm:$0xff] %vm458_vm6, %v3066_v4  ;;  %4207 = vst.msk [vmem:[%s6028_s26 + $0x20] sm:$0xff] %vm458_vm6, %v3064_v3 }
 0x459   : > { %4211 = vst.msk [vmem:[%s6028_s26 + $0x2d] sm:$0x7] %vm2633_vm14, %v4977_v0 }
 0x45b   : > { %v2624_v11 = vpop.permute.xlu1 %2623  ;;  %v2622_v7 = vpop.permute.xlu0 %2621 }
 0x45c   : > { %2632 = vst.msk [vmem:[%s6028_s26 + $0x18] sm:$0xff] %vm458_vm6, %v2624_v11  ;;  %2631 = vst.msk [vmem:[%s6028_s26 + $0x10] sm:$0xff] %vm458_vm6, %v2622_v7 }
 0x45d   : > { %2635 = vst.msk [vmem:[%s6028_s26 + $0x1d] sm:$0x7] %vm2633_vm14, %v4977_v0 }
 0x45f   : > { %v3070_v5 = vpop.permute.xlu1 %3069  ;;  %v3068_v6 = vpop.permute.xlu0 %3067 }
 0x460   : > { %4210 = vst.msk [vmem:[%s6028_s26 + $0x38] sm:$0xff] %vm458_vm6, %v3070_v5  ;;  %4209 = vst.msk [vmem:[%s6028_s26 + $0x30] sm:$0xff] %vm458_vm6, %v3068_v6 }
 0x461   : > { %4212 = vst.msk [vmem:[%s6028_s26 + $0x3d] sm:$0x7] %vm2633_vm14, %v4977_v0 }
 0x463   : > { %v3511_v9 = vpop.permute.xlu1 %3510  ;;  %v3509_v12 = vpop.permute.xlu0 %3508 }
 0x464   : > { %4245 = vst.msk [vmem:[%s6028_s26 + $0x48] sm:$0xff] %vm458_vm6, %v3511_v9  ;;  %4244 = vst.msk [vmem:[%s6028_s26 + $0x40] sm:$0xff] %vm458_vm6, %v3509_v12 }
 0x465   : > { %4248 = vst.msk [vmem:[%s6028_s26 + $0x4d] sm:$0x7] %vm2633_vm14, %v4977_v0 }
 0x467   : > { %v3956_v15 = vpop.permute.xlu1 %3955  ;;  %v3515_v16 = vpop.permute.xlu0 %3514 }
 0x468   : > { %4282 = vst.msk [vmem:[%s6028_s26 + $0x68] sm:$0xff] %vm458_vm6, %v3956_v15  ;;  %4247 = vst.msk [vmem:[%s6028_s26 + $0x58] sm:$0xff] %vm458_vm6, %v3515_v16 }
 0x469   : > { %4285 = vst.msk [vmem:[%s6028_s26 + $0x6d] sm:$0x7] %vm2633_vm14, %v4977_v0  ;;  %4249 = vst.msk [vmem:[%s6028_s26 + $0x5d] sm:$0x7] %vm2633_vm14, %v4977_v0 }
 0x46b   : > { %v3513_v29 = vpop.permute.xlu1 %3512  ;;  %v3960_v17 = vpop.permute.xlu0 %3959 }
 0x46c   : > { %4246 = vst.msk [vmem:[%s6028_s26 + $0x50] sm:$0xff] %vm458_vm6, %v3513_v29  ;;  %4284 = vst.msk [vmem:[%s6028_s26 + $0x78] sm:$0xff] %vm458_vm6, %v3960_v17 }
 0x46d   : > { %4286 = vst.msk [vmem:[%s6028_s26 + $0x7d] sm:$0x7] %vm2633_vm14, %v4977_v0 }
 0x46f   : > { %v3954_v43 = vpop.permute.xlu0 %3953 }
 0x470   : > { %4281 = vst.msk [vmem:[%s6028_s26 + $0x60] sm:$0xff] %vm458_vm6, %v3954_v43 }
 0x47b   : > { %v3958_v18 = vpop.permute.xlu1 %3957 }
 0x47c   : > { %4283 = vst.msk [vmem:[%s6028_s26 + $0x70] sm:$0xff] %vm458_vm6, %v3958_v18 }
 0x47d PF: > { %s20_s30 = sadd.s32 1, %s4975_s30  }
 0x47e   : > { %p17_p4 = scmp.ge.s32.totalorder %s20_s30, 4  }
 0x480   :  { %19 = sbr.rel (!%p17_p4) target bundleno = 1 (0x1), region = 128 }

</bundles_post_ra>
